<compile_context>
chip_gen: v7x
topology: tpu7x:2x2x1
jax: 0.10.0
libtpu: 0.0.40
codegen_flags: <defaults>
</compile_context>

<pallas_src>
import functools

import jax
import jax.numpy as jnp
from jax.experimental import pallas as pl
from jax.experimental.pallas import tpu as pltpu

EPS = 1e-5
TM_MAX = 1024                     # max im2col columns (pixels) per grid step, multiple of 128
VMEM_LIMIT = 32 * 1024 * 1024     # <= half of v7x physical VMEM; fine on v5e/v6e too
MXU_DTYPE = jnp.float32           # set jnp.bfloat16 for more MXU/DMA throughput (looser tol)
_VMEM_SPEC = pl.BlockSpec(memory_space=pltpu.MemorySpace.VMEM)


def _round_up(x, m):
    return (x + m - 1) // m * m


# ---------------------------------------------------------------------------
# Pallas kernels
# ---------------------------------------------------------------------------
def _bn_res_relu(yf, g, b, r, *, relu, eps, m_total):
    """BN (batch stats over valid columns) + optional residual + ReLU on Y^T (Cout, Mpad)."""
    inv_m = 1.0 / float(m_total)
    # Padded columns of the raw matmul output are exactly zero -> sum needs no mask.
    mean = jnp.sum(yf, axis=1, keepdims=True) * inv_m                       # (Cout, 1)
    col = jax.lax.broadcasted_iota(jnp.int32, yf.shape, 1)
    d = jnp.where(col < m_total, yf - mean, 0.0)                            # mask padded cols
    var = jnp.sum(d * d, axis=1, keepdims=True) * inv_m                     # biased (torch train BN)
    scale = g * jax.lax.rsqrt(var + eps)
    shift = b - mean * scale
    out = yf * scale + shift
    if r is not None:
        out = out + r
    if relu:
        out = jnp.maximum(out, 0.0)
    return out


def _conv_bn_kernel(*refs, tm, m_total, num_tiles, relu, has_res, eps):
    """Fused conv-as-matmul + BN(+residual)(+ReLU).

    Y^T tile (Cout, tm) = W^T (Cout, Kpad) @ X^T tile (Kpad, tm); the full Y^T stays
    resident in the output VMEM block across the M grid axis, stats + normalization run
    once in the last grid step, and only the final activation is written to HBM.
    """
    if has_res:
        x_ref, w_ref, g_ref, b_ref, r_ref, o_ref = refs
    else:
        x_ref, w_ref, g_ref, b_ref, o_ref = refs
        r_ref = None

    y = jnp.dot(w_ref[...], x_ref[...], preferred_element_type=jnp.float32)  # (Cout, tm)

    if num_tiles == 1:
        # Everything in one step: normalize in-register, single store.
        o_ref[...] = _bn_res_relu(y, g_ref[...], b_ref[...],
                                  r_ref[...] if has_res else None,
                                  relu=relu, eps=eps, m_total=m_total)
    else:
        i = pl.program_id(0)
        o_ref[:, pl.ds(pl.multiple_of(i * tm, tm), tm)] = y

        @pl.when(i == num_tiles - 1)
        def _():
            yf = o_ref[...]                                   # full raw Y^T, resident in VMEM
            o_ref[...] = _bn_res_relu(yf, g_ref[...], b_ref[...],
                                      r_ref[...] if has_res else None,
                                      relu=relu, eps=eps, m_total=m_total)


def _pool_fc_kernel(x_ref, wt_ref, b_ref, o_ref):
    """Global average pool + fc. x: (C, N, H*W), wt: (nc, C), b: (nc, 1) -> (nc, N)."""
    pooled = jnp.mean(x_ref[...], axis=2)                                     # (C, N)
    o_ref[...] = jnp.dot(wt_ref[...], pooled,
                         preferred_element_type=jnp.float32) + b_ref[...]


# ---------------------------------------------------------------------------
# Pallas wrappers
# ---------------------------------------------------------------------------
def conv_bn_fused(x_t, w_t, g2, b2, res, *, relu, m_total, tm):
    """Single fused call: matmul + batch-stats + BN + optional residual + ReLU."""
    k_pad, m_pad = x_t.shape
    cout = w_t.shape[0]
    num_tiles = m_pad // tm
    has_res = res is not None

    kern = functools.partial(_conv_bn_kernel, tm=tm, m_total=m_total,
                             num_tiles=num_tiles, relu=relu, has_res=has_res, eps=EPS)

    in_specs = [
        pl.BlockSpec((k_pad, tm), lambda i: (0, i)),        # X^T streams over M tiles
        pl.BlockSpec((cout, k_pad), lambda i: (0, 0)),      # weights resident
        pl.BlockSpec((cout, 1), lambda i: (0, 0)),          # gamma
        pl.BlockSpec((cout, 1), lambda i: (0, 0)),          # beta
    ]
    args = [x_t, w_t, g2, b2]
    if has_res:
        in_specs.append(pl.BlockSpec((cout, m_pad), lambda i: (0, 0)))  # residual (epilogue)
        args.append(res)

    out_spec = pl.BlockSpec((cout, m_pad), lambda i: (0, 0))            # resident, 1 HBM write

    itemsize = x_t.dtype.itemsize
    flops = 2 * cout * k_pad * m_pad + 8 * cout * m_pad
    bytes_accessed = (x_t.size * itemsize + w_t.size * itemsize
                      + cout * m_pad * 4 + (res.size * 4 if has_res else 0))

    return pl.pallas_call(
        kern,
        out_shape=jax.ShapeDtypeStruct((cout, m_pad), jnp.float32),
        grid=(num_tiles,),
        in_specs=in_specs,
        out_specs=out_spec,
        compiler_params=pltpu.CompilerParams(
            # Output block is an accumulator across the M axis -> sequential.
            dimension_semantics=("arbitrary",),
            vmem_limit_bytes=VMEM_LIMIT),
        cost_estimate=pl.CostEstimate(flops=flops, transcendentals=cout,
                                      bytes_accessed=bytes_accessed),
    )(*args)


def pool_fc(x_cf, w, b):
    """AdaptiveAvgPool2d((1,1)) + flatten + Linear, consuming channels-first activations."""
    c, n, h, ww = x_cf.shape
    x3 = x_cf.reshape(c, n, h * ww)
    nc = w.shape[1]
    logits_t = pl.pallas_call(
        _pool_fc_kernel,
        out_shape=jax.ShapeDtypeStruct((nc, n), jnp.float32),
        in_specs=[_VMEM_SPEC] * 3,
        out_specs=_VMEM_SPEC,
        compiler_params=pltpu.CompilerParams(vmem_limit_bytes=VMEM_LIMIT),
    )(x3, w.T, b.reshape(nc, 1))
    return logits_t.T                                          # (N, num_classes)


# ---------------------------------------------------------------------------
# JAX glue: transposed im2col (channels-first) and model assembly
# ---------------------------------------------------------------------------
def im2col_T(x_cf, ksize, stride, pad):
    """x_cf: (Cin, N, H, W) -> X^T (K, M) with K = [kh, kw, cin], M = N*Ho*Wo."""
    c, n, h, w = x_cf.shape
    if pad:
        x_cf = jnp.pad(x_cf, ((0, 0), (0, 0), (pad, pad), (pad, pad)))
    ho = (h + 2 * pad - ksize) // stride + 1
    wo = (w + 2 * pad - ksize) // stride + 1
    taps = []
    for kh in range(ksize):
        for kw in range(ksize):
            taps.append(x_cf[:, :, kh:kh + (ho - 1) * stride + 1:stride,
                                   kw:kw + (wo - 1) * stride + 1:stride])
    pat = jnp.stack(taps, axis=0)                               # (KK, Cin, N, Ho, Wo)
    return pat.reshape(ksize * ksize * c, n * ho * wo), (n, ho, wo)


def conv_bn_layer(x_cf, w4, gamma, beta, stride, relu, residual_cf=None):
    """conv (3x3 pad1 / 1x1 pad0) + BN(train) [+ residual] [+ ReLU]; channels-first I/O."""
    kh, kw, cin, cout = w4.shape
    pad = 1 if kh == 3 else 0

    x_t, (n, ho, wo) = im2col_T(x_cf, kh, stride, pad)          # (K, M)
    k, m = x_t.shape
    k_pad = _round_up(k, 8)                                     # sublane-align contraction dim
    if m <= TM_MAX:
        m_pad = _round_up(m, 128)                               # lane-align pixel dim
        tm = m_pad                                              # single grid step at these sizes
    else:
        tm = TM_MAX
        m_pad = _round_up(m, tm)

    x_t = jnp.pad(x_t, ((0, k_pad - k), (0, m_pad - m))).astype(MXU_DTYPE)
    w_t = jnp.pad(w4.reshape(k, cout).T, ((0, 0), (0, k_pad - k))).astype(MXU_DTYPE)
    g2 = gamma.reshape(cout, 1).astype(jnp.float32)
    b2 = beta.reshape(cout, 1).astype(jnp.float32)

    res = None
    if residual_cf is not None:
        res = residual_cf.reshape(cout, m).astype(jnp.float32)
        if m_pad != m:
            res = jnp.pad(res, ((0, 0), (0, m_pad - m)))

    out = conv_bn_fused(x_t, w_t, g2, b2, res, relu=relu, m_total=m, tm=tm)
    return out[:, :m].reshape(cout, n, ho, wo)                  # channels-first activation


def basic_block(x_cf, blk):
    s = blk["stride"]
    if "down_conv" in blk:
        identity = conv_bn_layer(x_cf, blk["down_conv"], *blk["down_bn"],
                                 stride=s, relu=False)
    else:
        identity = x_cf
    out = conv_bn_layer(x_cf, blk["conv1"], *blk["bn1"], stride=s, relu=True)
    out = conv_bn_layer(out, blk["conv2"], *blk["bn2"], stride=1, relu=True,
                        residual_cf=identity)
    return out


def resnet_forward(params, x_nchw):
    x_cf = jnp.transpose(x_nchw, (1, 0, 2, 3))                  # NCHW -> (C, N, H, W)
    x_cf = conv_bn_layer(x_cf, params["conv1"], *params["bn1"], stride=1, relu=True)
    for li in (1, 2, 3):
        for blk in params[f"layer{li}"]:
            x_cf = basic_block(x_cf, blk)
    return pool_fc(x_cf, params["fc_w"], params["fc_b"])


# ---------------------------------------------------------------------------
# Deterministic parameter initialization (mirrors the module's __init__)
# ---------------------------------------------------------------------------
def _kaiming_conv(key, kh, kw, cin, cout):
    fan_out = cout * kh * kw
    std = (2.0 / fan_out) ** 0.5
    return jax.random.normal(key, (kh, kw, cin, cout), jnp.float32) * std


def make_params(key, layers=(1, 1, 1), num_classes=10):
    keys = iter(jax.random.split(key, 64))
    params = {
        "conv1": _kaiming_conv(next(keys), 3, 3, 3, 16),
        "bn1": (jnp.ones(16, jnp.float32), jnp.zeros(16, jnp.float32)),
    }
    inplanes = 16
    stage_cfg = [(16, layers[0], 1), (32, layers[1], 2), (64, layers[2], 2)]
    for li, (planes, nblocks, stride) in enumerate(stage_cfg, start=1):
        blocks = []
        for bi in range(nblocks):
            s = stride if bi == 0 else 1
            blk = {
                "stride": s,
                "conv1": _kaiming_conv(next(keys), 3, 3, inplanes, planes),
                "bn1": (jnp.ones(planes, jnp.float32), jnp.zeros(planes, jnp.float32)),
                "conv2": _kaiming_conv(next(keys), 3, 3, planes, planes),
                "bn2": (jnp.ones(planes, jnp.float32), jnp.zeros(planes, jnp.float32)),
            }
            if s != 1 or inplanes != planes:
                blk["down_conv"] = _kaiming_conv(next(keys), 1, 1, inplanes, planes)
                blk["down_bn"] = (jnp.ones(planes, jnp.float32),
                                  jnp.zeros(planes, jnp.float32))
            blocks.append(blk)
            inplanes = planes
        params[f"layer{li}"] = blocks
    bound = 1.0 / (64.0 ** 0.5)
    params["fc_w"] = jax.random.uniform(next(keys), (64, num_classes),
                                        jnp.float32, -bound, bound)
    params["fc_b"] = jax.random.uniform(next(keys), (num_classes,),
                                        jnp.float32, -bound, bound)
    return params


if __name__ == "__main__":
    key = jax.random.PRNGKey(0)
    kp, kx = jax.random.split(key)
    params = make_params(kp, layers=(1, 1, 1), num_classes=10)
    # Small input consistent with the module: NCHW, 3 input channels.
    x = jax.random.normal(kx, (2, 3, 16, 16), jnp.float32)

    # params (incl. Python-int strides) are closed over -> only x is traced.
    fwd = jax.jit(lambda inp: resnet_forward(params, inp))
    logits = jax.block_until_ready(fwd(x))
    assert logits.shape == (2, 10) and logits.dtype == jnp.float32
    print("KERNEL_OK")
</pallas_src>

<mosaic_0001>
module attributes {stable_mosaic.version = 11 : i64} {
  func.func @_conv_bn_kernel(%arg0: i32, %arg1: memref<32x512xf32, #tpu.memory_space<vmem>>, %arg2: memref<16x32xf32, #tpu.memory_space<vmem>>, %arg3: memref<16x1xf32, #tpu.memory_space<vmem>>, %arg4: memref<16x1xf32, #tpu.memory_space<vmem>>, %arg5: memref<16x512xf32, #tpu.memory_space<vmem>>) attributes {dimension_semantics = [#tpu.dimension_semantics<arbitrary>], iteration_bounds = array<i64: 1>, scalar_prefetch = 0 : i64, scratch_operands = 0 : i64, tpu.core_type = #tpu.core_type<tc>, window_params = [{transform_indices = @transform_0, window_bounds = array<i64: 32, 512>}, {pipeline_mode = #tpu.pipeline_mode<synchronous>, transform_indices = @transform_1, window_bounds = array<i64: 16, 32>}, {pipeline_mode = #tpu.pipeline_mode<synchronous>, transform_indices = @transform_2, window_bounds = array<i64: 16, 1>}, {pipeline_mode = #tpu.pipeline_mode<synchronous>, transform_indices = @transform_3, window_bounds = array<i64: 16, 1>}, {pipeline_mode = #tpu.pipeline_mode<synchronous>, transform_indices = @transform_4, window_bounds = array<i64: 16, 512>}]} {
    %c0 = arith.constant 0 : index
    %c0_0 = arith.constant 0 : index
    %0 = vector.load %arg2[%c0, %c0_0] : memref<16x32xf32, #tpu.memory_space<vmem>>, vector<16x32xf32>
    %c0_1 = arith.constant 0 : index
    %c0_2 = arith.constant 0 : index
    %1 = vector.load %arg1[%c0_1, %c0_2] : memref<32x512xf32, #tpu.memory_space<vmem>>, vector<32x512xf32>
    %cst = arith.constant dense<0.000000e+00> : vector<16x512xf32>
    %2 = tpu.matmul %0, %1, %cst {dimension_numbers = #tpu.dot_dimension_numbers<[1], [0], [0], [1], [0, 0, 1, 1], [], []>} : vector<16x32xf32>, vector<32x512xf32>, vector<16x512xf32> -> vector<16x512xf32>
    %c0_3 = arith.constant 0 : index
    %c0_4 = arith.constant 0 : index
    %3 = vector.load %arg3[%c0_3, %c0_4] : memref<16x1xf32, #tpu.memory_space<vmem>>, vector<16x1xf32>
    %c0_5 = arith.constant 0 : index
    %c0_6 = arith.constant 0 : index
    %4 = vector.load %arg4[%c0_5, %c0_6] : memref<16x1xf32, #tpu.memory_space<vmem>>, vector<16x1xf32>
    %cst_7 = arith.constant dense<0.000000e+00> : vector<16xf32>
    %5 = vector.multi_reduction <add>, %2, %cst_7 [1] : vector<16x512xf32> to vector<16xf32>
    %6 = vector.shape_cast %5 : vector<16xf32> to vector<16x1xf32>
    %cst_8 = arith.constant 0.001953125 : f32
    %7 = vector.broadcast %cst_8 : f32 to vector<16x1xf32>
    %8 = arith.mulf %6, %7 : vector<16x1xf32>
    %9 = tpu.iota {dimensions = array<i32: 1>} : vector<16x512xi32>
    %c512_i32 = arith.constant 512 : i32
    %10 = vector.broadcast %c512_i32 : i32 to vector<16x512xi32>
    %11 = arith.cmpi slt, %9, %10 : vector<16x512xi32>
    %12 = vector.broadcast %8 : vector<16x1xf32> to vector<16x512xf32>
    %13 = arith.subf %2, %12 : vector<16x512xf32>
    %cst_9 = arith.constant 0.000000e+00 : f32
    %14 = vector.broadcast %cst_9 : f32 to vector<16x512xf32>
    %15 = arith.select %11, %13, %14 : vector<16x512xi1>, vector<16x512xf32>
    %16 = arith.mulf %15, %15 : vector<16x512xf32>
    %cst_10 = arith.constant dense<0.000000e+00> : vector<16xf32>
    %17 = vector.multi_reduction <add>, %16, %cst_10 [1] : vector<16x512xf32> to vector<16xf32>
    %18 = vector.shape_cast %17 : vector<16xf32> to vector<16x1xf32>
    %cst_11 = arith.constant 0.001953125 : f32
    %19 = vector.broadcast %cst_11 : f32 to vector<16x1xf32>
    %20 = arith.mulf %18, %19 : vector<16x1xf32>
    %cst_12 = arith.constant 9.99999974E-6 : f32
    %21 = vector.broadcast %cst_12 : f32 to vector<16x1xf32>
    %22 = arith.addf %20, %21 : vector<16x1xf32>
    %23 = math.rsqrt %22 : vector<16x1xf32>
    %24 = arith.mulf %3, %23 : vector<16x1xf32>
    %25 = arith.mulf %8, %24 : vector<16x1xf32>
    %26 = arith.subf %4, %25 : vector<16x1xf32>
    %27 = vector.broadcast %24 : vector<16x1xf32> to vector<16x512xf32>
    %28 = arith.mulf %2, %27 : vector<16x512xf32>
    %29 = vector.broadcast %26 : vector<16x1xf32> to vector<16x512xf32>
    %30 = arith.addf %28, %29 : vector<16x512xf32>
    %cst_13 = arith.constant 0.000000e+00 : f32
    %31 = vector.broadcast %cst_13 : f32 to vector<16x512xf32>
    %32 = arith.maximumf %30, %31 : vector<16x512xf32>
    %c0_14 = arith.constant 0 : index
    %c0_15 = arith.constant 0 : index
    %33 = vector.load %arg5[%c0_14, %c0_15] : memref<16x512xf32, #tpu.memory_space<vmem>>, vector<16x512xf32>
    tpu.vector_store %arg5[%c0_14, %c0_15], %32 {strides = array<i32>} : memref<16x512xf32, #tpu.memory_space<vmem>>, vector<16x512xf32>,
    return
  }
  func.func @transform_0(%arg0: i32) -> (i32, i32) {
    %c0_i32 = arith.constant 0 : i32
    %c0_i32_0 = arith.constant 0 : i32
    return %c0_i32, %arg0 : i32, i32
  }
  func.func @transform_1(%arg0: i32) -> (i32, i32) {
    %c0_i32 = arith.constant 0 : i32
    %c0_i32_0 = arith.constant 0 : i32
    %c0_i32_1 = arith.constant 0 : i32
    return %c0_i32, %c0_i32_0 : i32, i32
  }
  func.func @transform_2(%arg0: i32) -> (i32, i32) {
    %c0_i32 = arith.constant 0 : i32
    %c0_i32_0 = arith.constant 0 : i32
    %c0_i32_1 = arith.constant 0 : i32
    return %c0_i32, %c0_i32_0 : i32, i32
  }
  func.func @transform_3(%arg0: i32) -> (i32, i32) {
    %c0_i32 = arith.constant 0 : i32
    %c0_i32_0 = arith.constant 0 : i32
    %c0_i32_1 = arith.constant 0 : i32
    return %c0_i32, %c0_i32_0 : i32, i32
  }
  func.func @transform_4(%arg0: i32) -> (i32, i32) {
    %c0_i32 = arith.constant 0 : i32
    %c0_i32_0 = arith.constant 0 : i32
    %c0_i32_1 = arith.constant 0 : i32
    return %c0_i32, %c0_i32_0 : i32, i32
  }
}

module attributes {stable_mosaic.version = 11 : i64} {
  func.func @_conv_bn_kernel(%arg0: i32, %arg1: memref<144x512xf32, #tpu.memory_space<vmem>>, %arg2: memref<16x144xf32, #tpu.memory_space<vmem>>, %arg3: memref<16x1xf32, #tpu.memory_space<vmem>>, %arg4: memref<16x1xf32, #tpu.memory_space<vmem>>, %arg5: memref<16x512xf32, #tpu.memory_space<vmem>>, %arg6: memref<16x512xf32, #tpu.memory_space<vmem>>) attributes {dimension_semantics = [#tpu.dimension_semantics<arbitrary>], iteration_bounds = array<i64: 1>, scalar_prefetch = 0 : i64, scratch_operands = 0 : i64, tpu.core_type = #tpu.core_type<tc>, window_params = [{transform_indices = @transform_0, window_bounds = array<i64: 144, 512>}, {pipeline_mode = #tpu.pipeline_mode<synchronous>, transform_indices = @transform_1, window_bounds = array<i64: 16, 144>}, {pipeline_mode = #tpu.pipeline_mode<synchronous>, transform_indices = @transform_2, window_bounds = array<i64: 16, 1>}, {pipeline_mode = #tpu.pipeline_mode<synchronous>, transform_indices = @transform_3, window_bounds = array<i64: 16, 1>}, {pipeline_mode = #tpu.pipeline_mode<synchronous>, transform_indices = @transform_4, window_bounds = array<i64: 16, 512>}, {pipeline_mode = #tpu.pipeline_mode<synchronous>, transform_indices = @transform_5, window_bounds = array<i64: 16, 512>}]} {
    %c0 = arith.constant 0 : index
    %c0_0 = arith.constant 0 : index
    %0 = vector.load %arg2[%c0, %c0_0] : memref<16x144xf32, #tpu.memory_space<vmem>>, vector<16x144xf32>
    %c0_1 = arith.constant 0 : index
    %c0_2 = arith.constant 0 : index
    %1 = vector.load %arg1[%c0_1, %c0_2] : memref<144x512xf32, #tpu.memory_space<vmem>>, vector<144x512xf32>
    %cst = arith.constant dense<0.000000e+00> : vector<16x512xf32>
    %2 = tpu.matmul %0, %1, %cst {dimension_numbers = #tpu.dot_dimension_numbers<[1], [0], [0], [1], [0, 0, 1, 1], [], []>} : vector<16x144xf32>, vector<144x512xf32>, vector<16x512xf32> -> vector<16x512xf32>
    %c0_3 = arith.constant 0 : index
    %c0_4 = arith.constant 0 : index
    %3 = vector.load %arg3[%c0_3, %c0_4] : memref<16x1xf32, #tpu.memory_space<vmem>>, vector<16x1xf32>
    %c0_5 = arith.constant 0 : index
    %c0_6 = arith.constant 0 : index
    %4 = vector.load %arg4[%c0_5, %c0_6] : memref<16x1xf32, #tpu.memory_space<vmem>>, vector<16x1xf32>
    %c0_7 = arith.constant 0 : index
    %c0_8 = arith.constant 0 : index
    %5 = vector.load %arg5[%c0_7, %c0_8] : memref<16x512xf32, #tpu.memory_space<vmem>>, vector<16x512xf32>
    %cst_9 = arith.constant dense<0.000000e+00> : vector<16xf32>
    %6 = vector.multi_reduction <add>, %2, %cst_9 [1] : vector<16x512xf32> to vector<16xf32>
    %7 = vector.shape_cast %6 : vector<16xf32> to vector<16x1xf32>
    %cst_10 = arith.constant 0.001953125 : f32
    %8 = vector.broadcast %cst_10 : f32 to vector<16x1xf32>
    %9 = arith.mulf %7, %8 : vector<16x1xf32>
    %10 = tpu.iota {dimensions = array<i32: 1>} : vector<16x512xi32>
    %c512_i32 = arith.constant 512 : i32
    %11 = vector.broadcast %c512_i32 : i32 to vector<16x512xi32>
    %12 = arith.cmpi slt, %10, %11 : vector<16x512xi32>
    %13 = vector.broadcast %9 : vector<16x1xf32> to vector<16x512xf32>
    %14 = arith.subf %2, %13 : vector<16x512xf32>
    %cst_11 = arith.constant 0.000000e+00 : f32
    %15 = vector.broadcast %cst_11 : f32 to vector<16x512xf32>
    %16 = arith.select %12, %14, %15 : vector<16x512xi1>, vector<16x512xf32>
    %17 = arith.mulf %16, %16 : vector<16x512xf32>
    %cst_12 = arith.constant dense<0.000000e+00> : vector<16xf32>
    %18 = vector.multi_reduction <add>, %17, %cst_12 [1] : vector<16x512xf32> to vector<16xf32>
    %19 = vector.shape_cast %18 : vector<16xf32> to vector<16x1xf32>
    %cst_13 = arith.constant 0.001953125 : f32
    %20 = vector.broadcast %cst_13 : f32 to vector<16x1xf32>
    %21 = arith.mulf %19, %20 : vector<16x1xf32>
    %cst_14 = arith.constant 9.99999974E-6 : f32
    %22 = vector.broadcast %cst_14 : f32 to vector<16x1xf32>
    %23 = arith.addf %21, %22 : vector<16x1xf32>
    %24 = math.rsqrt %23 : vector<16x1xf32>
    %25 = arith.mulf %3, %24 : vector<16x1xf32>
    %26 = arith.mulf %9, %25 : vector<16x1xf32>
    %27 = arith.subf %4, %26 : vector<16x1xf32>
    %28 = vector.broadcast %25 : vector<16x1xf32> to vector<16x512xf32>
    %29 = arith.mulf %2, %28 : vector<16x512xf32>
    %30 = vector.broadcast %27 : vector<16x1xf32> to vector<16x512xf32>
    %31 = arith.addf %29, %30 : vector<16x512xf32>
    %32 = arith.addf %31, %5 : vector<16x512xf32>
    %cst_15 = arith.constant 0.000000e+00 : f32
    %33 = vector.broadcast %cst_15 : f32 to vector<16x512xf32>
    %34 = arith.maximumf %32, %33 : vector<16x512xf32>
    %c0_16 = arith.constant 0 : index
    %c0_17 = arith.constant 0 : index
    %35 = vector.load %arg6[%c0_16, %c0_17] : memref<16x512xf32, #tpu.memory_space<vmem>>, vector<16x512xf32>
    tpu.vector_store %arg6[%c0_16, %c0_17], %34 {strides = array<i32>} : memref<16x512xf32, #tpu.memory_space<vmem>>, vector<16x512xf32>,
    return
  }
  func.func @transform_0(%arg0: i32) -> (i32, i32) {
    %c0_i32 = arith.constant 0 : i32
    %c0_i32_0 = arith.constant 0 : i32
    return %c0_i32, %arg0 : i32, i32
  }
  func.func @transform_1(%arg0: i32) -> (i32, i32) {
    %c0_i32 = arith.constant 0 : i32
    %c0_i32_0 = arith.constant 0 : i32
    %c0_i32_1 = arith.constant 0 : i32
    return %c0_i32, %c0_i32_0 : i32, i32
  }
  func.func @transform_2(%arg0: i32) -> (i32, i32) {
    %c0_i32 = arith.constant 0 : i32
    %c0_i32_0 = arith.constant 0 : i32
    %c0_i32_1 = arith.constant 0 : i32
    return %c0_i32, %c0_i32_0 : i32, i32
  }
  func.func @transform_3(%arg0: i32) -> (i32, i32) {
    %c0_i32 = arith.constant 0 : i32
    %c0_i32_0 = arith.constant 0 : i32
    %c0_i32_1 = arith.constant 0 : i32
    return %c0_i32, %c0_i32_0 : i32, i32
  }
  func.func @transform_4(%arg0: i32) -> (i32, i32) {
    %c0_i32 = arith.constant 0 : i32
    %c0_i32_0 = arith.constant 0 : i32
    %c0_i32_1 = arith.constant 0 : i32
    return %c0_i32, %c0_i32_0 : i32, i32
  }
  func.func @transform_5(%arg0: i32) -> (i32, i32) {
    %c0_i32 = arith.constant 0 : i32
    %c0_i32_0 = arith.constant 0 : i32
    %c0_i32_1 = arith.constant 0 : i32
    return %c0_i32, %c0_i32_0 : i32, i32
  }
}

module attributes {stable_mosaic.version = 11 : i64} {
  func.func @_conv_bn_kernel(%arg0: i32, %arg1: memref<144x512xf32, #tpu.memory_space<vmem>>, %arg2: memref<16x144xf32, #tpu.memory_space<vmem>>, %arg3: memref<16x1xf32, #tpu.memory_space<vmem>>, %arg4: memref<16x1xf32, #tpu.memory_space<vmem>>, %arg5: memref<16x512xf32, #tpu.memory_space<vmem>>) attributes {dimension_semantics = [#tpu.dimension_semantics<arbitrary>], iteration_bounds = array<i64: 1>, scalar_prefetch = 0 : i64, scratch_operands = 0 : i64, tpu.core_type = #tpu.core_type<tc>, window_params = [{transform_indices = @transform_0, window_bounds = array<i64: 144, 512>}, {pipeline_mode = #tpu.pipeline_mode<synchronous>, transform_indices = @transform_1, window_bounds = array<i64: 16, 144>}, {pipeline_mode = #tpu.pipeline_mode<synchronous>, transform_indices = @transform_2, window_bounds = array<i64: 16, 1>}, {pipeline_mode = #tpu.pipeline_mode<synchronous>, transform_indices = @transform_3, window_bounds = array<i64: 16, 1>}, {pipeline_mode = #tpu.pipeline_mode<synchronous>, transform_indices = @transform_4, window_bounds = array<i64: 16, 512>}]} {
    %c0 = arith.constant 0 : index
    %c0_0 = arith.constant 0 : index
    %0 = vector.load %arg2[%c0, %c0_0] : memref<16x144xf32, #tpu.memory_space<vmem>>, vector<16x144xf32>
    %c0_1 = arith.constant 0 : index
    %c0_2 = arith.constant 0 : index
    %1 = vector.load %arg1[%c0_1, %c0_2] : memref<144x512xf32, #tpu.memory_space<vmem>>, vector<144x512xf32>
    %cst = arith.constant dense<0.000000e+00> : vector<16x512xf32>
    %2 = tpu.matmul %0, %1, %cst {dimension_numbers = #tpu.dot_dimension_numbers<[1], [0], [0], [1], [0, 0, 1, 1], [], []>} : vector<16x144xf32>, vector<144x512xf32>, vector<16x512xf32> -> vector<16x512xf32>
    %c0_3 = arith.constant 0 : index
    %c0_4 = arith.constant 0 : index
    %3 = vector.load %arg3[%c0_3, %c0_4] : memref<16x1xf32, #tpu.memory_space<vmem>>, vector<16x1xf32>
    %c0_5 = arith.constant 0 : index
    %c0_6 = arith.constant 0 : index
    %4 = vector.load %arg4[%c0_5, %c0_6] : memref<16x1xf32, #tpu.memory_space<vmem>>, vector<16x1xf32>
    %cst_7 = arith.constant dense<0.000000e+00> : vector<16xf32>
    %5 = vector.multi_reduction <add>, %2, %cst_7 [1] : vector<16x512xf32> to vector<16xf32>
    %6 = vector.shape_cast %5 : vector<16xf32> to vector<16x1xf32>
    %cst_8 = arith.constant 0.001953125 : f32
    %7 = vector.broadcast %cst_8 : f32 to vector<16x1xf32>
    %8 = arith.mulf %6, %7 : vector<16x1xf32>
    %9 = tpu.iota {dimensions = array<i32: 1>} : vector<16x512xi32>
    %c512_i32 = arith.constant 512 : i32
    %10 = vector.broadcast %c512_i32 : i32 to vector<16x512xi32>
    %11 = arith.cmpi slt, %9, %10 : vector<16x512xi32>
    %12 = vector.broadcast %8 : vector<16x1xf32> to vector<16x512xf32>
    %13 = arith.subf %2, %12 : vector<16x512xf32>
    %cst_9 = arith.constant 0.000000e+00 : f32
    %14 = vector.broadcast %cst_9 : f32 to vector<16x512xf32>
    %15 = arith.select %11, %13, %14 : vector<16x512xi1>, vector<16x512xf32>
    %16 = arith.mulf %15, %15 : vector<16x512xf32>
    %cst_10 = arith.constant dense<0.000000e+00> : vector<16xf32>
    %17 = vector.multi_reduction <add>, %16, %cst_10 [1] : vector<16x512xf32> to vector<16xf32>
    %18 = vector.shape_cast %17 : vector<16xf32> to vector<16x1xf32>
    %cst_11 = arith.constant 0.001953125 : f32
    %19 = vector.broadcast %cst_11 : f32 to vector<16x1xf32>
    %20 = arith.mulf %18, %19 : vector<16x1xf32>
    %cst_12 = arith.constant 9.99999974E-6 : f32
    %21 = vector.broadcast %cst_12 : f32 to vector<16x1xf32>
    %22 = arith.addf %20, %21 : vector<16x1xf32>
    %23 = math.rsqrt %22 : vector<16x1xf32>
    %24 = arith.mulf %3, %23 : vector<16x1xf32>
    %25 = arith.mulf %8, %24 : vector<16x1xf32>
    %26 = arith.subf %4, %25 : vector<16x1xf32>
    %27 = vector.broadcast %24 : vector<16x1xf32> to vector<16x512xf32>
    %28 = arith.mulf %2, %27 : vector<16x512xf32>
    %29 = vector.broadcast %26 : vector<16x1xf32> to vector<16x512xf32>
    %30 = arith.addf %28, %29 : vector<16x512xf32>
    %cst_13 = arith.constant 0.000000e+00 : f32
    %31 = vector.broadcast %cst_13 : f32 to vector<16x512xf32>
    %32 = arith.maximumf %30, %31 : vector<16x512xf32>
    %c0_14 = arith.constant 0 : index
    %c0_15 = arith.constant 0 : index
    %33 = vector.load %arg5[%c0_14, %c0_15] : memref<16x512xf32, #tpu.memory_space<vmem>>, vector<16x512xf32>
    tpu.vector_store %arg5[%c0_14, %c0_15], %32 {strides = array<i32>} : memref<16x512xf32, #tpu.memory_space<vmem>>, vector<16x512xf32>,
    return
  }
  func.func @transform_0(%arg0: i32) -> (i32, i32) {
    %c0_i32 = arith.constant 0 : i32
    %c0_i32_0 = arith.constant 0 : i32
    return %c0_i32, %arg0 : i32, i32
  }
  func.func @transform_1(%arg0: i32) -> (i32, i32) {
    %c0_i32 = arith.constant 0 : i32
    %c0_i32_0 = arith.constant 0 : i32
    %c0_i32_1 = arith.constant 0 : i32
    return %c0_i32, %c0_i32_0 : i32, i32
  }
  func.func @transform_2(%arg0: i32) -> (i32, i32) {
    %c0_i32 = arith.constant 0 : i32
    %c0_i32_0 = arith.constant 0 : i32
    %c0_i32_1 = arith.constant 0 : i32
    return %c0_i32, %c0_i32_0 : i32, i32
  }
  func.func @transform_3(%arg0: i32) -> (i32, i32) {
    %c0_i32 = arith.constant 0 : i32
    %c0_i32_0 = arith.constant 0 : i32
    %c0_i32_1 = arith.constant 0 : i32
    return %c0_i32, %c0_i32_0 : i32, i32
  }
  func.func @transform_4(%arg0: i32) -> (i32, i32) {
    %c0_i32 = arith.constant 0 : i32
    %c0_i32_0 = arith.constant 0 : i32
    %c0_i32_1 = arith.constant 0 : i32
    return %c0_i32, %c0_i32_0 : i32, i32
  }
}

module attributes {stable_mosaic.version = 11 : i64} {
  func.func @_conv_bn_kernel(%arg0: i32, %arg1: memref<144x128xf32, #tpu.memory_space<vmem>>, %arg2: memref<32x144xf32, #tpu.memory_space<vmem>>, %arg3: memref<32x1xf32, #tpu.memory_space<vmem>>, %arg4: memref<32x1xf32, #tpu.memory_space<vmem>>, %arg5: memref<32x128xf32, #tpu.memory_space<vmem>>) attributes {dimension_semantics = [#tpu.dimension_semantics<arbitrary>], iteration_bounds = array<i64: 1>, scalar_prefetch = 0 : i64, scratch_operands = 0 : i64, tpu.core_type = #tpu.core_type<tc>, window_params = [{transform_indices = @transform_0, window_bounds = array<i64: 144, 128>}, {pipeline_mode = #tpu.pipeline_mode<synchronous>, transform_indices = @transform_1, window_bounds = array<i64: 32, 144>}, {pipeline_mode = #tpu.pipeline_mode<synchronous>, transform_indices = @transform_2, window_bounds = array<i64: 32, 1>}, {pipeline_mode = #tpu.pipeline_mode<synchronous>, transform_indices = @transform_3, window_bounds = array<i64: 32, 1>}, {pipeline_mode = #tpu.pipeline_mode<synchronous>, transform_indices = @transform_4, window_bounds = array<i64: 32, 128>}]} {
    %c0 = arith.constant 0 : index
    %c0_0 = arith.constant 0 : index
    %0 = vector.load %arg2[%c0, %c0_0] : memref<32x144xf32, #tpu.memory_space<vmem>>, vector<32x144xf32>
    %c0_1 = arith.constant 0 : index
    %c0_2 = arith.constant 0 : index
    %1 = vector.load %arg1[%c0_1, %c0_2] : memref<144x128xf32, #tpu.memory_space<vmem>>, vector<144x128xf32>
    %cst = arith.constant dense<0.000000e+00> : vector<32x128xf32>
    %2 = tpu.matmul %0, %1, %cst {dimension_numbers = #tpu.dot_dimension_numbers<[1], [0], [0], [1], [0, 0, 1, 1], [], []>} : vector<32x144xf32>, vector<144x128xf32>, vector<32x128xf32> -> vector<32x128xf32>
    %c0_3 = arith.constant 0 : index
    %c0_4 = arith.constant 0 : index
    %3 = vector.load %arg3[%c0_3, %c0_4] : memref<32x1xf32, #tpu.memory_space<vmem>>, vector<32x1xf32>
    %c0_5 = arith.constant 0 : index
    %c0_6 = arith.constant 0 : index
    %4 = vector.load %arg4[%c0_5, %c0_6] : memref<32x1xf32, #tpu.memory_space<vmem>>, vector<32x1xf32>
    %cst_7 = arith.constant dense<0.000000e+00> : vector<32xf32>
    %5 = vector.multi_reduction <add>, %2, %cst_7 [1] : vector<32x128xf32> to vector<32xf32>
    %6 = vector.shape_cast %5 : vector<32xf32> to vector<32x1xf32>
    %cst_8 = arith.constant 7.812500e-03 : f32
    %7 = vector.broadcast %cst_8 : f32 to vector<32x1xf32>
    %8 = arith.mulf %6, %7 : vector<32x1xf32>
    %9 = tpu.iota {dimensions = array<i32: 1>} : vector<32x128xi32>
    %c128_i32 = arith.constant 128 : i32
    %10 = vector.broadcast %c128_i32 : i32 to vector<32x128xi32>
    %11 = arith.cmpi slt, %9, %10 : vector<32x128xi32>
    %12 = vector.broadcast %8 : vector<32x1xf32> to vector<32x128xf32>
    %13 = arith.subf %2, %12 : vector<32x128xf32>
    %cst_9 = arith.constant 0.000000e+00 : f32
    %14 = vector.broadcast %cst_9 : f32 to vector<32x128xf32>
    %15 = arith.select %11, %13, %14 : vector<32x128xi1>, vector<32x128xf32>
    %16 = arith.mulf %15, %15 : vector<32x128xf32>
    %cst_10 = arith.constant dense<0.000000e+00> : vector<32xf32>
    %17 = vector.multi_reduction <add>, %16, %cst_10 [1] : vector<32x128xf32> to vector<32xf32>
    %18 = vector.shape_cast %17 : vector<32xf32> to vector<32x1xf32>
    %cst_11 = arith.constant 7.812500e-03 : f32
    %19 = vector.broadcast %cst_11 : f32 to vector<32x1xf32>
    %20 = arith.mulf %18, %19 : vector<32x1xf32>
    %cst_12 = arith.constant 9.99999974E-6 : f32
    %21 = vector.broadcast %cst_12 : f32 to vector<32x1xf32>
    %22 = arith.addf %20, %21 : vector<32x1xf32>
    %23 = math.rsqrt %22 : vector<32x1xf32>
    %24 = arith.mulf %3, %23 : vector<32x1xf32>
    %25 = arith.mulf %8, %24 : vector<32x1xf32>
    %26 = arith.subf %4, %25 : vector<32x1xf32>
    %27 = vector.broadcast %24 : vector<32x1xf32> to vector<32x128xf32>
    %28 = arith.mulf %2, %27 : vector<32x128xf32>
    %29 = vector.broadcast %26 : vector<32x1xf32> to vector<32x128xf32>
    %30 = arith.addf %28, %29 : vector<32x128xf32>
    %cst_13 = arith.constant 0.000000e+00 : f32
    %31 = vector.broadcast %cst_13 : f32 to vector<32x128xf32>
    %32 = arith.maximumf %30, %31 : vector<32x128xf32>
    %c0_14 = arith.constant 0 : index
    %c0_15 = arith.constant 0 : index
    %33 = vector.load %arg5[%c0_14, %c0_15] : memref<32x128xf32, #tpu.memory_space<vmem>>, vector<32x128xf32>
    tpu.vector_store %arg5[%c0_14, %c0_15], %32 {strides = array<i32>} : memref<32x128xf32, #tpu.memory_space<vmem>>, vector<32x128xf32>,
    return
  }
  func.func @transform_0(%arg0: i32) -> (i32, i32) {
    %c0_i32 = arith.constant 0 : i32
    %c0_i32_0 = arith.constant 0 : i32
    return %c0_i32, %arg0 : i32, i32
  }
  func.func @transform_1(%arg0: i32) -> (i32, i32) {
    %c0_i32 = arith.constant 0 : i32
    %c0_i32_0 = arith.constant 0 : i32
    %c0_i32_1 = arith.constant 0 : i32
    return %c0_i32, %c0_i32_0 : i32, i32
  }
  func.func @transform_2(%arg0: i32) -> (i32, i32) {
    %c0_i32 = arith.constant 0 : i32
    %c0_i32_0 = arith.constant 0 : i32
    %c0_i32_1 = arith.constant 0 : i32
    return %c0_i32, %c0_i32_0 : i32, i32
  }
  func.func @transform_3(%arg0: i32) -> (i32, i32) {
    %c0_i32 = arith.constant 0 : i32
    %c0_i32_0 = arith.constant 0 : i32
    %c0_i32_1 = arith.constant 0 : i32
    return %c0_i32, %c0_i32_0 : i32, i32
  }
  func.func @transform_4(%arg0: i32) -> (i32, i32) {
    %c0_i32 = arith.constant 0 : i32
    %c0_i32_0 = arith.constant 0 : i32
    %c0_i32_1 = arith.constant 0 : i32
    return %c0_i32, %c0_i32_0 : i32, i32
  }
}

module attributes {stable_mosaic.version = 11 : i64} {
  func.func @_conv_bn_kernel(%arg0: i32, %arg1: memref<288x128xf32, #tpu.memory_space<vmem>>, %arg2: memref<32x288xf32, #tpu.memory_space<vmem>>, %arg3: memref<32x1xf32, #tpu.memory_space<vmem>>, %arg4: memref<32x1xf32, #tpu.memory_space<vmem>>, %arg5: memref<32x128xf32, #tpu.memory_space<vmem>>, %arg6: memref<32x128xf32, #tpu.memory_space<vmem>>) attributes {dimension_semantics = [#tpu.dimension_semantics<arbitrary>], iteration_bounds = array<i64: 1>, scalar_prefetch = 0 : i64, scratch_operands = 0 : i64, tpu.core_type = #tpu.core_type<tc>, window_params = [{transform_indices = @transform_0, window_bounds = array<i64: 288, 128>}, {pipeline_mode = #tpu.pipeline_mode<synchronous>, transform_indices = @transform_1, window_bounds = array<i64: 32, 288>}, {pipeline_mode = #tpu.pipeline_mode<synchronous>, transform_indices = @transform_2, window_bounds = array<i64: 32, 1>}, {pipeline_mode = #tpu.pipeline_mode<synchronous>, transform_indices = @transform_3, window_bounds = array<i64: 32, 1>}, {pipeline_mode = #tpu.pipeline_mode<synchronous>, transform_indices = @transform_4, window_bounds = array<i64: 32, 128>}, {pipeline_mode = #tpu.pipeline_mode<synchronous>, transform_indices = @transform_5, window_bounds = array<i64: 32, 128>}]} {
    %c0 = arith.constant 0 : index
    %c0_0 = arith.constant 0 : index
    %0 = vector.load %arg2[%c0, %c0_0] : memref<32x288xf32, #tpu.memory_space<vmem>>, vector<32x288xf32>
    %c0_1 = arith.constant 0 : index
    %c0_2 = arith.constant 0 : index
    %1 = vector.load %arg1[%c0_1, %c0_2] : memref<288x128xf32, #tpu.memory_space<vmem>>, vector<288x128xf32>
    %cst = arith.constant dense<0.000000e+00> : vector<32x128xf32>
    %2 = tpu.matmul %0, %1, %cst {dimension_numbers = #tpu.dot_dimension_numbers<[1], [0], [0], [1], [0, 0, 1, 1], [], []>} : vector<32x288xf32>, vector<288x128xf32>, vector<32x128xf32> -> vector<32x128xf32>
    %c0_3 = arith.constant 0 : index
    %c0_4 = arith.constant 0 : index
    %3 = vector.load %arg3[%c0_3, %c0_4] : memref<32x1xf32, #tpu.memory_space<vmem>>, vector<32x1xf32>
    %c0_5 = arith.constant 0 : index
    %c0_6 = arith.constant 0 : index
    %4 = vector.load %arg4[%c0_5, %c0_6] : memref<32x1xf32, #tpu.memory_space<vmem>>, vector<32x1xf32>
    %c0_7 = arith.constant 0 : index
    %c0_8 = arith.constant 0 : index
    %5 = vector.load %arg5[%c0_7, %c0_8] : memref<32x128xf32, #tpu.memory_space<vmem>>, vector<32x128xf32>
    %cst_9 = arith.constant dense<0.000000e+00> : vector<32xf32>
    %6 = vector.multi_reduction <add>, %2, %cst_9 [1] : vector<32x128xf32> to vector<32xf32>
    %7 = vector.shape_cast %6 : vector<32xf32> to vector<32x1xf32>
    %cst_10 = arith.constant 7.812500e-03 : f32
    %8 = vector.broadcast %cst_10 : f32 to vector<32x1xf32>
    %9 = arith.mulf %7, %8 : vector<32x1xf32>
    %10 = tpu.iota {dimensions = array<i32: 1>} : vector<32x128xi32>
    %c128_i32 = arith.constant 128 : i32
    %11 = vector.broadcast %c128_i32 : i32 to vector<32x128xi32>
    %12 = arith.cmpi slt, %10, %11 : vector<32x128xi32>
    %13 = vector.broadcast %9 : vector<32x1xf32> to vector<32x128xf32>
    %14 = arith.subf %2, %13 : vector<32x128xf32>
    %cst_11 = arith.constant 0.000000e+00 : f32
    %15 = vector.broadcast %cst_11 : f32 to vector<32x128xf32>
    %16 = arith.select %12, %14, %15 : vector<32x128xi1>, vector<32x128xf32>
    %17 = arith.mulf %16, %16 : vector<32x128xf32>
    %cst_12 = arith.constant dense<0.000000e+00> : vector<32xf32>
    %18 = vector.multi_reduction <add>, %17, %cst_12 [1] : vector<32x128xf32> to vector<32xf32>
    %19 = vector.shape_cast %18 : vector<32xf32> to vector<32x1xf32>
    %cst_13 = arith.constant 7.812500e-03 : f32
    %20 = vector.broadcast %cst_13 : f32 to vector<32x1xf32>
    %21 = arith.mulf %19, %20 : vector<32x1xf32>
    %cst_14 = arith.constant 9.99999974E-6 : f32
    %22 = vector.broadcast %cst_14 : f32 to vector<32x1xf32>
    %23 = arith.addf %21, %22 : vector<32x1xf32>
    %24 = math.rsqrt %23 : vector<32x1xf32>
    %25 = arith.mulf %3, %24 : vector<32x1xf32>
    %26 = arith.mulf %9, %25 : vector<32x1xf32>
    %27 = arith.subf %4, %26 : vector<32x1xf32>
    %28 = vector.broadcast %25 : vector<32x1xf32> to vector<32x128xf32>
    %29 = arith.mulf %2, %28 : vector<32x128xf32>
    %30 = vector.broadcast %27 : vector<32x1xf32> to vector<32x128xf32>
    %31 = arith.addf %29, %30 : vector<32x128xf32>
    %32 = arith.addf %31, %5 : vector<32x128xf32>
    %cst_15 = arith.constant 0.000000e+00 : f32
    %33 = vector.broadcast %cst_15 : f32 to vector<32x128xf32>
    %34 = arith.maximumf %32, %33 : vector<32x128xf32>
    %c0_16 = arith.constant 0 : index
    %c0_17 = arith.constant 0 : index
    %35 = vector.load %arg6[%c0_16, %c0_17] : memref<32x128xf32, #tpu.memory_space<vmem>>, vector<32x128xf32>
    tpu.vector_store %arg6[%c0_16, %c0_17], %34 {strides = array<i32>} : memref<32x128xf32, #tpu.memory_space<vmem>>, vector<32x128xf32>,
    return
  }
  func.func @transform_0(%arg0: i32) -> (i32, i32) {
    %c0_i32 = arith.constant 0 : i32
    %c0_i32_0 = arith.constant 0 : i32
    return %c0_i32, %arg0 : i32, i32
  }
  func.func @transform_1(%arg0: i32) -> (i32, i32) {
    %c0_i32 = arith.constant 0 : i32
    %c0_i32_0 = arith.constant 0 : i32
    %c0_i32_1 = arith.constant 0 : i32
    return %c0_i32, %c0_i32_0 : i32, i32
  }
  func.func @transform_2(%arg0: i32) -> (i32, i32) {
    %c0_i32 = arith.constant 0 : i32
    %c0_i32_0 = arith.constant 0 : i32
    %c0_i32_1 = arith.constant 0 : i32
    return %c0_i32, %c0_i32_0 : i32, i32
  }
  func.func @transform_3(%arg0: i32) -> (i32, i32) {
    %c0_i32 = arith.constant 0 : i32
    %c0_i32_0 = arith.constant 0 : i32
    %c0_i32_1 = arith.constant 0 : i32
    return %c0_i32, %c0_i32_0 : i32, i32
  }
  func.func @transform_4(%arg0: i32) -> (i32, i32) {
    %c0_i32 = arith.constant 0 : i32
    %c0_i32_0 = arith.constant 0 : i32
    %c0_i32_1 = arith.constant 0 : i32
    return %c0_i32, %c0_i32_0 : i32, i32
  }
  func.func @transform_5(%arg0: i32) -> (i32, i32) {
    %c0_i32 = arith.constant 0 : i32
    %c0_i32_0 = arith.constant 0 : i32
    %c0_i32_1 = arith.constant 0 : i32
    return %c0_i32, %c0_i32_0 : i32, i32
  }
}

module attributes {stable_mosaic.version = 11 : i64} {
  func.func @_conv_bn_kernel(%arg0: i32, %arg1: memref<16x128xf32, #tpu.memory_space<vmem>>, %arg2: memref<32x16xf32, #tpu.memory_space<vmem>>, %arg3: memref<32x1xf32, #tpu.memory_space<vmem>>, %arg4: memref<32x1xf32, #tpu.memory_space<vmem>>, %arg5: memref<32x128xf32, #tpu.memory_space<vmem>>) attributes {dimension_semantics = [#tpu.dimension_semantics<arbitrary>], iteration_bounds = array<i64: 1>, scalar_prefetch = 0 : i64, scratch_operands = 0 : i64, tpu.core_type = #tpu.core_type<tc>, window_params = [{transform_indices = @transform_0, window_bounds = array<i64: 16, 128>}, {pipeline_mode = #tpu.pipeline_mode<synchronous>, transform_indices = @transform_1, window_bounds = array<i64: 32, 16>}, {pipeline_mode = #tpu.pipeline_mode<synchronous>, transform_indices = @transform_2, window_bounds = array<i64: 32, 1>}, {pipeline_mode = #tpu.pipeline_mode<synchronous>, transform_indices = @transform_3, window_bounds = array<i64: 32, 1>}, {pipeline_mode = #tpu.pipeline_mode<synchronous>, transform_indices = @transform_4, window_bounds = array<i64: 32, 128>}]} {
    %c0 = arith.constant 0 : index
    %c0_0 = arith.constant 0 : index
    %0 = vector.load %arg2[%c0, %c0_0] : memref<32x16xf32, #tpu.memory_space<vmem>>, vector<32x16xf32>
    %c0_1 = arith.constant 0 : index
    %c0_2 = arith.constant 0 : index
    %1 = vector.load %arg1[%c0_1, %c0_2] : memref<16x128xf32, #tpu.memory_space<vmem>>, vector<16x128xf32>
    %cst = arith.constant dense<0.000000e+00> : vector<32x128xf32>
    %2 = tpu.matmul %0, %1, %cst {dimension_numbers = #tpu.dot_dimension_numbers<[1], [0], [0], [1], [0, 0, 1, 1], [], []>} : vector<32x16xf32>, vector<16x128xf32>, vector<32x128xf32> -> vector<32x128xf32>
    %c0_3 = arith.constant 0 : index
    %c0_4 = arith.constant 0 : index
    %3 = vector.load %arg3[%c0_3, %c0_4] : memref<32x1xf32, #tpu.memory_space<vmem>>, vector<32x1xf32>
    %c0_5 = arith.constant 0 : index
    %c0_6 = arith.constant 0 : index
    %4 = vector.load %arg4[%c0_5, %c0_6] : memref<32x1xf32, #tpu.memory_space<vmem>>, vector<32x1xf32>
    %cst_7 = arith.constant dense<0.000000e+00> : vector<32xf32>
    %5 = vector.multi_reduction <add>, %2, %cst_7 [1] : vector<32x128xf32> to vector<32xf32>
    %6 = vector.shape_cast %5 : vector<32xf32> to vector<32x1xf32>
    %cst_8 = arith.constant 7.812500e-03 : f32
    %7 = vector.broadcast %cst_8 : f32 to vector<32x1xf32>
    %8 = arith.mulf %6, %7 : vector<32x1xf32>
    %9 = tpu.iota {dimensions = array<i32: 1>} : vector<32x128xi32>
    %c128_i32 = arith.constant 128 : i32
    %10 = vector.broadcast %c128_i32 : i32 to vector<32x128xi32>
    %11 = arith.cmpi slt, %9, %10 : vector<32x128xi32>
    %12 = vector.broadcast %8 : vector<32x1xf32> to vector<32x128xf32>
    %13 = arith.subf %2, %12 : vector<32x128xf32>
    %cst_9 = arith.constant 0.000000e+00 : f32
    %14 = vector.broadcast %cst_9 : f32 to vector<32x128xf32>
    %15 = arith.select %11, %13, %14 : vector<32x128xi1>, vector<32x128xf32>
    %16 = arith.mulf %15, %15 : vector<32x128xf32>
    %cst_10 = arith.constant dense<0.000000e+00> : vector<32xf32>
    %17 = vector.multi_reduction <add>, %16, %cst_10 [1] : vector<32x128xf32> to vector<32xf32>
    %18 = vector.shape_cast %17 : vector<32xf32> to vector<32x1xf32>
    %cst_11 = arith.constant 7.812500e-03 : f32
    %19 = vector.broadcast %cst_11 : f32 to vector<32x1xf32>
    %20 = arith.mulf %18, %19 : vector<32x1xf32>
    %cst_12 = arith.constant 9.99999974E-6 : f32
    %21 = vector.broadcast %cst_12 : f32 to vector<32x1xf32>
    %22 = arith.addf %20, %21 : vector<32x1xf32>
    %23 = math.rsqrt %22 : vector<32x1xf32>
    %24 = arith.mulf %3, %23 : vector<32x1xf32>
    %25 = arith.mulf %8, %24 : vector<32x1xf32>
    %26 = arith.subf %4, %25 : vector<32x1xf32>
    %27 = vector.broadcast %24 : vector<32x1xf32> to vector<32x128xf32>
    %28 = arith.mulf %2, %27 : vector<32x128xf32>
    %29 = vector.broadcast %26 : vector<32x1xf32> to vector<32x128xf32>
    %30 = arith.addf %28, %29 : vector<32x128xf32>
    %c0_13 = arith.constant 0 : index
    %c0_14 = arith.constant 0 : index
    %31 = vector.load %arg5[%c0_13, %c0_14] : memref<32x128xf32, #tpu.memory_space<vmem>>, vector<32x128xf32>
    tpu.vector_store %arg5[%c0_13, %c0_14], %30 {strides = array<i32>} : memref<32x128xf32, #tpu.memory_space<vmem>>, vector<32x128xf32>,
    return
  }
  func.func @transform_0(%arg0: i32) -> (i32, i32) {
    %c0_i32 = arith.constant 0 : i32
    %c0_i32_0 = arith.constant 0 : i32
    return %c0_i32, %arg0 : i32, i32
  }
  func.func @transform_1(%arg0: i32) -> (i32, i32) {
    %c0_i32 = arith.constant 0 : i32
    %c0_i32_0 = arith.constant 0 : i32
    %c0_i32_1 = arith.constant 0 : i32
    return %c0_i32, %c0_i32_0 : i32, i32
  }
  func.func @transform_2(%arg0: i32) -> (i32, i32) {
    %c0_i32 = arith.constant 0 : i32
    %c0_i32_0 = arith.constant 0 : i32
    %c0_i32_1 = arith.constant 0 : i32
    return %c0_i32, %c0_i32_0 : i32, i32
  }
  func.func @transform_3(%arg0: i32) -> (i32, i32) {
    %c0_i32 = arith.constant 0 : i32
    %c0_i32_0 = arith.constant 0 : i32
    %c0_i32_1 = arith.constant 0 : i32
    return %c0_i32, %c0_i32_0 : i32, i32
  }
  func.func @transform_4(%arg0: i32) -> (i32, i32) {
    %c0_i32 = arith.constant 0 : i32
    %c0_i32_0 = arith.constant 0 : i32
    %c0_i32_1 = arith.constant 0 : i32
    return %c0_i32, %c0_i32_0 : i32, i32
  }
}

module attributes {stable_mosaic.version = 11 : i64} {
  func.func @_conv_bn_kernel(%arg0: i32, %arg1: memref<288x128xf32, #tpu.memory_space<vmem>>, %arg2: memref<64x288xf32, #tpu.memory_space<vmem>>, %arg3: memref<64x1xf32, #tpu.memory_space<vmem>>, %arg4: memref<64x1xf32, #tpu.memory_space<vmem>>, %arg5: memref<64x128xf32, #tpu.memory_space<vmem>>) attributes {dimension_semantics = [#tpu.dimension_semantics<arbitrary>], iteration_bounds = array<i64: 1>, scalar_prefetch = 0 : i64, scratch_operands = 0 : i64, tpu.core_type = #tpu.core_type<tc>, window_params = [{transform_indices = @transform_0, window_bounds = array<i64: 288, 128>}, {pipeline_mode = #tpu.pipeline_mode<synchronous>, transform_indices = @transform_1, window_bounds = array<i64: 64, 288>}, {pipeline_mode = #tpu.pipeline_mode<synchronous>, transform_indices = @transform_2, window_bounds = array<i64: 64, 1>}, {pipeline_mode = #tpu.pipeline_mode<synchronous>, transform_indices = @transform_3, window_bounds = array<i64: 64, 1>}, {pipeline_mode = #tpu.pipeline_mode<synchronous>, transform_indices = @transform_4, window_bounds = array<i64: 64, 128>}]} {
    %c0 = arith.constant 0 : index
    %c0_0 = arith.constant 0 : index
    %0 = vector.load %arg2[%c0, %c0_0] : memref<64x288xf32, #tpu.memory_space<vmem>>, vector<64x288xf32>
    %c0_1 = arith.constant 0 : index
    %c0_2 = arith.constant 0 : index
    %1 = vector.load %arg1[%c0_1, %c0_2] : memref<288x128xf32, #tpu.memory_space<vmem>>, vector<288x128xf32>
    %cst = arith.constant dense<0.000000e+00> : vector<64x128xf32>
    %2 = tpu.matmul %0, %1, %cst {dimension_numbers = #tpu.dot_dimension_numbers<[1], [0], [0], [1], [0, 0, 1, 1], [], []>} : vector<64x288xf32>, vector<288x128xf32>, vector<64x128xf32> -> vector<64x128xf32>
    %c0_3 = arith.constant 0 : index
    %c0_4 = arith.constant 0 : index
    %3 = vector.load %arg3[%c0_3, %c0_4] : memref<64x1xf32, #tpu.memory_space<vmem>>, vector<64x1xf32>
    %c0_5 = arith.constant 0 : index
    %c0_6 = arith.constant 0 : index
    %4 = vector.load %arg4[%c0_5, %c0_6] : memref<64x1xf32, #tpu.memory_space<vmem>>, vector<64x1xf32>
    %cst_7 = arith.constant dense<0.000000e+00> : vector<64xf32>
    %5 = vector.multi_reduction <add>, %2, %cst_7 [1] : vector<64x128xf32> to vector<64xf32>
    %6 = vector.shape_cast %5 : vector<64xf32> to vector<64x1xf32>
    %cst_8 = arith.constant 3.125000e-02 : f32
    %7 = vector.broadcast %cst_8 : f32 to vector<64x1xf32>
    %8 = arith.mulf %6, %7 : vector<64x1xf32>
    %9 = tpu.iota {dimensions = array<i32: 1>} : vector<64x128xi32>
    %c32_i32 = arith.constant 32 : i32
    %10 = vector.broadcast %c32_i32 : i32 to vector<64x128xi32>
    %11 = arith.cmpi slt, %9, %10 : vector<64x128xi32>
    %12 = vector.broadcast %8 : vector<64x1xf32> to vector<64x128xf32>
    %13 = arith.subf %2, %12 : vector<64x128xf32>
    %cst_9 = arith.constant 0.000000e+00 : f32
    %14 = vector.broadcast %cst_9 : f32 to vector<64x128xf32>
    %15 = arith.select %11, %13, %14 : vector<64x128xi1>, vector<64x128xf32>
    %16 = arith.mulf %15, %15 : vector<64x128xf32>
    %cst_10 = arith.constant dense<0.000000e+00> : vector<64xf32>
    %17 = vector.multi_reduction <add>, %16, %cst_10 [1] : vector<64x128xf32> to vector<64xf32>
    %18 = vector.shape_cast %17 : vector<64xf32> to vector<64x1xf32>
    %cst_11 = arith.constant 3.125000e-02 : f32
    %19 = vector.broadcast %cst_11 : f32 to vector<64x1xf32>
    %20 = arith.mulf %18, %19 : vector<64x1xf32>
    %cst_12 = arith.constant 9.99999974E-6 : f32
    %21 = vector.broadcast %cst_12 : f32 to vector<64x1xf32>
    %22 = arith.addf %20, %21 : vector<64x1xf32>
    %23 = math.rsqrt %22 : vector<64x1xf32>
    %24 = arith.mulf %3, %23 : vector<64x1xf32>
    %25 = arith.mulf %8, %24 : vector<64x1xf32>
    %26 = arith.subf %4, %25 : vector<64x1xf32>
    %27 = vector.broadcast %24 : vector<64x1xf32> to vector<64x128xf32>
    %28 = arith.mulf %2, %27 : vector<64x128xf32>
    %29 = vector.broadcast %26 : vector<64x1xf32> to vector<64x128xf32>
    %30 = arith.addf %28, %29 : vector<64x128xf32>
    %cst_13 = arith.constant 0.000000e+00 : f32
    %31 = vector.broadcast %cst_13 : f32 to vector<64x128xf32>
    %32 = arith.maximumf %30, %31 : vector<64x128xf32>
    %c0_14 = arith.constant 0 : index
    %c0_15 = arith.constant 0 : index
    %33 = vector.load %arg5[%c0_14, %c0_15] : memref<64x128xf32, #tpu.memory_space<vmem>>, vector<64x128xf32>
    tpu.vector_store %arg5[%c0_14, %c0_15], %32 {strides = array<i32>} : memref<64x128xf32, #tpu.memory_space<vmem>>, vector<64x128xf32>,
    return
  }
  func.func @transform_0(%arg0: i32) -> (i32, i32) {
    %c0_i32 = arith.constant 0 : i32
    %c0_i32_0 = arith.constant 0 : i32
    return %c0_i32, %arg0 : i32, i32
  }
  func.func @transform_1(%arg0: i32) -> (i32, i32) {
    %c0_i32 = arith.constant 0 : i32
    %c0_i32_0 = arith.constant 0 : i32
    %c0_i32_1 = arith.constant 0 : i32
    return %c0_i32, %c0_i32_0 : i32, i32
  }
  func.func @transform_2(%arg0: i32) -> (i32, i32) {
    %c0_i32 = arith.constant 0 : i32
    %c0_i32_0 = arith.constant 0 : i32
    %c0_i32_1 = arith.constant 0 : i32
    return %c0_i32, %c0_i32_0 : i32, i32
  }
  func.func @transform_3(%arg0: i32) -> (i32, i32) {
    %c0_i32 = arith.constant 0 : i32
    %c0_i32_0 = arith.constant 0 : i32
    %c0_i32_1 = arith.constant 0 : i32
    return %c0_i32, %c0_i32_0 : i32, i32
  }
  func.func @transform_4(%arg0: i32) -> (i32, i32) {
    %c0_i32 = arith.constant 0 : i32
    %c0_i32_0 = arith.constant 0 : i32
    %c0_i32_1 = arith.constant 0 : i32
    return %c0_i32, %c0_i32_0 : i32, i32
  }
}

module attributes {stable_mosaic.version = 11 : i64} {
  func.func @_conv_bn_kernel(%arg0: i32, %arg1: memref<576x128xf32, #tpu.memory_space<vmem>>, %arg2: memref<64x576xf32, #tpu.memory_space<vmem>>, %arg3: memref<64x1xf32, #tpu.memory_space<vmem>>, %arg4: memref<64x1xf32, #tpu.memory_space<vmem>>, %arg5: memref<64x128xf32, #tpu.memory_space<vmem>>, %arg6: memref<64x128xf32, #tpu.memory_space<vmem>>) attributes {dimension_semantics = [#tpu.dimension_semantics<arbitrary>], iteration_bounds = array<i64: 1>, scalar_prefetch = 0 : i64, scratch_operands = 0 : i64, tpu.core_type = #tpu.core_type<tc>, window_params = [{transform_indices = @transform_0, window_bounds = array<i64: 576, 128>}, {pipeline_mode = #tpu.pipeline_mode<synchronous>, transform_indices = @transform_1, window_bounds = array<i64: 64, 576>}, {pipeline_mode = #tpu.pipeline_mode<synchronous>, transform_indices = @transform_2, window_bounds = array<i64: 64, 1>}, {pipeline_mode = #tpu.pipeline_mode<synchronous>, transform_indices = @transform_3, window_bounds = array<i64: 64, 1>}, {pipeline_mode = #tpu.pipeline_mode<synchronous>, transform_indices = @transform_4, window_bounds = array<i64: 64, 128>}, {pipeline_mode = #tpu.pipeline_mode<synchronous>, transform_indices = @transform_5, window_bounds = array<i64: 64, 128>}]} {
    %c0 = arith.constant 0 : index
    %c0_0 = arith.constant 0 : index
    %0 = vector.load %arg2[%c0, %c0_0] : memref<64x576xf32, #tpu.memory_space<vmem>>, vector<64x576xf32>
    %c0_1 = arith.constant 0 : index
    %c0_2 = arith.constant 0 : index
    %1 = vector.load %arg1[%c0_1, %c0_2] : memref<576x128xf32, #tpu.memory_space<vmem>>, vector<576x128xf32>
    %cst = arith.constant dense<0.000000e+00> : vector<64x128xf32>
    %2 = tpu.matmul %0, %1, %cst {dimension_numbers = #tpu.dot_dimension_numbers<[1], [0], [0], [1], [0, 0, 1, 1], [], []>} : vector<64x576xf32>, vector<576x128xf32>, vector<64x128xf32> -> vector<64x128xf32>
    %c0_3 = arith.constant 0 : index
    %c0_4 = arith.constant 0 : index
    %3 = vector.load %arg3[%c0_3, %c0_4] : memref<64x1xf32, #tpu.memory_space<vmem>>, vector<64x1xf32>
    %c0_5 = arith.constant 0 : index
    %c0_6 = arith.constant 0 : index
    %4 = vector.load %arg4[%c0_5, %c0_6] : memref<64x1xf32, #tpu.memory_space<vmem>>, vector<64x1xf32>
    %c0_7 = arith.constant 0 : index
    %c0_8 = arith.constant 0 : index
    %5 = vector.load %arg5[%c0_7, %c0_8] : memref<64x128xf32, #tpu.memory_space<vmem>>, vector<64x128xf32>
    %cst_9 = arith.constant dense<0.000000e+00> : vector<64xf32>
    %6 = vector.multi_reduction <add>, %2, %cst_9 [1] : vector<64x128xf32> to vector<64xf32>
    %7 = vector.shape_cast %6 : vector<64xf32> to vector<64x1xf32>
    %cst_10 = arith.constant 3.125000e-02 : f32
    %8 = vector.broadcast %cst_10 : f32 to vector<64x1xf32>
    %9 = arith.mulf %7, %8 : vector<64x1xf32>
    %10 = tpu.iota {dimensions = array<i32: 1>} : vector<64x128xi32>
    %c32_i32 = arith.constant 32 : i32
    %11 = vector.broadcast %c32_i32 : i32 to vector<64x128xi32>
    %12 = arith.cmpi slt, %10, %11 : vector<64x128xi32>
    %13 = vector.broadcast %9 : vector<64x1xf32> to vector<64x128xf32>
    %14 = arith.subf %2, %13 : vector<64x128xf32>
    %cst_11 = arith.constant 0.000000e+00 : f32
    %15 = vector.broadcast %cst_11 : f32 to vector<64x128xf32>
    %16 = arith.select %12, %14, %15 : vector<64x128xi1>, vector<64x128xf32>
    %17 = arith.mulf %16, %16 : vector<64x128xf32>
    %cst_12 = arith.constant dense<0.000000e+00> : vector<64xf32>
    %18 = vector.multi_reduction <add>, %17, %cst_12 [1] : vector<64x128xf32> to vector<64xf32>
    %19 = vector.shape_cast %18 : vector<64xf32> to vector<64x1xf32>
    %cst_13 = arith.constant 3.125000e-02 : f32
    %20 = vector.broadcast %cst_13 : f32 to vector<64x1xf32>
    %21 = arith.mulf %19, %20 : vector<64x1xf32>
    %cst_14 = arith.constant 9.99999974E-6 : f32
    %22 = vector.broadcast %cst_14 : f32 to vector<64x1xf32>
    %23 = arith.addf %21, %22 : vector<64x1xf32>
    %24 = math.rsqrt %23 : vector<64x1xf32>
    %25 = arith.mulf %3, %24 : vector<64x1xf32>
    %26 = arith.mulf %9, %25 : vector<64x1xf32>
    %27 = arith.subf %4, %26 : vector<64x1xf32>
    %28 = vector.broadcast %25 : vector<64x1xf32> to vector<64x128xf32>
    %29 = arith.mulf %2, %28 : vector<64x128xf32>
    %30 = vector.broadcast %27 : vector<64x1xf32> to vector<64x128xf32>
    %31 = arith.addf %29, %30 : vector<64x128xf32>
    %32 = arith.addf %31, %5 : vector<64x128xf32>
    %cst_15 = arith.constant 0.000000e+00 : f32
    %33 = vector.broadcast %cst_15 : f32 to vector<64x128xf32>
    %34 = arith.maximumf %32, %33 : vector<64x128xf32>
    %c0_16 = arith.constant 0 : index
    %c0_17 = arith.constant 0 : index
    %35 = vector.load %arg6[%c0_16, %c0_17] : memref<64x128xf32, #tpu.memory_space<vmem>>, vector<64x128xf32>
    tpu.vector_store %arg6[%c0_16, %c0_17], %34 {strides = array<i32>} : memref<64x128xf32, #tpu.memory_space<vmem>>, vector<64x128xf32>,
    return
  }
  func.func @transform_0(%arg0: i32) -> (i32, i32) {
    %c0_i32 = arith.constant 0 : i32
    %c0_i32_0 = arith.constant 0 : i32
    return %c0_i32, %arg0 : i32, i32
  }
  func.func @transform_1(%arg0: i32) -> (i32, i32) {
    %c0_i32 = arith.constant 0 : i32
    %c0_i32_0 = arith.constant 0 : i32
    %c0_i32_1 = arith.constant 0 : i32
    return %c0_i32, %c0_i32_0 : i32, i32
  }
  func.func @transform_2(%arg0: i32) -> (i32, i32) {
    %c0_i32 = arith.constant 0 : i32
    %c0_i32_0 = arith.constant 0 : i32
    %c0_i32_1 = arith.constant 0 : i32
    return %c0_i32, %c0_i32_0 : i32, i32
  }
  func.func @transform_3(%arg0: i32) -> (i32, i32) {
    %c0_i32 = arith.constant 0 : i32
    %c0_i32_0 = arith.constant 0 : i32
    %c0_i32_1 = arith.constant 0 : i32
    return %c0_i32, %c0_i32_0 : i32, i32
  }
  func.func @transform_4(%arg0: i32) -> (i32, i32) {
    %c0_i32 = arith.constant 0 : i32
    %c0_i32_0 = arith.constant 0 : i32
    %c0_i32_1 = arith.constant 0 : i32
    return %c0_i32, %c0_i32_0 : i32, i32
  }
  func.func @transform_5(%arg0: i32) -> (i32, i32) {
    %c0_i32 = arith.constant 0 : i32
    %c0_i32_0 = arith.constant 0 : i32
    %c0_i32_1 = arith.constant 0 : i32
    return %c0_i32, %c0_i32_0 : i32, i32
  }
}

module attributes {stable_mosaic.version = 11 : i64} {
  func.func @_conv_bn_kernel(%arg0: i32, %arg1: memref<32x128xf32, #tpu.memory_space<vmem>>, %arg2: memref<64x32xf32, #tpu.memory_space<vmem>>, %arg3: memref<64x1xf32, #tpu.memory_space<vmem>>, %arg4: memref<64x1xf32, #tpu.memory_space<vmem>>, %arg5: memref<64x128xf32, #tpu.memory_space<vmem>>) attributes {dimension_semantics = [#tpu.dimension_semantics<arbitrary>], iteration_bounds = array<i64: 1>, scalar_prefetch = 0 : i64, scratch_operands = 0 : i64, tpu.core_type = #tpu.core_type<tc>, window_params = [{transform_indices = @transform_0, window_bounds = array<i64: 32, 128>}, {pipeline_mode = #tpu.pipeline_mode<synchronous>, transform_indices = @transform_1, window_bounds = array<i64: 64, 32>}, {pipeline_mode = #tpu.pipeline_mode<synchronous>, transform_indices = @transform_2, window_bounds = array<i64: 64, 1>}, {pipeline_mode = #tpu.pipeline_mode<synchronous>, transform_indices = @transform_3, window_bounds = array<i64: 64, 1>}, {pipeline_mode = #tpu.pipeline_mode<synchronous>, transform_indices = @transform_4, window_bounds = array<i64: 64, 128>}]} {
    %c0 = arith.constant 0 : index
    %c0_0 = arith.constant 0 : index
    %0 = vector.load %arg2[%c0, %c0_0] : memref<64x32xf32, #tpu.memory_space<vmem>>, vector<64x32xf32>
    %c0_1 = arith.constant 0 : index
    %c0_2 = arith.constant 0 : index
    %1 = vector.load %arg1[%c0_1, %c0_2] : memref<32x128xf32, #tpu.memory_space<vmem>>, vector<32x128xf32>
    %cst = arith.constant dense<0.000000e+00> : vector<64x128xf32>
    %2 = tpu.matmul %0, %1, %cst {dimension_numbers = #tpu.dot_dimension_numbers<[1], [0], [0], [1], [0, 0, 1, 1], [], []>} : vector<64x32xf32>, vector<32x128xf32>, vector<64x128xf32> -> vector<64x128xf32>
    %c0_3 = arith.constant 0 : index
    %c0_4 = arith.constant 0 : index
    %3 = vector.load %arg3[%c0_3, %c0_4] : memref<64x1xf32, #tpu.memory_space<vmem>>, vector<64x1xf32>
    %c0_5 = arith.constant 0 : index
    %c0_6 = arith.constant 0 : index
    %4 = vector.load %arg4[%c0_5, %c0_6] : memref<64x1xf32, #tpu.memory_space<vmem>>, vector<64x1xf32>
    %cst_7 = arith.constant dense<0.000000e+00> : vector<64xf32>
    %5 = vector.multi_reduction <add>, %2, %cst_7 [1] : vector<64x128xf32> to vector<64xf32>
    %6 = vector.shape_cast %5 : vector<64xf32> to vector<64x1xf32>
    %cst_8 = arith.constant 3.125000e-02 : f32
    %7 = vector.broadcast %cst_8 : f32 to vector<64x1xf32>
    %8 = arith.mulf %6, %7 : vector<64x1xf32>
    %9 = tpu.iota {dimensions = array<i32: 1>} : vector<64x128xi32>
    %c32_i32 = arith.constant 32 : i32
    %10 = vector.broadcast %c32_i32 : i32 to vector<64x128xi32>
    %11 = arith.cmpi slt, %9, %10 : vector<64x128xi32>
    %12 = vector.broadcast %8 : vector<64x1xf32> to vector<64x128xf32>
    %13 = arith.subf %2, %12 : vector<64x128xf32>
    %cst_9 = arith.constant 0.000000e+00 : f32
    %14 = vector.broadcast %cst_9 : f32 to vector<64x128xf32>
    %15 = arith.select %11, %13, %14 : vector<64x128xi1>, vector<64x128xf32>
    %16 = arith.mulf %15, %15 : vector<64x128xf32>
    %cst_10 = arith.constant dense<0.000000e+00> : vector<64xf32>
    %17 = vector.multi_reduction <add>, %16, %cst_10 [1] : vector<64x128xf32> to vector<64xf32>
    %18 = vector.shape_cast %17 : vector<64xf32> to vector<64x1xf32>
    %cst_11 = arith.constant 3.125000e-02 : f32
    %19 = vector.broadcast %cst_11 : f32 to vector<64x1xf32>
    %20 = arith.mulf %18, %19 : vector<64x1xf32>
    %cst_12 = arith.constant 9.99999974E-6 : f32
    %21 = vector.broadcast %cst_12 : f32 to vector<64x1xf32>
    %22 = arith.addf %20, %21 : vector<64x1xf32>
    %23 = math.rsqrt %22 : vector<64x1xf32>
    %24 = arith.mulf %3, %23 : vector<64x1xf32>
    %25 = arith.mulf %8, %24 : vector<64x1xf32>
    %26 = arith.subf %4, %25 : vector<64x1xf32>
    %27 = vector.broadcast %24 : vector<64x1xf32> to vector<64x128xf32>
    %28 = arith.mulf %2, %27 : vector<64x128xf32>
    %29 = vector.broadcast %26 : vector<64x1xf32> to vector<64x128xf32>
    %30 = arith.addf %28, %29 : vector<64x128xf32>
    %c0_13 = arith.constant 0 : index
    %c0_14 = arith.constant 0 : index
    %31 = vector.load %arg5[%c0_13, %c0_14] : memref<64x128xf32, #tpu.memory_space<vmem>>, vector<64x128xf32>
    tpu.vector_store %arg5[%c0_13, %c0_14], %30 {strides = array<i32>} : memref<64x128xf32, #tpu.memory_space<vmem>>, vector<64x128xf32>,
    return
  }
  func.func @transform_0(%arg0: i32) -> (i32, i32) {
    %c0_i32 = arith.constant 0 : i32
    %c0_i32_0 = arith.constant 0 : i32
    return %c0_i32, %arg0 : i32, i32
  }
  func.func @transform_1(%arg0: i32) -> (i32, i32) {
    %c0_i32 = arith.constant 0 : i32
    %c0_i32_0 = arith.constant 0 : i32
    %c0_i32_1 = arith.constant 0 : i32
    return %c0_i32, %c0_i32_0 : i32, i32
  }
  func.func @transform_2(%arg0: i32) -> (i32, i32) {
    %c0_i32 = arith.constant 0 : i32
    %c0_i32_0 = arith.constant 0 : i32
    %c0_i32_1 = arith.constant 0 : i32
    return %c0_i32, %c0_i32_0 : i32, i32
  }
  func.func @transform_3(%arg0: i32) -> (i32, i32) {
    %c0_i32 = arith.constant 0 : i32
    %c0_i32_0 = arith.constant 0 : i32
    %c0_i32_1 = arith.constant 0 : i32
    return %c0_i32, %c0_i32_0 : i32, i32
  }
  func.func @transform_4(%arg0: i32) -> (i32, i32) {
    %c0_i32 = arith.constant 0 : i32
    %c0_i32_0 = arith.constant 0 : i32
    %c0_i32_1 = arith.constant 0 : i32
    return %c0_i32, %c0_i32_0 : i32, i32
  }
}

module attributes {stable_mosaic.version = 11 : i64} {
  func.func @_pool_fc_kernel(%arg0: memref<64x2x16xf32, #tpu.memory_space<vmem>>, %arg1: memref<10x64xf32, #tpu.memory_space<vmem>>, %arg2: memref<10x1xf32, #tpu.memory_space<vmem>>, %arg3: memref<10x2xf32, #tpu.memory_space<vmem>>) attributes {dimension_semantics = [], scalar_prefetch = 0 : i64, scratch_operands = 0 : i64, tpu.core_type = #tpu.core_type<tc>} {
    %c0 = arith.constant 0 : index
    %c0_0 = arith.constant 0 : index
    %c0_1 = arith.constant 0 : index
    %0 = vector.load %arg0[%c0, %c0_0, %c0_1] : memref<64x2x16xf32, #tpu.memory_space<vmem>>, vector<64x2x16xf32>
    %cst = arith.constant dense<0.000000e+00> : vector<64x2xf32>
    %1 = vector.multi_reduction <add>, %0, %cst [2] : vector<64x2x16xf32> to vector<64x2xf32>
    %cst_2 = arith.constant 1.600000e+01 : f32
    %2 = vector.broadcast %cst_2 : f32 to vector<64x2xf32>
    %3 = arith.divf %1, %2 : vector<64x2xf32>
    %c0_3 = arith.constant 0 : index
    %c0_4 = arith.constant 0 : index
    %4 = vector.load %arg1[%c0_3, %c0_4] : memref<10x64xf32, #tpu.memory_space<vmem>>, vector<10x64xf32>
    %cst_5 = arith.constant dense<0.000000e+00> : vector<10x2xf32>
    %5 = tpu.matmul %4, %3, %cst_5 {dimension_numbers = #tpu.dot_dimension_numbers<[1], [0], [0], [1], [0, 0, 1, 1], [], []>} : vector<10x64xf32>, vector<64x2xf32>, vector<10x2xf32> -> vector<10x2xf32>
    %c0_6 = arith.constant 0 : index
    %c0_7 = arith.constant 0 : index
    %6 = vector.load %arg2[%c0_6, %c0_7] : memref<10x1xf32, #tpu.memory_space<vmem>>, vector<10x1xf32>
    %7 = vector.broadcast %6 : vector<10x1xf32> to vector<10x2xf32>
    %8 = arith.addf %5, %7 : vector<10x2xf32>
    %c0_8 = arith.constant 0 : index
    %c0_9 = arith.constant 0 : index
    %9 = vector.load %arg3[%c0_8, %c0_9] : memref<10x2xf32, #tpu.memory_space<vmem>>, vector<10x2xf32>
    tpu.vector_store %arg3[%c0_8, %c0_9], %8 {strides = array<i32>} : memref<10x2xf32, #tpu.memory_space<vmem>>, vector<10x2xf32>,
    return
  }
}

</mosaic_0001>

<bundles_post_ra>
// kernel: _lambda_.10
= control target key start
LH: loop header
LB: loop body
LE: loop exit
PB: predicated region body
PF: predicated region fallthrough
CT: control target
= control target key end

     0   :  { %v351_v3 = vmov 0.0   ;;  %vm35_vm0 = vcmask 261120   ;;  %s508_s0 = inlined_call_operand.vmem [shape: f32[32,512], index: 0, kind: input, shape index: {}]   ;;  %s509_s1 = inlined_call_operand.vmem [shape: f32[16,32], index: 1, kind: input, shape index: {}]   ;;  %s510_s2 = inlined_call_operand.vmem [shape: f32[16,1], index: 2, kind: input, shape index: {}]   ;;  %s511_s3 = inlined_call_operand.vmem [shape: f32[16,1], index: 3, kind: input, shape index: {}]   ;;  %s512_s4 = inlined_call_operand.vmem [shape: f32[16,512], index: 4, kind: output, shape index: {}]  }
   0x1   :  { %v20_v0 = vld [vmem:[%s508_s0 + $0x8] sm:$0xff]  ;;  %v19_v2 = vld [vmem:[%s508_s0] sm:$0xff]  ;;  %106 = vmatprep.mubr.f32.mxu0 %v351_v3  ;;  %183 = vmatprep.mubr.f32.mxu1 %v351_v3  ;;  %v22_v6 = vld [vmem:[%s508_s0 + $0x18] sm:$0xff] }
   0x2   :  { %v24_v1 = vld [vmem:[%s508_s0 + $0x28] sm:$0xff]  ;;  %v23_v5 = vld [vmem:[%s508_s0 + $0x20] sm:$0xff]  ;;  %v26_v7 = vld [vmem:[%s508_s0 + $0x38] sm:$0xff] }
   0x3   :  { %v327_v4 = vpack.c.bf16 %v24_v1, %v20_v0  ;;  %v329_v8 = vpack.c.bf16 %v23_v5, %v19_v2  ;;  %v335_v9 = vpack.c.bf16 %v26_v7, %v22_v6  ;;  %v21_v10 = vld [vmem:[%s508_s0 + $0x10] sm:$0xff]  ;;  %v28_v12 = vld [vmem:[%s508_s0 + $0x48] sm:$0xff]  ;;  %v27_v15 = vld [vmem:[%s508_s0 + $0x40] sm:$0xff] }
   0x4   :  { %v25_v11 = vld [vmem:[%s508_s0 + $0x30] sm:$0xff]  ;;  %v32_v14 = vld [vmem:[%s508_s0 + $0x68] sm:$0xff]  ;;  %v31_v16 = vld [vmem:[%s508_s0 + $0x60] sm:$0xff] }
   0x5   :  { %328 = vmatprep.subr.bf16.mxu0 %v327_v4  ;;  %v337_v13 = vpack.c.bf16 %v25_v11, %v21_v10  ;;  %336 = vmatprep.subr.bf16.mxu1 %v335_v9  ;;  %v331_v17 = vpack.c.bf16 %v32_v14, %v28_v12  ;;  %v333_v18 = vpack.c.bf16 %v31_v16, %v27_v15  ;;  %v30_v19 = vld [vmem:[%s508_s0 + $0x58] sm:$0xff]  ;;  %v29_v21 = vld [vmem:[%s508_s0 + $0x50] sm:$0xff]  ;;  %v17_v25 = vld [vmem:[%s509_s1] sm:$0xff] }
   0x6   :  { %330 = vmatpush1.bf16.msra.mxu0 %v329_v8  ;;  %v34_v20 = vld [vmem:[%s508_s0 + $0x78] sm:$0xff]  ;;  %v33_v23 = vld [vmem:[%s508_s0 + $0x70] sm:$0xff]  ;;  %v18_v26 = vld [vmem:[%s509_s1 + $0x8] sm:$0xff] }
   0x7   :  { %338 = vmatpush1.bf16.msra.mxu1 %v337_v13  ;;  %v339_v22 = vpack.c.bf16 %v34_v20, %v30_v19  ;;  %332 = vmatprep.subr.bf16.mxu0 %v331_v17  ;;  %v341_v24 = vpack.c.bf16 %v33_v23, %v29_v21  ;;  %v196_v10 = vld [vmem:[%s510_s2] sm:$0xff]  ;;  %v197_v13 = vld [vmem:[%s510_s2 + $0x8] sm:$0xff] }
   0x8   :  { %v198_v17 = vld [vmem:[%s511_s3] sm:$0xff]  ;;  %v199_v20 = vld [vmem:[%s511_s3 + $0x8] sm:$0xff] }
   0x9   :  { %340 = vmatprep.subr.bf16.mxu1 %v339_v22 }
   0xa   :  { %334 = vmatpush1.bf16.msra.mxu0 %v333_v18 }
   0xb   :  { %342 = vmatpush1.bf16.msra.mxu1 %v341_v24 }
   0xd   :  { %323 = vmatmul.mubr.msk.f32.vlgmr.msra.gmra.mrb[0].mxu0 %vm35_vm0, %v17_v25 }
   0xe   :  { %325 = vmatmul.mubr.msk.f32.vlgmr.msra.gmra.mrb[0].mxu1 %vm35_vm0, %v17_v25  ;;  %112 = vmatprep.mubr.f32.mxu0 %v351_v3 }
   0xf   :  { %189 = vmatprep.mubr.f32.mxu1 %v351_v3  ;;  %v352_v3 = vmov 0  }
  0x10   :  { %345 = vset.pattern.permute.xlu0 %v352_v3  ;;  %346 = vset.pattern.permute.xlu1 %v352_v3 }
  0x11   :  { %324 = vmatmul.mubr.msk.f32.gmra.mrb[2].mxu0 %vm35_vm0, %v18_v26 }
  0x12   :  { %326 = vmatmul.mubr.msk.f32.gmra.mrb[2].mxu1 %vm35_vm0, %v18_v26 }
  0xe0   :  { %v432_v27 = vpop.f32.mrb[0].mxu0 }
  0xe1   :  { %v434_v28 = vpop.f32.mrb[1].mxu0  ;;  %v436_v29 = vpop.f32.mrb[0].mxu1 }
  0xe2   :  { %v200_v30 = vadd.f32 %v434_v28, %v432_v27  ;;  %v440_v31 = vpop.f32.mrb[1].mxu1 }
  0xe4   :  { %v442_v32 = vpop.f32.mrb[2].mxu0  ;;  %v201_v33 = vadd.f32 %v200_v30, %v436_v29 }
  0xe5   :  { %v445_v34 = vpop.f32.mrb[3].mxu0  ;;  %v447_v35 = vpop.f32.mrb[2].mxu1 }
  0xe6   :  { %v205_v36 = vadd.f32 %v445_v34, %v442_v32  ;;  %v451_v37 = vpop.f32.mrb[3].mxu1  ;;  %v202_v38 = vadd.f32 %v201_v33, %v440_v31 }
  0xe8   :  { %203 = vadd.xlane.f32.xlu0 %v202_v38  ;;  %v206_v39 = vadd.f32 %v205_v36, %v447_v35 }
  0xea   :  { %v207_v40 = vadd.f32 %v206_v39, %v451_v37 }
  0xec   :  { %208 = vadd.xlane.f32.xlu0 %v207_v40 }
 0x175   :  { %v204_v41 = vpop.xlane.xlu0 %203 }
 0x176   :  { %v210_v42 = vmul.f32 0.001953125, %v204_v41 }
 0x178   :  { %v221_v43 = vsub.f32 %v432_v27, %v210_v42  ;;  %v222_v44 = vsub.f32 %v434_v28, %v210_v42  ;;  %v223_v45 = vsub.f32 %v436_v29, %v210_v42  ;;  %v224_v47 = vsub.f32 %v440_v31, %v210_v42 }
 0x179   :  { %v209_v46 = vpop.xlane.xlu0 %208 }
 0x17a   :  { %v211_v48 = vmul.f32 0.001953125, %v209_v46  ;;  %v237_v49 = vmul.f32 %v221_v43, %v221_v43  ;;  %v238_v50 = vmul.f32 %v222_v44, %v222_v44  ;;  %v239_v51 = vmul.f32 %v223_v45, %v223_v45 }
 0x17b   :  { %v240_v56 = vmul.f32 %v224_v47, %v224_v47 }
 0x17c   :  { %v245_v52 = vadd.f32 %v238_v50, %v237_v49  ;;  %v225_v53 = vsub.f32 %v442_v32, %v211_v48  ;;  %v226_v54 = vsub.f32 %v445_v34, %v211_v48  ;;  %v227_v55 = vsub.f32 %v447_v35, %v211_v48 }
 0x17d   :  { %v228_v58 = vsub.f32 %v451_v37, %v211_v48 }
 0x17e   :  { %v246_v57 = vadd.f32 %v245_v52, %v239_v51  ;;  %v241_v59 = vmul.f32 %v225_v53, %v225_v53  ;;  %v242_v60 = vmul.f32 %v226_v54, %v226_v54  ;;  %v243_v62 = vmul.f32 %v227_v55, %v227_v55 }
 0x17f   :  { %v244_v0 = vmul.f32 %v228_v58, %v228_v58 }
 0x180   :  { %v247_v61 = vadd.f32 %v246_v57, %v240_v56  ;;  %v250_v63 = vadd.f32 %v242_v60, %v241_v59 }
 0x182   :  { %248 = vadd.xlane.f32.xlu1 %v247_v61  ;;  %v251_v1 = vadd.f32 %v250_v63, %v243_v62 }
 0x184   :  { %v252_v2 = vadd.f32 %v251_v1, %v244_v0 }
 0x186   :  { %253 = vadd.xlane.f32.xlu1 %v252_v2 }
 0x20f   :  { %v249_v4 = vpop.xlane.xlu1 %248 }
 0x210   :  { %v255_v5 = vmul.f32 0.001953125, %v249_v4 }
 0x212   :  { %v257_v6 = vadd.f32 1e-05, %v255_v5 }
 0x213   :  { %v254_v7 = vpop.xlane.xlu1 %253 }
 0x214   :  { %347 = vrsqrt.f32 %v257_v6  ;;  %v256_v8 = vmul.f32 0.001953125, %v254_v7 }
 0x216   :  { %v258_v9 = vadd.f32 1e-05, %v256_v8 }
 0x218   :  { %349 = vrsqrt.f32 %v258_v9 }
 0x21e   :  { %v348_v11 = vpop.eup %347 }
 0x21f   :  { %v261_v12 = vmul.f32 %v348_v11, %v196_v10 }
 0x221   :  { %269 = vperm.xlu0 %345, %v261_v12   ;;  %v263_v16 = vmul.f32 %v261_v12, %v210_v42 }
 0x222   :  { %v350_v14 = vpop.eup %349 }
 0x223   :  { %v262_v15 = vmul.f32 %v350_v14, %v197_v13  ;;  %v265_v18 = vsub.f32 %v198_v17, %v263_v16 }
 0x225   :  { %274 = vperm.xlu1 %346, %v262_v15   ;;  %v264_v19 = vmul.f32 %v262_v15, %v211_v48 }
 0x227   :  { %v266_v21 = vsub.f32 %v199_v20, %v264_v19 }
 0x229   :  { %287 = vperm.xlu1 %346, %v265_v18  }
 0x22d   :  { %292 = vperm.xlu1 %346, %v266_v21  }
 0x2a0   :  { %v270_v22 = vpop.permute.xlu0 %269 }
 0x2a1   :  { %v277_v24 = vmul.f32 %v270_v22, %v432_v27  ;;  %v278_v25 = vmul.f32 %v270_v22, %v434_v28  ;;  %v279_v26 = vmul.f32 %v270_v22, %v436_v29  ;;  %v280_v30 = vmul.f32 %v270_v22, %v440_v31 }
 0x2a4   :  { %v275_v23 = vpop.permute.xlu1 %274 }
 0x2a5   :  { %v281_v41 = vmul.f32 %v275_v23, %v442_v32  ;;  %v282_v42 = vmul.f32 %v275_v23, %v445_v34  ;;  %v283_v43 = vmul.f32 %v275_v23, %v447_v35  ;;  %v284_v44 = vmul.f32 %v275_v23, %v451_v37 }
 0x2a8   :  { %v288_v33 = vpop.permute.xlu1 %287 }
 0x2a9   :  { %v295_v36 = vadd.f32 %v288_v33, %v277_v24  ;;  %v296_v38 = vadd.f32 %v288_v33, %v278_v25  ;;  %v297_v39 = vadd.f32 %v288_v33, %v279_v26  ;;  %v298_v40 = vadd.f32 %v288_v33, %v280_v30 }
 0x2ab   :  { %v303_v27 = vmax.f32 %v295_v36, 0.0  ;;  %v304_v45 = vmax.f32 %v296_v38, 0.0  ;;  %v305_v28 = vmax.f32 %v297_v39, 0.0  ;;  %v306_v46 = vmax.f32 %v298_v40, 0.0 }
 0x2ac   :  { %v293_v29 = vpop.permute.xlu1 %292 }
 0x2ad   :  { %311 = vst [vmem:[%s512_s4] sm:$0xff] %v303_v27  ;;  %312 = vst [vmem:[%s512_s4 + $0x8] sm:$0xff] %v304_v45  ;;  %v299_v31 = vadd.f32 %v293_v29, %v281_v41  ;;  %v300_v32 = vadd.f32 %v293_v29, %v282_v42  ;;  %v301_v34 = vadd.f32 %v293_v29, %v283_v43 }
 0x2ae   :  { %313 = vst [vmem:[%s512_s4 + $0x10] sm:$0xff] %v305_v28  ;;  %314 = vst [vmem:[%s512_s4 + $0x18] sm:$0xff] %v306_v46  ;;  %v302_v35 = vadd.f32 %v293_v29, %v284_v44 }
 0x2af   :  { %v307_v37 = vmax.f32 %v299_v31, 0.0  ;;  %v308_v47 = vmax.f32 %v300_v32, 0.0  ;;  %v309_v48 = vmax.f32 %v301_v34, 0.0 }
 0x2b0   :  { %v310_v49 = vmax.f32 %v302_v35, 0.0 }
 0x2b1   :  { %315 = vst [vmem:[%s512_s4 + $0x20] sm:$0xff] %v307_v37  ;;  %316 = vst [vmem:[%s512_s4 + $0x28] sm:$0xff] %v308_v47 }
 0x2b2   :  { %317 = vst [vmem:[%s512_s4 + $0x30] sm:$0xff] %v309_v48  ;;  %318 = vst [vmem:[%s512_s4 + $0x38] sm:$0xff] %v310_v49 }

// kernel: _lambda_.12
= control target key start
LH: loop header
LB: loop body
LE: loop exit
PB: predicated region body
PF: predicated region fallthrough
CT: control target
= control target key end

     0   :  { %vm96_vm0 = vcmask 130048   ;;  %s846_s0 = inlined_call_operand.vmem [shape: f32[144,512], index: 0, kind: input, shape index: {}]   ;;  %s847_s1 = inlined_call_operand.vmem [shape: f32[16,144], index: 1, kind: input, shape index: {}]   ;;  %s848_s2 = inlined_call_operand.vmem [shape: f32[16,1], index: 2, kind: input, shape index: {}]   ;;  %s849_s3 = inlined_call_operand.vmem [shape: f32[16,1], index: 3, kind: input, shape index: {}]   ;;  %s850_s4 = inlined_call_operand.vmem [shape: f32[16,512], index: 4, kind: input, shape index: {}]   ;;  %s851_s5 = inlined_call_operand.vmem [shape: f32[16,512], index: 5, kind: output, shape index: {}]  }
   0x1   :  { %v25_v0 = vld [vmem:[%s846_s0 + $0x8] sm:$0xff]  ;;  %v24_v2 = vld [vmem:[%s846_s0] sm:$0xff]  ;;  %v27_v5 = vld [vmem:[%s846_s0 + $0x18] sm:$0xff] }
   0x2   :  { %v29_v1 = vld [vmem:[%s846_s0 + $0x28] sm:$0xff]  ;;  %v28_v4 = vld [vmem:[%s846_s0 + $0x20] sm:$0xff]  ;;  %v31_v6 = vld [vmem:[%s846_s0 + $0x38] sm:$0xff] }
   0x3   :  { %v404_v3 = vpack.c.bf16 %v29_v1, %v25_v0  ;;  %v406_v7 = vpack.c.bf16 %v28_v4, %v24_v2  ;;  %v440_v8 = vpack.c.bf16 %v31_v6, %v27_v5  ;;  %v26_v9 = vld [vmem:[%s846_s0 + $0x10] sm:$0xff]  ;;  %v33_v11 = vld [vmem:[%s846_s0 + $0x48] sm:$0xff]  ;;  %v32_v14 = vld [vmem:[%s846_s0 + $0x40] sm:$0xff] }
   0x4   :  { %v30_v10 = vld [vmem:[%s846_s0 + $0x30] sm:$0xff]  ;;  %v37_v13 = vld [vmem:[%s846_s0 + $0x68] sm:$0xff]  ;;  %v36_v15 = vld [vmem:[%s846_s0 + $0x60] sm:$0xff] }
   0x5   :  { %405 = vmatprep.subr.bf16.mxu0 %v404_v3  ;;  %v442_v12 = vpack.c.bf16 %v30_v10, %v26_v9  ;;  %441 = vmatprep.subr.bf16.mxu1 %v440_v8  ;;  %v408_v16 = vpack.c.bf16 %v37_v13, %v33_v11  ;;  %v410_v17 = vpack.c.bf16 %v36_v15, %v32_v14  ;;  %v35_v18 = vld [vmem:[%s846_s0 + $0x58] sm:$0xff]  ;;  %v34_v20 = vld [vmem:[%s846_s0 + $0x50] sm:$0xff]  ;;  %v41_v23 = vld [vmem:[%s846_s0 + $0x88] sm:$0xff] }
   0x6   :  { %407 = vmatpush1.bf16.msra.mxu0 %v406_v7  ;;  %v39_v19 = vld [vmem:[%s846_s0 + $0x78] sm:$0xff]  ;;  %v38_v22 = vld [vmem:[%s846_s0 + $0x70] sm:$0xff]  ;;  %v45_v24 = vld [vmem:[%s846_s0 + $0xa8] sm:$0xff] }
   0x7   :  { %443 = vmatpush1.bf16.msra.mxu1 %v442_v12  ;;  %v444_v21 = vpack.c.bf16 %v39_v19, %v35_v18  ;;  %409 = vmatprep.subr.bf16.mxu0 %v408_v16  ;;  %v446_v25 = vpack.c.bf16 %v38_v22, %v34_v20  ;;  %v412_v26 = vpack.c.bf16 %v45_v24, %v41_v23  ;;  %v40_v27 = vld [vmem:[%s846_s0 + $0x80] sm:$0xff]  ;;  %v43_v29 = vld [vmem:[%s846_s0 + $0x98] sm:$0xff]  ;;  %v42_v31 = vld [vmem:[%s846_s0 + $0x90] sm:$0xff] }
   0x8   :  { %v44_v28 = vld [vmem:[%s846_s0 + $0xa0] sm:$0xff]  ;;  %v47_v30 = vld [vmem:[%s846_s0 + $0xb8] sm:$0xff]  ;;  %v46_v32 = vld [vmem:[%s846_s0 + $0xb0] sm:$0xff] }
   0x9   :  { %445 = vmatprep.subr.bf16.mxu1 %v444_v21  ;;  %v414_v33 = vpack.c.bf16 %v44_v28, %v40_v27  ;;  %v448_v34 = vpack.c.bf16 %v47_v30, %v43_v29  ;;  %v49_v35 = vld [vmem:[%s846_s0 + $0xc8] sm:$0xff]  ;;  %v48_v37 = vld [vmem:[%s846_s0 + $0xc0] sm:$0xff]  ;;  %v450_v38 = vpack.c.bf16 %v46_v32, %v42_v31  ;;  %v51_v41 = vld [vmem:[%s846_s0 + $0xd8] sm:$0xff] }
   0xa   :  { %411 = vmatpush1.bf16.msra.mxu0 %v410_v17  ;;  %v53_v36 = vld [vmem:[%s846_s0 + $0xe8] sm:$0xff]  ;;  %v52_v40 = vld [vmem:[%s846_s0 + $0xe0] sm:$0xff]  ;;  %v55_v42 = vld [vmem:[%s846_s0 + $0xf8] sm:$0xff] }
   0xb   :  { %447 = vmatpush1.bf16.msra.mxu1 %v446_v25  ;;  %413 = vmatprep.subr.bf16.mxu0 %v412_v26  ;;  %v416_v39 = vpack.c.bf16 %v53_v36, %v49_v35  ;;  %v452_v43 = vpack.c.bf16 %v55_v42, %v51_v41  ;;  %v50_v44 = vld [vmem:[%s846_s0 + $0xd0] sm:$0xff]  ;;  %v57_v46 = vld [vmem:[%s846_s0 + $0x108] sm:$0xff]  ;;  %v418_v48 = vpack.c.bf16 %v52_v40, %v48_v37  ;;  %v59_v49 = vld [vmem:[%s846_s0 + $0x118] sm:$0xff] }
   0xc   :  { %449 = vmatprep.subr.bf16.mxu1 %v448_v34  ;;  %v54_v45 = vld [vmem:[%s846_s0 + $0xf0] sm:$0xff]  ;;  %v61_v47 = vld [vmem:[%s846_s0 + $0x128] sm:$0xff]  ;;  %v63_v50 = vld [vmem:[%s846_s0 + $0x138] sm:$0xff] }
   0xd   :  { %v454_v51 = vpack.c.bf16 %v54_v45, %v50_v44  ;;  %v420_v52 = vpack.c.bf16 %v61_v47, %v57_v46  ;;  %v56_v53 = vld [vmem:[%s846_s0 + $0x100] sm:$0xff]  ;;  %v58_v55 = vld [vmem:[%s846_s0 + $0x110] sm:$0xff]  ;;  %v456_v56 = vpack.c.bf16 %v63_v50, %v59_v49  ;;  %v65_v58 = vld [vmem:[%s846_s0 + $0x148] sm:$0xff] }
   0xe   :  { %415 = vmatpush1.bf16.msra.mxu0 %v414_v33  ;;  %v60_v54 = vld [vmem:[%s846_s0 + $0x120] sm:$0xff]  ;;  %v62_v57 = vld [vmem:[%s846_s0 + $0x130] sm:$0xff]  ;;  %v69_v59 = vld [vmem:[%s846_s0 + $0x168] sm:$0xff] }
   0xf   :  { %451 = vmatpush1.bf16.msra.mxu1 %v450_v38  ;;  %417 = vmatprep.subr.bf16.mxu0 %v416_v39  ;;  %v67_v60 = vld [vmem:[%s846_s0 + $0x158] sm:$0xff]  ;;  %v422_v62 = vpack.c.bf16 %v60_v54, %v56_v53  ;;  %v458_v63 = vpack.c.bf16 %v62_v57, %v58_v55  ;;  %v424_v0 = vpack.c.bf16 %v69_v59, %v65_v58  ;;  %v64_v1 = vld [vmem:[%s846_s0 + $0x140] sm:$0xff]  ;;  %v66_v3 = vld [vmem:[%s846_s0 + $0x150] sm:$0xff] }
  0x10   :  { %453 = vmatprep.subr.bf16.mxu1 %v452_v43  ;;  %v71_v61 = vld [vmem:[%s846_s0 + $0x178] sm:$0xff]  ;;  %v68_v2 = vld [vmem:[%s846_s0 + $0x160] sm:$0xff]  ;;  %v70_v5 = vld [vmem:[%s846_s0 + $0x170] sm:$0xff] }
  0x11   :  { %v460_v4 = vpack.c.bf16 %v71_v61, %v67_v60  ;;  %v73_v6 = vld [vmem:[%s846_s0 + $0x188] sm:$0xff]  ;;  %v75_v8 = vld [vmem:[%s846_s0 + $0x198] sm:$0xff]  ;;  %v426_v10 = vpack.c.bf16 %v68_v2, %v64_v1  ;;  %v462_v11 = vpack.c.bf16 %v70_v5, %v66_v3  ;;  %v72_v13 = vld [vmem:[%s846_s0 + $0x180] sm:$0xff] }
  0x12   :  { %419 = vmatpush1.bf16.msra.mxu0 %v418_v48  ;;  %v77_v7 = vld [vmem:[%s846_s0 + $0x1a8] sm:$0xff]  ;;  %v79_v9 = vld [vmem:[%s846_s0 + $0x1b8] sm:$0xff]  ;;  %v76_v14 = vld [vmem:[%s846_s0 + $0x1a0] sm:$0xff] }
  0x13   :  { %455 = vmatpush1.bf16.msra.mxu1 %v454_v51  ;;  %421 = vmatprep.subr.bf16.mxu0 %v420_v52  ;;  %v428_v12 = vpack.c.bf16 %v77_v7, %v73_v6  ;;  %v74_v15 = vld [vmem:[%s846_s0 + $0x190] sm:$0xff]  ;;  %v464_v16 = vpack.c.bf16 %v79_v9, %v75_v8  ;;  %v81_v18 = vld [vmem:[%s846_s0 + $0x1c8] sm:$0xff]  ;;  %v83_v20 = vld [vmem:[%s846_s0 + $0x1d8] sm:$0xff]  ;;  %v430_v23 = vpack.c.bf16 %v76_v14, %v72_v13 }
  0x14   :  { %457 = vmatprep.subr.bf16.mxu1 %v456_v56  ;;  %v78_v17 = vld [vmem:[%s846_s0 + $0x1b0] sm:$0xff]  ;;  %v85_v19 = vld [vmem:[%s846_s0 + $0x1e8] sm:$0xff]  ;;  %v87_v21 = vld [vmem:[%s846_s0 + $0x1f8] sm:$0xff] }
  0x15   :  { %v21_v22 = vld [vmem:[%s847_s1 + $0x8] sm:$0xff]  ;;  %v466_v24 = vpack.c.bf16 %v78_v17, %v74_v15  ;;  %v432_v25 = vpack.c.bf16 %v85_v19, %v81_v18  ;;  %v80_v26 = vld [vmem:[%s846_s0 + $0x1c0] sm:$0xff]  ;;  %v82_v28 = vld [vmem:[%s846_s0 + $0x1d0] sm:$0xff]  ;;  %v468_v29 = vpack.c.bf16 %v87_v21, %v83_v20 }
  0x16   :  { %423 = vmatpush1.bf16.msra.mxu0 %v422_v62  ;;  %400 = vmatprep.mubr.msk.f32.mxu0 %vm96_vm0, %v21_v22  ;;  %v84_v27 = vld [vmem:[%s846_s0 + $0x1e0] sm:$0xff]  ;;  %v86_v30 = vld [vmem:[%s846_s0 + $0x1f0] sm:$0xff]  ;;  %v89_v31 = vld [vmem:[%s846_s0 + $0x208] sm:$0xff] }
  0x17   :  { %459 = vmatpush1.bf16.msra.mxu1 %v458_v63  ;;  %425 = vmatprep.subr.bf16.mxu0 %v424_v0  ;;  %v93_v32 = vld [vmem:[%s846_s0 + $0x228] sm:$0xff]  ;;  %v91_v33 = vld [vmem:[%s846_s0 + $0x218] sm:$0xff]  ;;  %v434_v35 = vpack.c.bf16 %v84_v27, %v80_v26  ;;  %v470_v36 = vpack.c.bf16 %v86_v30, %v82_v28  ;;  %v88_v38 = vld [vmem:[%s846_s0 + $0x200] sm:$0xff] }
  0x18   :  { %461 = vmatprep.subr.bf16.mxu1 %v460_v4  ;;  %402 = vmatprep.mubr.msk.f32.mxu1 %vm96_vm0, %v21_v22  ;;  %v95_v34 = vld [vmem:[%s846_s0 + $0x238] sm:$0xff]  ;;  %v436_v37 = vpack.c.bf16 %v93_v32, %v89_v31  ;;  %v92_v39 = vld [vmem:[%s846_s0 + $0x220] sm:$0xff]  ;;  %v90_v41 = vld [vmem:[%s846_s0 + $0x210] sm:$0xff] }
  0x19   :  { %v472_v40 = vpack.c.bf16 %v95_v34, %v91_v33  ;;  %v94_v42 = vld [vmem:[%s846_s0 + $0x230] sm:$0xff]  ;;  %v438_v43 = vpack.c.bf16 %v92_v39, %v88_v38  ;;  %v20_v45 = vld [vmem:[%s847_s1] sm:$0xff]  ;;  %v23_v46 = vld [vmem:[%s847_s1 + $0x18] sm:$0xff] }
  0x1a   :  { %427 = vmatpush1.bf16.msra.mxu0 %v426_v10  ;;  %v474_v44 = vpack.c.bf16 %v94_v42, %v90_v41  ;;  %v22_v47 = vld [vmem:[%s847_s1 + $0x10] sm:$0xff]  ;;  %v257_v31 = vld [vmem:[%s848_s2] sm:$0xff]  ;;  %v258_v34 = vld [vmem:[%s848_s2 + $0x8] sm:$0xff] }
  0x1b   :  { %463 = vmatpush1.bf16.msra.mxu1 %v462_v11  ;;  %429 = vmatprep.subr.bf16.mxu0 %v428_v12  ;;  %v259_v38 = vld [vmem:[%s849_s3] sm:$0xff]  ;;  %v260_v41 = vld [vmem:[%s849_s3 + $0x8] sm:$0xff] }
  0x1c   :  { %465 = vmatprep.subr.bf16.mxu1 %v464_v16 }
  0x1e   :  { %431 = vmatpush1.bf16.msra.mxu0 %v430_v23 }
  0x1f   :  { %467 = vmatpush1.bf16.msra.mxu1 %v466_v24  ;;  %433 = vmatprep.subr.bf16.mxu0 %v432_v25  ;;  %v483_v24 = vmov 0  }
  0x20   :  { %469 = vmatprep.subr.bf16.mxu1 %v468_v29  ;;  %477 = vset.pattern.permute.xlu0 %v483_v24 }
  0x21   :  { %478 = vset.pattern.permute.xlu1 %v483_v24 }
  0x22   :  { %435 = vmatpush1.bf16.msra.mxu0 %v434_v35 }
  0x23   :  { %471 = vmatpush1.bf16.msra.mxu1 %v470_v36  ;;  %437 = vmatprep.subr.bf16.mxu0 %v436_v37 }
  0x24   :  { %473 = vmatprep.subr.bf16.mxu1 %v472_v40 }
  0x26   :  { %439 = vmatpush1.bf16.msra.mxu0 %v438_v43 }
  0x27   :  { %475 = vmatpush1.bf16.msra.mxu1 %v474_v44 }
  0x29   :  { %168 = vmatmul.mubr.f32.vlgmr.msra.gmra.mrb[0].mxu0 %v20_v45 }
  0x2a   :  { %245 = vmatmul.mubr.f32.vlgmr.msra.gmra.mrb[0].mxu1 %v20_v45  ;;  %401 = vmatprep.mubr.msk.f32.mxu0 %vm96_vm0, %v23_v46 }
  0x2b   :  { %403 = vmatprep.mubr.msk.f32.mxu1 %vm96_vm0, %v23_v46 }
  0x2d   :  { %174 = vmatmul.mubr.f32.gmra.mrb[2].mxu0 %v22_v47 }
  0x2e   :  { %251 = vmatmul.mubr.f32.gmra.mrb[2].mxu1 %v22_v47 }
  0xfc   :  { %v746_v48 = vpop.f32.mrb[0].mxu0 }
  0xfd   :  { %v748_v49 = vpop.f32.mrb[1].mxu0  ;;  %v750_v50 = vpop.f32.mrb[0].mxu1 }
  0xfe   :  { %v269_v51 = vadd.f32 %v748_v49, %v746_v48  ;;  %v754_v52 = vpop.f32.mrb[1].mxu1 }
 0x100   :  { %v756_v53 = vpop.f32.mrb[2].mxu0  ;;  %v270_v54 = vadd.f32 %v269_v51, %v750_v50 }
 0x101   :  { %v759_v55 = vpop.f32.mrb[3].mxu0  ;;  %v761_v56 = vpop.f32.mrb[2].mxu1 }
 0x102   :  { %v274_v57 = vadd.f32 %v759_v55, %v756_v53  ;;  %v765_v58 = vpop.f32.mrb[3].mxu1  ;;  %v271_v59 = vadd.f32 %v270_v54, %v754_v52  ;;  %v261_v54 = vld [vmem:[%s850_s4] sm:$0xff] }
 0x104   :  { %272 = vadd.xlane.f32.xlu0 %v271_v59  ;;  %v275_v60 = vadd.f32 %v274_v57, %v761_v56  ;;  %v262_v57 = vld [vmem:[%s850_s4 + $0x8] sm:$0xff]  ;;  %v263_v59 = vld [vmem:[%s850_s4 + $0x10] sm:$0xff] }
 0x106   :  { %v276_v61 = vadd.f32 %v275_v60, %v765_v58 }
 0x108   :  { %277 = vadd.xlane.f32.xlu0 %v276_v61 }
 0x191   :  { %v273_v62 = vpop.xlane.xlu0 %272 }
 0x192   :  { %v279_v63 = vmul.f32 0.001953125, %v273_v62 }
 0x194   :  { %v290_v0 = vsub.f32 %v746_v48, %v279_v63  ;;  %v291_v1 = vsub.f32 %v748_v49, %v279_v63  ;;  %v292_v2 = vsub.f32 %v750_v50, %v279_v63  ;;  %v293_v4 = vsub.f32 %v754_v52, %v279_v63 }
 0x195   :  { %v278_v3 = vpop.xlane.xlu0 %277 }
 0x196   :  { %v280_v5 = vmul.f32 0.001953125, %v278_v3  ;;  %v306_v6 = vmul.f32 %v290_v0, %v290_v0  ;;  %v307_v7 = vmul.f32 %v291_v1, %v291_v1  ;;  %v308_v8 = vmul.f32 %v292_v2, %v292_v2  ;;  %v265_v2 = vld [vmem:[%s850_s4 + $0x20] sm:$0xff]  ;;  %v266_v3 = vld [vmem:[%s850_s4 + $0x28] sm:$0xff] }
 0x197   :  { %v309_v13 = vmul.f32 %v293_v4, %v293_v4 }
 0x198   :  { %v314_v9 = vadd.f32 %v307_v7, %v306_v6  ;;  %v294_v10 = vsub.f32 %v756_v53, %v280_v5  ;;  %v295_v11 = vsub.f32 %v759_v55, %v280_v5  ;;  %v296_v12 = vsub.f32 %v761_v56, %v280_v5 }
 0x199   :  { %v297_v15 = vsub.f32 %v765_v58, %v280_v5 }
 0x19a   :  { %v315_v14 = vadd.f32 %v314_v9, %v308_v8  ;;  %v310_v16 = vmul.f32 %v294_v10, %v294_v10  ;;  %v311_v17 = vmul.f32 %v295_v11, %v295_v11  ;;  %v312_v19 = vmul.f32 %v296_v12, %v296_v12 }
 0x19b   :  { %v313_v21 = vmul.f32 %v297_v15, %v297_v15 }
 0x19c   :  { %v316_v18 = vadd.f32 %v315_v14, %v309_v13  ;;  %v319_v20 = vadd.f32 %v311_v17, %v310_v16  ;;  %v267_v13 = vld [vmem:[%s850_s4 + $0x30] sm:$0xff]  ;;  %v268_v14 = vld [vmem:[%s850_s4 + $0x38] sm:$0xff] }
 0x19e   :  { %317 = vadd.xlane.f32.xlu1 %v316_v18  ;;  %v320_v22 = vadd.f32 %v319_v20, %v312_v19 }
 0x1a0   :  { %v321_v23 = vadd.f32 %v320_v22, %v313_v21 }
 0x1a2   :  { %322 = vadd.xlane.f32.xlu1 %v321_v23 }
 0x22b   :  { %v318_v25 = vpop.xlane.xlu1 %317 }
 0x22c   :  { %v324_v26 = vmul.f32 0.001953125, %v318_v25 }
 0x22e   :  { %v326_v27 = vadd.f32 1e-05, %v324_v26 }
 0x22f   :  { %v323_v28 = vpop.xlane.xlu1 %322 }
 0x230   :  { %479 = vrsqrt.f32 %v326_v27  ;;  %v325_v29 = vmul.f32 0.001953125, %v323_v28 }
 0x232   :  { %v327_v30 = vadd.f32 1e-05, %v325_v29 }
 0x234   :  { %481 = vrsqrt.f32 %v327_v30 }
 0x23a   :  { %v480_v32 = vpop.eup %479 }
 0x23b   :  { %v330_v33 = vmul.f32 %v480_v32, %v257_v31 }
 0x23d   :  { %338 = vperm.xlu0 %477, %v330_v33   ;;  %v332_v37 = vmul.f32 %v330_v33, %v279_v63 }
 0x23e   :  { %v482_v35 = vpop.eup %481 }
 0x23f   :  { %v331_v36 = vmul.f32 %v482_v35, %v258_v34  ;;  %v334_v39 = vsub.f32 %v259_v38, %v332_v37 }
 0x241   :  { %343 = vperm.xlu1 %478, %v331_v36   ;;  %v333_v40 = vmul.f32 %v331_v36, %v280_v5 }
 0x243   :  { %v335_v42 = vsub.f32 %v260_v41, %v333_v40 }
 0x245   :  { %356 = vperm.xlu1 %478, %v334_v39  }
 0x249   :  { %361 = vperm.xlu1 %478, %v335_v42  }
 0x2bc   :  { %v339_v43 = vpop.permute.xlu0 %338 }
 0x2bd   :  { %v346_v45 = vmul.f32 %v339_v43, %v746_v48  ;;  %v347_v46 = vmul.f32 %v339_v43, %v748_v49  ;;  %v348_v47 = vmul.f32 %v339_v43, %v750_v50  ;;  %v349_v51 = vmul.f32 %v339_v43, %v754_v52  ;;  %v264_v48 = vld [vmem:[%s850_s4 + $0x18] sm:$0xff] }
 0x2c0   :  { %v344_v44 = vpop.permute.xlu1 %343 }
 0x2c1   :  { %v350_v4 = vmul.f32 %v344_v44, %v756_v53  ;;  %v351_v5 = vmul.f32 %v344_v44, %v759_v55  ;;  %v352_v6 = vmul.f32 %v344_v44, %v761_v56  ;;  %v353_v7 = vmul.f32 %v344_v44, %v765_v58 }
 0x2c4   :  { %v357_v49 = vpop.permute.xlu1 %356 }
 0x2c5   :  { %v364_v50 = vadd.f32 %v357_v49, %v346_v45  ;;  %v365_v60 = vadd.f32 %v357_v49, %v347_v46  ;;  %v366_v52 = vadd.f32 %v357_v49, %v348_v47  ;;  %v367_v61 = vadd.f32 %v357_v49, %v349_v51 }
 0x2c7   :  { %v372_v62 = vadd.f32 %v364_v50, %v261_v54  ;;  %v373_v63 = vadd.f32 %v365_v60, %v262_v57  ;;  %v374_v0 = vadd.f32 %v366_v52, %v263_v59  ;;  %v375_v1 = vadd.f32 %v367_v61, %v264_v48 }
 0x2c8   :  { %v362_v8 = vpop.permute.xlu1 %361 }
 0x2c9   :  { %v380_v9 = vmax.f32 %v372_v62, 0.0  ;;  %v381_v10 = vmax.f32 %v373_v63, 0.0  ;;  %v382_v11 = vmax.f32 %v374_v0, 0.0  ;;  %v383_v12 = vmax.f32 %v375_v1, 0.0 }
 0x2ca   :  { %v368_v53 = vadd.f32 %v362_v8, %v350_v4  ;;  %v369_v15 = vadd.f32 %v362_v8, %v351_v5  ;;  %v370_v55 = vadd.f32 %v362_v8, %v352_v6  ;;  %v371_v16 = vadd.f32 %v362_v8, %v353_v7 }
 0x2cb   :  { %388 = vst [vmem:[%s851_s5] sm:$0xff] %v380_v9  ;;  %389 = vst [vmem:[%s851_s5 + $0x8] sm:$0xff] %v381_v10 }
 0x2cc   :  { %390 = vst [vmem:[%s851_s5 + $0x10] sm:$0xff] %v382_v11  ;;  %391 = vst [vmem:[%s851_s5 + $0x18] sm:$0xff] %v383_v12  ;;  %v376_v56 = vadd.f32 %v368_v53, %v265_v2  ;;  %v377_v58 = vadd.f32 %v369_v15, %v266_v3  ;;  %v378_v17 = vadd.f32 %v370_v55, %v267_v13 }
 0x2cd   :  { %v379_v18 = vadd.f32 %v371_v16, %v268_v14 }
 0x2ce   :  { %v384_v19 = vmax.f32 %v376_v56, 0.0  ;;  %v385_v20 = vmax.f32 %v377_v58, 0.0  ;;  %v386_v21 = vmax.f32 %v378_v17, 0.0 }
 0x2cf   :  { %v387_v22 = vmax.f32 %v379_v18, 0.0 }
 0x2d0   :  { %392 = vst [vmem:[%s851_s5 + $0x20] sm:$0xff] %v384_v19  ;;  %393 = vst [vmem:[%s851_s5 + $0x28] sm:$0xff] %v385_v20 }
 0x2d1   :  { %394 = vst [vmem:[%s851_s5 + $0x30] sm:$0xff] %v386_v21  ;;  %395 = vst [vmem:[%s851_s5 + $0x38] sm:$0xff] %v387_v22 }

// kernel: _lambda_.11
= control target key start
LH: loop header
LB: loop body
LE: loop exit
PB: predicated region body
PF: predicated region fallthrough
CT: control target
= control target key end

     0   :  { %vm93_vm0 = vcmask 130048   ;;  %s798_s0 = inlined_call_operand.vmem [shape: f32[144,512], index: 0, kind: input, shape index: {}]   ;;  %s799_s1 = inlined_call_operand.vmem [shape: f32[16,144], index: 1, kind: input, shape index: {}]   ;;  %s800_s2 = inlined_call_operand.vmem [shape: f32[16,1], index: 2, kind: input, shape index: {}]   ;;  %s801_s3 = inlined_call_operand.vmem [shape: f32[16,1], index: 3, kind: input, shape index: {}]   ;;  %s802_s4 = inlined_call_operand.vmem [shape: f32[16,512], index: 4, kind: output, shape index: {}]  }
   0x1   :  { %v22_v0 = vld [vmem:[%s798_s0 + $0x8] sm:$0xff]  ;;  %v21_v2 = vld [vmem:[%s798_s0] sm:$0xff]  ;;  %v24_v5 = vld [vmem:[%s798_s0 + $0x18] sm:$0xff] }
   0x2   :  { %v26_v1 = vld [vmem:[%s798_s0 + $0x28] sm:$0xff]  ;;  %v25_v4 = vld [vmem:[%s798_s0 + $0x20] sm:$0xff]  ;;  %v28_v6 = vld [vmem:[%s798_s0 + $0x38] sm:$0xff] }
   0x3   :  { %v385_v3 = vpack.c.bf16 %v26_v1, %v22_v0  ;;  %v387_v7 = vpack.c.bf16 %v25_v4, %v21_v2  ;;  %v421_v8 = vpack.c.bf16 %v28_v6, %v24_v5  ;;  %v23_v9 = vld [vmem:[%s798_s0 + $0x10] sm:$0xff]  ;;  %v30_v11 = vld [vmem:[%s798_s0 + $0x48] sm:$0xff]  ;;  %v29_v14 = vld [vmem:[%s798_s0 + $0x40] sm:$0xff] }
   0x4   :  { %v27_v10 = vld [vmem:[%s798_s0 + $0x30] sm:$0xff]  ;;  %v34_v13 = vld [vmem:[%s798_s0 + $0x68] sm:$0xff]  ;;  %v33_v15 = vld [vmem:[%s798_s0 + $0x60] sm:$0xff] }
   0x5   :  { %386 = vmatprep.subr.bf16.mxu0 %v385_v3  ;;  %v423_v12 = vpack.c.bf16 %v27_v10, %v23_v9  ;;  %422 = vmatprep.subr.bf16.mxu1 %v421_v8  ;;  %v389_v16 = vpack.c.bf16 %v34_v13, %v30_v11  ;;  %v391_v17 = vpack.c.bf16 %v33_v15, %v29_v14  ;;  %v32_v18 = vld [vmem:[%s798_s0 + $0x58] sm:$0xff]  ;;  %v31_v20 = vld [vmem:[%s798_s0 + $0x50] sm:$0xff]  ;;  %v38_v23 = vld [vmem:[%s798_s0 + $0x88] sm:$0xff] }
   0x6   :  { %388 = vmatpush1.bf16.msra.mxu0 %v387_v7  ;;  %v36_v19 = vld [vmem:[%s798_s0 + $0x78] sm:$0xff]  ;;  %v35_v22 = vld [vmem:[%s798_s0 + $0x70] sm:$0xff]  ;;  %v42_v24 = vld [vmem:[%s798_s0 + $0xa8] sm:$0xff] }
   0x7   :  { %424 = vmatpush1.bf16.msra.mxu1 %v423_v12  ;;  %v425_v21 = vpack.c.bf16 %v36_v19, %v32_v18  ;;  %390 = vmatprep.subr.bf16.mxu0 %v389_v16  ;;  %v427_v25 = vpack.c.bf16 %v35_v22, %v31_v20  ;;  %v393_v26 = vpack.c.bf16 %v42_v24, %v38_v23  ;;  %v37_v27 = vld [vmem:[%s798_s0 + $0x80] sm:$0xff]  ;;  %v40_v29 = vld [vmem:[%s798_s0 + $0x98] sm:$0xff]  ;;  %v39_v31 = vld [vmem:[%s798_s0 + $0x90] sm:$0xff] }
   0x8   :  { %v41_v28 = vld [vmem:[%s798_s0 + $0xa0] sm:$0xff]  ;;  %v44_v30 = vld [vmem:[%s798_s0 + $0xb8] sm:$0xff]  ;;  %v43_v32 = vld [vmem:[%s798_s0 + $0xb0] sm:$0xff] }
   0x9   :  { %426 = vmatprep.subr.bf16.mxu1 %v425_v21  ;;  %v395_v33 = vpack.c.bf16 %v41_v28, %v37_v27  ;;  %v429_v34 = vpack.c.bf16 %v44_v30, %v40_v29  ;;  %v46_v35 = vld [vmem:[%s798_s0 + $0xc8] sm:$0xff]  ;;  %v45_v37 = vld [vmem:[%s798_s0 + $0xc0] sm:$0xff]  ;;  %v431_v38 = vpack.c.bf16 %v43_v32, %v39_v31  ;;  %v48_v41 = vld [vmem:[%s798_s0 + $0xd8] sm:$0xff] }
   0xa   :  { %392 = vmatpush1.bf16.msra.mxu0 %v391_v17  ;;  %v50_v36 = vld [vmem:[%s798_s0 + $0xe8] sm:$0xff]  ;;  %v49_v40 = vld [vmem:[%s798_s0 + $0xe0] sm:$0xff]  ;;  %v52_v42 = vld [vmem:[%s798_s0 + $0xf8] sm:$0xff] }
   0xb   :  { %428 = vmatpush1.bf16.msra.mxu1 %v427_v25  ;;  %394 = vmatprep.subr.bf16.mxu0 %v393_v26  ;;  %v397_v39 = vpack.c.bf16 %v50_v36, %v46_v35  ;;  %v433_v43 = vpack.c.bf16 %v52_v42, %v48_v41  ;;  %v47_v44 = vld [vmem:[%s798_s0 + $0xd0] sm:$0xff]  ;;  %v54_v46 = vld [vmem:[%s798_s0 + $0x108] sm:$0xff]  ;;  %v399_v48 = vpack.c.bf16 %v49_v40, %v45_v37  ;;  %v56_v49 = vld [vmem:[%s798_s0 + $0x118] sm:$0xff] }
   0xc   :  { %430 = vmatprep.subr.bf16.mxu1 %v429_v34  ;;  %v51_v45 = vld [vmem:[%s798_s0 + $0xf0] sm:$0xff]  ;;  %v58_v47 = vld [vmem:[%s798_s0 + $0x128] sm:$0xff]  ;;  %v60_v50 = vld [vmem:[%s798_s0 + $0x138] sm:$0xff] }
   0xd   :  { %v435_v51 = vpack.c.bf16 %v51_v45, %v47_v44  ;;  %v401_v52 = vpack.c.bf16 %v58_v47, %v54_v46  ;;  %v53_v53 = vld [vmem:[%s798_s0 + $0x100] sm:$0xff]  ;;  %v55_v55 = vld [vmem:[%s798_s0 + $0x110] sm:$0xff]  ;;  %v437_v56 = vpack.c.bf16 %v60_v50, %v56_v49  ;;  %v62_v58 = vld [vmem:[%s798_s0 + $0x148] sm:$0xff] }
   0xe   :  { %396 = vmatpush1.bf16.msra.mxu0 %v395_v33  ;;  %v57_v54 = vld [vmem:[%s798_s0 + $0x120] sm:$0xff]  ;;  %v59_v57 = vld [vmem:[%s798_s0 + $0x130] sm:$0xff]  ;;  %v66_v59 = vld [vmem:[%s798_s0 + $0x168] sm:$0xff] }
   0xf   :  { %432 = vmatpush1.bf16.msra.mxu1 %v431_v38  ;;  %398 = vmatprep.subr.bf16.mxu0 %v397_v39  ;;  %v64_v60 = vld [vmem:[%s798_s0 + $0x158] sm:$0xff]  ;;  %v403_v62 = vpack.c.bf16 %v57_v54, %v53_v53  ;;  %v439_v63 = vpack.c.bf16 %v59_v57, %v55_v55  ;;  %v405_v0 = vpack.c.bf16 %v66_v59, %v62_v58  ;;  %v61_v1 = vld [vmem:[%s798_s0 + $0x140] sm:$0xff]  ;;  %v63_v3 = vld [vmem:[%s798_s0 + $0x150] sm:$0xff] }
  0x10   :  { %434 = vmatprep.subr.bf16.mxu1 %v433_v43  ;;  %v68_v61 = vld [vmem:[%s798_s0 + $0x178] sm:$0xff]  ;;  %v65_v2 = vld [vmem:[%s798_s0 + $0x160] sm:$0xff]  ;;  %v67_v5 = vld [vmem:[%s798_s0 + $0x170] sm:$0xff] }
  0x11   :  { %v441_v4 = vpack.c.bf16 %v68_v61, %v64_v60  ;;  %v70_v6 = vld [vmem:[%s798_s0 + $0x188] sm:$0xff]  ;;  %v72_v8 = vld [vmem:[%s798_s0 + $0x198] sm:$0xff]  ;;  %v407_v10 = vpack.c.bf16 %v65_v2, %v61_v1  ;;  %v443_v11 = vpack.c.bf16 %v67_v5, %v63_v3  ;;  %v69_v13 = vld [vmem:[%s798_s0 + $0x180] sm:$0xff] }
  0x12   :  { %400 = vmatpush1.bf16.msra.mxu0 %v399_v48  ;;  %v74_v7 = vld [vmem:[%s798_s0 + $0x1a8] sm:$0xff]  ;;  %v76_v9 = vld [vmem:[%s798_s0 + $0x1b8] sm:$0xff]  ;;  %v73_v14 = vld [vmem:[%s798_s0 + $0x1a0] sm:$0xff] }
  0x13   :  { %436 = vmatpush1.bf16.msra.mxu1 %v435_v51  ;;  %402 = vmatprep.subr.bf16.mxu0 %v401_v52  ;;  %v409_v12 = vpack.c.bf16 %v74_v7, %v70_v6  ;;  %v71_v15 = vld [vmem:[%s798_s0 + $0x190] sm:$0xff]  ;;  %v445_v16 = vpack.c.bf16 %v76_v9, %v72_v8  ;;  %v78_v18 = vld [vmem:[%s798_s0 + $0x1c8] sm:$0xff]  ;;  %v80_v20 = vld [vmem:[%s798_s0 + $0x1d8] sm:$0xff]  ;;  %v411_v23 = vpack.c.bf16 %v73_v14, %v69_v13 }
  0x14   :  { %438 = vmatprep.subr.bf16.mxu1 %v437_v56  ;;  %v75_v17 = vld [vmem:[%s798_s0 + $0x1b0] sm:$0xff]  ;;  %v82_v19 = vld [vmem:[%s798_s0 + $0x1e8] sm:$0xff]  ;;  %v84_v21 = vld [vmem:[%s798_s0 + $0x1f8] sm:$0xff] }
  0x15   :  { %v18_v22 = vld [vmem:[%s799_s1 + $0x8] sm:$0xff]  ;;  %v447_v24 = vpack.c.bf16 %v75_v17, %v71_v15  ;;  %v413_v25 = vpack.c.bf16 %v82_v19, %v78_v18  ;;  %v77_v26 = vld [vmem:[%s798_s0 + $0x1c0] sm:$0xff]  ;;  %v79_v28 = vld [vmem:[%s798_s0 + $0x1d0] sm:$0xff]  ;;  %v449_v29 = vpack.c.bf16 %v84_v21, %v80_v20 }
  0x16   :  { %404 = vmatpush1.bf16.msra.mxu0 %v403_v62  ;;  %381 = vmatprep.mubr.msk.f32.mxu0 %vm93_vm0, %v18_v22  ;;  %v81_v27 = vld [vmem:[%s798_s0 + $0x1e0] sm:$0xff]  ;;  %v83_v30 = vld [vmem:[%s798_s0 + $0x1f0] sm:$0xff]  ;;  %v86_v31 = vld [vmem:[%s798_s0 + $0x208] sm:$0xff] }
  0x17   :  { %440 = vmatpush1.bf16.msra.mxu1 %v439_v63  ;;  %406 = vmatprep.subr.bf16.mxu0 %v405_v0  ;;  %v90_v32 = vld [vmem:[%s798_s0 + $0x228] sm:$0xff]  ;;  %v88_v33 = vld [vmem:[%s798_s0 + $0x218] sm:$0xff]  ;;  %v415_v35 = vpack.c.bf16 %v81_v27, %v77_v26  ;;  %v451_v36 = vpack.c.bf16 %v83_v30, %v79_v28  ;;  %v85_v38 = vld [vmem:[%s798_s0 + $0x200] sm:$0xff] }
  0x18   :  { %442 = vmatprep.subr.bf16.mxu1 %v441_v4  ;;  %383 = vmatprep.mubr.msk.f32.mxu1 %vm93_vm0, %v18_v22  ;;  %v92_v34 = vld [vmem:[%s798_s0 + $0x238] sm:$0xff]  ;;  %v417_v37 = vpack.c.bf16 %v90_v32, %v86_v31  ;;  %v89_v39 = vld [vmem:[%s798_s0 + $0x220] sm:$0xff]  ;;  %v87_v41 = vld [vmem:[%s798_s0 + $0x210] sm:$0xff] }
  0x19   :  { %v453_v40 = vpack.c.bf16 %v92_v34, %v88_v33  ;;  %v91_v42 = vld [vmem:[%s798_s0 + $0x230] sm:$0xff]  ;;  %v419_v43 = vpack.c.bf16 %v89_v39, %v85_v38  ;;  %v17_v45 = vld [vmem:[%s799_s1] sm:$0xff]  ;;  %v20_v46 = vld [vmem:[%s799_s1 + $0x18] sm:$0xff] }
  0x1a   :  { %408 = vmatpush1.bf16.msra.mxu0 %v407_v10  ;;  %v455_v44 = vpack.c.bf16 %v91_v42, %v87_v41  ;;  %v19_v47 = vld [vmem:[%s799_s1 + $0x10] sm:$0xff]  ;;  %v254_v31 = vld [vmem:[%s800_s2] sm:$0xff]  ;;  %v255_v34 = vld [vmem:[%s800_s2 + $0x8] sm:$0xff] }
  0x1b   :  { %444 = vmatpush1.bf16.msra.mxu1 %v443_v11  ;;  %410 = vmatprep.subr.bf16.mxu0 %v409_v12  ;;  %v256_v38 = vld [vmem:[%s801_s3] sm:$0xff]  ;;  %v257_v41 = vld [vmem:[%s801_s3 + $0x8] sm:$0xff] }
  0x1c   :  { %446 = vmatprep.subr.bf16.mxu1 %v445_v16 }
  0x1e   :  { %412 = vmatpush1.bf16.msra.mxu0 %v411_v23 }
  0x1f   :  { %448 = vmatpush1.bf16.msra.mxu1 %v447_v24  ;;  %414 = vmatprep.subr.bf16.mxu0 %v413_v25  ;;  %v464_v24 = vmov 0  }
  0x20   :  { %450 = vmatprep.subr.bf16.mxu1 %v449_v29  ;;  %458 = vset.pattern.permute.xlu0 %v464_v24 }
  0x21   :  { %459 = vset.pattern.permute.xlu1 %v464_v24 }
  0x22   :  { %416 = vmatpush1.bf16.msra.mxu0 %v415_v35 }
  0x23   :  { %452 = vmatpush1.bf16.msra.mxu1 %v451_v36  ;;  %418 = vmatprep.subr.bf16.mxu0 %v417_v37 }
  0x24   :  { %454 = vmatprep.subr.bf16.mxu1 %v453_v40 }
  0x26   :  { %420 = vmatpush1.bf16.msra.mxu0 %v419_v43 }
  0x27   :  { %456 = vmatpush1.bf16.msra.mxu1 %v455_v44 }
  0x29   :  { %165 = vmatmul.mubr.f32.vlgmr.msra.gmra.mrb[0].mxu0 %v17_v45 }
  0x2a   :  { %242 = vmatmul.mubr.f32.vlgmr.msra.gmra.mrb[0].mxu1 %v17_v45  ;;  %382 = vmatprep.mubr.msk.f32.mxu0 %vm93_vm0, %v20_v46 }
  0x2b   :  { %384 = vmatprep.mubr.msk.f32.mxu1 %vm93_vm0, %v20_v46 }
  0x2d   :  { %171 = vmatmul.mubr.f32.gmra.mrb[2].mxu0 %v19_v47 }
  0x2e   :  { %248 = vmatmul.mubr.f32.gmra.mrb[2].mxu1 %v19_v47 }
  0xfc   :  { %v722_v48 = vpop.f32.mrb[0].mxu0 }
  0xfd   :  { %v724_v49 = vpop.f32.mrb[1].mxu0  ;;  %v726_v50 = vpop.f32.mrb[0].mxu1 }
  0xfe   :  { %v258_v51 = vadd.f32 %v724_v49, %v722_v48  ;;  %v730_v52 = vpop.f32.mrb[1].mxu1 }
 0x100   :  { %v732_v53 = vpop.f32.mrb[2].mxu0  ;;  %v259_v54 = vadd.f32 %v258_v51, %v726_v50 }
 0x101   :  { %v735_v55 = vpop.f32.mrb[3].mxu0  ;;  %v737_v56 = vpop.f32.mrb[2].mxu1 }
 0x102   :  { %v263_v57 = vadd.f32 %v735_v55, %v732_v53  ;;  %v741_v58 = vpop.f32.mrb[3].mxu1  ;;  %v260_v59 = vadd.f32 %v259_v54, %v730_v52 }
 0x104   :  { %261 = vadd.xlane.f32.xlu0 %v260_v59  ;;  %v264_v60 = vadd.f32 %v263_v57, %v737_v56 }
 0x106   :  { %v265_v61 = vadd.f32 %v264_v60, %v741_v58 }
 0x108   :  { %266 = vadd.xlane.f32.xlu0 %v265_v61 }
 0x191   :  { %v262_v62 = vpop.xlane.xlu0 %261 }
 0x192   :  { %v268_v63 = vmul.f32 0.001953125, %v262_v62 }
 0x194   :  { %v279_v0 = vsub.f32 %v722_v48, %v268_v63  ;;  %v280_v1 = vsub.f32 %v724_v49, %v268_v63  ;;  %v281_v2 = vsub.f32 %v726_v50, %v268_v63  ;;  %v282_v4 = vsub.f32 %v730_v52, %v268_v63 }
 0x195   :  { %v267_v3 = vpop.xlane.xlu0 %266 }
 0x196   :  { %v269_v5 = vmul.f32 0.001953125, %v267_v3  ;;  %v295_v6 = vmul.f32 %v279_v0, %v279_v0  ;;  %v296_v7 = vmul.f32 %v280_v1, %v280_v1  ;;  %v297_v8 = vmul.f32 %v281_v2, %v281_v2 }
 0x197   :  { %v298_v13 = vmul.f32 %v282_v4, %v282_v4 }
 0x198   :  { %v303_v9 = vadd.f32 %v296_v7, %v295_v6  ;;  %v283_v10 = vsub.f32 %v732_v53, %v269_v5  ;;  %v284_v11 = vsub.f32 %v735_v55, %v269_v5  ;;  %v285_v12 = vsub.f32 %v737_v56, %v269_v5 }
 0x199   :  { %v286_v15 = vsub.f32 %v741_v58, %v269_v5 }
 0x19a   :  { %v304_v14 = vadd.f32 %v303_v9, %v297_v8  ;;  %v299_v16 = vmul.f32 %v283_v10, %v283_v10  ;;  %v300_v17 = vmul.f32 %v284_v11, %v284_v11  ;;  %v301_v19 = vmul.f32 %v285_v12, %v285_v12 }
 0x19b   :  { %v302_v21 = vmul.f32 %v286_v15, %v286_v15 }
 0x19c   :  { %v305_v18 = vadd.f32 %v304_v14, %v298_v13  ;;  %v308_v20 = vadd.f32 %v300_v17, %v299_v16 }
 0x19e   :  { %306 = vadd.xlane.f32.xlu1 %v305_v18  ;;  %v309_v22 = vadd.f32 %v308_v20, %v301_v19 }
 0x1a0   :  { %v310_v23 = vadd.f32 %v309_v22, %v302_v21 }
 0x1a2   :  { %311 = vadd.xlane.f32.xlu1 %v310_v23 }
 0x22b   :  { %v307_v25 = vpop.xlane.xlu1 %306 }
 0x22c   :  { %v313_v26 = vmul.f32 0.001953125, %v307_v25 }
 0x22e   :  { %v315_v27 = vadd.f32 1e-05, %v313_v26 }
 0x22f   :  { %v312_v28 = vpop.xlane.xlu1 %311 }
 0x230   :  { %460 = vrsqrt.f32 %v315_v27  ;;  %v314_v29 = vmul.f32 0.001953125, %v312_v28 }
 0x232   :  { %v316_v30 = vadd.f32 1e-05, %v314_v29 }
 0x234   :  { %462 = vrsqrt.f32 %v316_v30 }
 0x23a   :  { %v461_v32 = vpop.eup %460 }
 0x23b   :  { %v319_v33 = vmul.f32 %v461_v32, %v254_v31 }
 0x23d   :  { %327 = vperm.xlu0 %458, %v319_v33   ;;  %v321_v37 = vmul.f32 %v319_v33, %v268_v63 }
 0x23e   :  { %v463_v35 = vpop.eup %462 }
 0x23f   :  { %v320_v36 = vmul.f32 %v463_v35, %v255_v34  ;;  %v323_v39 = vsub.f32 %v256_v38, %v321_v37 }
 0x241   :  { %332 = vperm.xlu1 %459, %v320_v36   ;;  %v322_v40 = vmul.f32 %v320_v36, %v269_v5 }
 0x243   :  { %v324_v42 = vsub.f32 %v257_v41, %v322_v40 }
 0x245   :  { %345 = vperm.xlu1 %459, %v323_v39  }
 0x249   :  { %350 = vperm.xlu1 %459, %v324_v42  }
 0x2bc   :  { %v328_v43 = vpop.permute.xlu0 %327 }
 0x2bd   :  { %v335_v45 = vmul.f32 %v328_v43, %v722_v48  ;;  %v336_v46 = vmul.f32 %v328_v43, %v724_v49  ;;  %v337_v47 = vmul.f32 %v328_v43, %v726_v50  ;;  %v338_v51 = vmul.f32 %v328_v43, %v730_v52 }
 0x2c0   :  { %v333_v44 = vpop.permute.xlu1 %332 }
 0x2c1   :  { %v339_v62 = vmul.f32 %v333_v44, %v732_v53  ;;  %v340_v63 = vmul.f32 %v333_v44, %v735_v55  ;;  %v341_v0 = vmul.f32 %v333_v44, %v737_v56  ;;  %v342_v1 = vmul.f32 %v333_v44, %v741_v58 }
 0x2c4   :  { %v346_v54 = vpop.permute.xlu1 %345 }
 0x2c5   :  { %v353_v57 = vadd.f32 %v346_v54, %v335_v45  ;;  %v354_v59 = vadd.f32 %v346_v54, %v336_v46  ;;  %v355_v60 = vadd.f32 %v346_v54, %v337_v47  ;;  %v356_v61 = vadd.f32 %v346_v54, %v338_v51 }
 0x2c7   :  { %v361_v48 = vmax.f32 %v353_v57, 0.0  ;;  %v362_v2 = vmax.f32 %v354_v59, 0.0  ;;  %v363_v49 = vmax.f32 %v355_v60, 0.0  ;;  %v364_v3 = vmax.f32 %v356_v61, 0.0 }
 0x2c8   :  { %v351_v50 = vpop.permute.xlu1 %350 }
 0x2c9   :  { %369 = vst [vmem:[%s802_s4] sm:$0xff] %v361_v48  ;;  %370 = vst [vmem:[%s802_s4 + $0x8] sm:$0xff] %v362_v2  ;;  %v357_v52 = vadd.f32 %v351_v50, %v339_v62  ;;  %v358_v53 = vadd.f32 %v351_v50, %v340_v63  ;;  %v359_v55 = vadd.f32 %v351_v50, %v341_v0 }
 0x2ca   :  { %371 = vst [vmem:[%s802_s4 + $0x10] sm:$0xff] %v363_v49  ;;  %372 = vst [vmem:[%s802_s4 + $0x18] sm:$0xff] %v364_v3  ;;  %v360_v56 = vadd.f32 %v351_v50, %v342_v1 }
 0x2cb   :  { %v365_v58 = vmax.f32 %v357_v52, 0.0  ;;  %v366_v4 = vmax.f32 %v358_v53, 0.0  ;;  %v367_v5 = vmax.f32 %v359_v55, 0.0 }
 0x2cc   :  { %v368_v6 = vmax.f32 %v360_v56, 0.0 }
 0x2cd   :  { %373 = vst [vmem:[%s802_s4 + $0x20] sm:$0xff] %v365_v58  ;;  %374 = vst [vmem:[%s802_s4 + $0x28] sm:$0xff] %v366_v4 }
 0x2ce   :  { %375 = vst [vmem:[%s802_s4 + $0x30] sm:$0xff] %v367_v5  ;;  %376 = vst [vmem:[%s802_s4 + $0x38] sm:$0xff] %v368_v6 }

// kernel: _lambda_.14
= control target key start
LH: loop header
LB: loop body
LE: loop exit
PB: predicated region body
PF: predicated region fallthrough
CT: control target
= control target key end

     0   :  { %v329_v0 = vmov 0.0|0.0   ;;  %vm43_vm0 = vcmask 130048   ;;  %v330_v60 = vmov 0   ;;  %s512_s0 = inlined_call_operand.vmem [shape: f32[144,128], index: 0, kind: input, shape index: {}]   ;;  %s513_s1 = inlined_call_operand.vmem [shape: f32[32,144], index: 1, kind: input, shape index: {}]   ;;  %s514_s2 = inlined_call_operand.vmem [shape: f32[32,1], index: 2, kind: input, shape index: {}]   ;;  %s515_s3 = inlined_call_operand.vmem [shape: f32[32,1], index: 3, kind: input, shape index: {}]   ;;  %s516_s4 = inlined_call_operand.vmem [shape: f32[32,128], index: 4, kind: output, shape index: {}]  }
   0x1   :  { %272 = vmatprep.subr.bf16.mxu0 %v329_v0  ;;  %299 = vmatprep.subr.bf16.mxu1 %v329_v0  ;;  %v25_v1 = vld [vmem:[%s512_s0] sm:$0xff]  ;;  %v26_v2 = vld [vmem:[%s512_s0 + $0x8] sm:$0xff]  ;;  %v27_v3 = vld [vmem:[%s512_s0 + $0x10] sm:$0xff] }
   0x2   :  { %v273_v4 = vpack.c.bf16 %v26_v2, %v25_v1  ;;  %v28_v5 = vld [vmem:[%s512_s0 + $0x18] sm:$0xff]  ;;  %v29_v7 = vld [vmem:[%s512_s0 + $0x20] sm:$0xff]  ;;  %v30_v8 = vld [vmem:[%s512_s0 + $0x28] sm:$0xff]  ;;  %319 = vset.pattern.permute.xlu0 %v330_v60  ;;  %320 = vset.pattern.permute.xlu1 %v330_v60 }
   0x3   :  { %v276_v6 = vpack.c.bf16 %v28_v5, %v27_v3  ;;  %v18_v9 = vld [vmem:[%s513_s1 + $0x8] sm:$0xff]  ;;  %v279_v11 = vpack.c.bf16 %v30_v8, %v29_v7  ;;  %v31_v12 = vld [vmem:[%s512_s0 + $0x30] sm:$0xff]  ;;  %v32_v13 = vld [vmem:[%s512_s0 + $0x38] sm:$0xff] }
   0x4   :  { %274 = vmatpush1.bf16.msra.mxu0 %v273_v4  ;;  %308 = vmatpush1.bf16.msra.mxu1 %v273_v4  ;;  %v22_v10 = vld [vmem:[%s513_s1 + $0x28] sm:$0xff]  ;;  %v282_v14 = vpack.c.bf16 %v32_v13, %v31_v12  ;;  %v33_v15 = vld [vmem:[%s512_s0 + $0x40] sm:$0xff]  ;;  %v35_v18 = vld [vmem:[%s512_s0 + $0x50] sm:$0xff] }
   0x5   :  { %275 = vmatprep.subr.bf16.mxu0 %v329_v0  ;;  %300 = vmatprep.subr.bf16.mxu1 %v329_v0  ;;  %v34_v16 = vld [vmem:[%s512_s0 + $0x48] sm:$0xff]  ;;  %v36_v19 = vld [vmem:[%s512_s0 + $0x58] sm:$0xff]  ;;  %v37_v21 = vld [vmem:[%s512_s0 + $0x60] sm:$0xff] }
   0x6   :  { %268 = vmatprep.mubr.msk.f32.mxu0 %vm43_vm0, %v18_v9  ;;  %270 = vmatprep.mubr.msk.f32.mxu1 %vm43_vm0, %v22_v10  ;;  %v285_v17 = vpack.c.bf16 %v34_v16, %v33_v15  ;;  %v288_v20 = vpack.c.bf16 %v36_v19, %v35_v18  ;;  %v38_v22 = vld [vmem:[%s512_s0 + $0x68] sm:$0xff]  ;;  %v39_v24 = vld [vmem:[%s512_s0 + $0x70] sm:$0xff]  ;;  %v40_v25 = vld [vmem:[%s512_s0 + $0x78] sm:$0xff] }
   0x7   :  { %v291_v23 = vpack.c.bf16 %v38_v22, %v37_v21  ;;  %v294_v26 = vpack.c.bf16 %v40_v25, %v39_v24  ;;  %v41_v27 = vld [vmem:[%s512_s0 + $0x80] sm:$0xff]  ;;  %v42_v28 = vld [vmem:[%s512_s0 + $0x88] sm:$0xff]  ;;  %v20_v32 = vld [vmem:[%s513_s1 + $0x18] sm:$0xff] }
   0x8   :  { %277 = vmatpush1.bf16.msra.mxu0 %v276_v6  ;;  %309 = vmatpush1.bf16.msra.mxu1 %v276_v6  ;;  %v297_v29 = vpack.c.bf16 %v42_v28, %v41_v27  ;;  %v17_v30 = vld [vmem:[%s513_s1] sm:$0xff]  ;;  %v24_v33 = vld [vmem:[%s513_s1 + $0x38] sm:$0xff]  ;;  %v19_v34 = vld [vmem:[%s513_s1 + $0x10] sm:$0xff] }
   0x9   :  { %278 = vmatprep.subr.bf16.mxu0 %v329_v0  ;;  %301 = vmatprep.subr.bf16.mxu1 %v329_v0  ;;  %v21_v31 = vld [vmem:[%s513_s1 + $0x20] sm:$0xff]  ;;  %v23_v35 = vld [vmem:[%s513_s1 + $0x30] sm:$0xff]  ;;  %v142_v16 = vld [vmem:[%s514_s2 + $0x8] sm:$0xff] }
   0xa   :  { %v141_v9 = vld [vmem:[%s514_s2] sm:$0xff]  ;;  %v143_v12 = vld [vmem:[%s514_s2 + $0x10] sm:$0xff]  ;;  %v144_v19 = vld [vmem:[%s514_s2 + $0x18] sm:$0xff] }
   0xb   :  { %v145_v22 = vld [vmem:[%s515_s3] sm:$0xff]  ;;  %v147_v25 = vld [vmem:[%s515_s3 + $0x10] sm:$0xff]  ;;  %v146_v28 = vld [vmem:[%s515_s3 + $0x8] sm:$0xff] }
   0xc   :  { %280 = vmatpush1.bf16.msra.mxu0 %v279_v11  ;;  %310 = vmatpush1.bf16.msra.mxu1 %v279_v11 }
   0xd   :  { %281 = vmatprep.subr.bf16.mxu0 %v329_v0  ;;  %302 = vmatprep.subr.bf16.mxu1 %v329_v0 }
  0x10   :  { %283 = vmatpush1.bf16.msra.mxu0 %v282_v14  ;;  %311 = vmatpush1.bf16.msra.mxu1 %v282_v14 }
  0x11   :  { %284 = vmatprep.subr.bf16.mxu0 %v329_v0  ;;  %303 = vmatprep.subr.bf16.mxu1 %v329_v0 }
  0x14   :  { %286 = vmatpush1.bf16.msra.mxu0 %v285_v17  ;;  %312 = vmatpush1.bf16.msra.mxu1 %v285_v17 }
  0x15   :  { %287 = vmatprep.subr.bf16.mxu0 %v329_v0  ;;  %304 = vmatprep.subr.bf16.mxu1 %v329_v0 }
  0x18   :  { %289 = vmatpush1.bf16.msra.mxu0 %v288_v20  ;;  %313 = vmatpush1.bf16.msra.mxu1 %v288_v20 }
  0x19   :  { %290 = vmatprep.subr.bf16.mxu0 %v329_v0  ;;  %305 = vmatprep.subr.bf16.mxu1 %v329_v0 }
  0x1c   :  { %292 = vmatpush1.bf16.msra.mxu0 %v291_v23  ;;  %314 = vmatpush1.bf16.msra.mxu1 %v291_v23 }
  0x1d   :  { %293 = vmatprep.subr.bf16.mxu0 %v329_v0  ;;  %306 = vmatprep.subr.bf16.mxu1 %v329_v0 }
  0x20   :  { %295 = vmatpush1.bf16.msra.mxu0 %v294_v26  ;;  %315 = vmatpush1.bf16.msra.mxu1 %v294_v26 }
  0x21   :  { %296 = vmatprep.subr.bf16.mxu0 %v329_v0  ;;  %307 = vmatprep.subr.bf16.mxu1 %v329_v0 }
  0x24   :  { %298 = vmatpush1.bf16.msra.mxu0 %v297_v29  ;;  %316 = vmatpush1.bf16.msra.mxu1 %v297_v29 }
  0x27   :  { %121 = vmatmul.mubr.f32.vlgmr.msra.gmra.mrb[0].mxu0 %v17_v30  ;;  %131 = vmatmul.mubr.f32.vlgmr.msra.gmra.mrb[0].mxu1 %v21_v31  ;;  %v148_v31 = vld [vmem:[%s515_s3 + $0x18] sm:$0xff] }
  0x28   :  { %269 = vmatprep.mubr.msk.f32.mxu0 %vm43_vm0, %v20_v32  ;;  %271 = vmatprep.mubr.msk.f32.mxu1 %vm43_vm0, %v24_v33 }
  0x2b   :  { %126 = vmatmul.mubr.f32.gmra.mrb[2].mxu0 %v19_v34  ;;  %136 = vmatmul.mubr.f32.gmra.mrb[2].mxu1 %v23_v35 }
  0xfa   :  { %v456_v36 = vpop.f32.mrb[0].mxu0  ;;  %v458_v37 = vpop.f32.mrb[0].mxu1 }
  0xfb   :  { %153 = vadd.xlane.f32.xlu1 %v458_v37  ;;  %149 = vadd.xlane.f32.xlu0 %v456_v36  ;;  %v124_v38 = vpop.f32.mrb[1].mxu0  ;;  %v134_v39 = vpop.f32.mrb[1].mxu1 }
  0xfe   :  { %v462_v40 = vpop.f32.mrb[2].mxu0  ;;  %v464_v41 = vpop.f32.mrb[2].mxu1 }
  0xff   :  { %155 = vadd.xlane.f32.xlu1 %v464_v41  ;;  %151 = vadd.xlane.f32.xlu0 %v462_v40  ;;  %v129_v42 = vpop.f32.mrb[3].mxu0  ;;  %v139_v43 = vpop.f32.mrb[3].mxu1 }
 0x188   :  { %v154_v44 = vpop.xlane.xlu1 %153  ;;  %v150_v45 = vpop.xlane.xlu0 %149 }
 0x189   :  { %v159_v46 = vmul.f32 0.0078125, %v154_v44  ;;  %v157_v47 = vmul.f32 0.0078125, %v150_v45 }
 0x18b   :  { %v164_v48 = vsub.f32 %v456_v36, %v157_v47  ;;  %v166_v54 = vsub.f32 %v458_v37, %v159_v46 }
 0x18c   :  { %v156_v49 = vpop.xlane.xlu1 %155  ;;  %v152_v50 = vpop.xlane.xlu0 %151 }
 0x18d   :  { %v160_v51 = vmul.f32 0.0078125, %v156_v49  ;;  %v158_v52 = vmul.f32 0.0078125, %v152_v50  ;;  %v172_v53 = vmul.f32 %v164_v48, %v164_v48  ;;  %v174_v56 = vmul.f32 %v166_v54, %v166_v54 }
 0x18f   :  { %176 = vadd.xlane.f32.xlu0 %v172_v53  ;;  %v165_v55 = vsub.f32 %v462_v40, %v158_v52  ;;  %v167_v58 = vsub.f32 %v464_v41, %v160_v51 }
 0x191   :  { %v173_v57 = vmul.f32 %v165_v55, %v165_v55  ;;  %v175_v59 = vmul.f32 %v167_v58, %v167_v58 }
 0x193   :  { %180 = vadd.xlane.f32.xlu0 %v174_v56  ;;  %178 = vadd.xlane.f32.xlu1 %v173_v57 }
 0x197   :  { %182 = vadd.xlane.f32.xlu1 %v175_v59 }
 0x21c   :  { %v177_v61 = vpop.xlane.xlu0 %176 }
 0x21d   :  { %v184_v62 = vmul.f32 0.0078125, %v177_v61 }
 0x21f   :  { %v188_v63 = vadd.f32 1e-05, %v184_v62 }
 0x220   :  { %v179_v0 = vpop.xlane.xlu1 %178  ;;  %v181_v1 = vpop.xlane.xlu0 %180 }
 0x221   :  { %321 = vrsqrt.f32 %v188_v63  ;;  %v185_v2 = vmul.f32 0.0078125, %v179_v0  ;;  %v186_v3 = vmul.f32 0.0078125, %v181_v1 }
 0x223   :  { %v190_v4 = vadd.f32 1e-05, %v186_v3  ;;  %v189_v5 = vadd.f32 1e-05, %v185_v2 }
 0x224   :  { %v183_v6 = vpop.xlane.xlu1 %182 }
 0x225   :  { %v187_v7 = vmul.f32 0.0078125, %v183_v6  ;;  %323 = vrsqrt.f32 %v190_v4 }
 0x226   :  { %325 = vrsqrt.f32 %v189_v5 }
 0x227   :  { %v191_v8 = vadd.f32 1e-05, %v187_v7 }
 0x229   :  { %327 = vrsqrt.f32 %v191_v8 }
 0x22b   :  { %v322_v10 = vpop.eup %321 }
 0x22c   :  { %v196_v11 = vmul.f32 %v322_v10, %v141_v9 }
 0x22e   :  { %210 = vperm.xlu0 %319, %v196_v11   ;;  %v200_v21 = vmul.f32 %v196_v11, %v157_v47 }
 0x22f   :  { %v324_v13 = vpop.eup %323 }
 0x230   :  { %v198_v14 = vmul.f32 %v324_v13, %v143_v12  ;;  %v326_v15 = vpop.eup %325  ;;  %v204_v23 = vsub.f32 %v145_v22, %v200_v21 }
 0x231   :  { %v197_v17 = vmul.f32 %v326_v15, %v142_v16 }
 0x232   :  { %220 = vperm.xlu1 %320, %v198_v14   ;;  %v202_v24 = vmul.f32 %v198_v14, %v159_v46 }
 0x233   :  { %v328_v18 = vpop.eup %327  ;;  %v201_v27 = vmul.f32 %v197_v17, %v158_v52 }
 0x234   :  { %v199_v20 = vmul.f32 %v328_v18, %v144_v19  ;;  %v206_v26 = vsub.f32 %v147_v25, %v202_v24 }
 0x235   :  { %v205_v29 = vsub.f32 %v146_v28, %v201_v27 }
 0x236   :  { %215 = vperm.xlu1 %320, %v197_v17   ;;  %v203_v30 = vmul.f32 %v199_v20, %v160_v51 }
 0x238   :  { %v207_v32 = vsub.f32 %v148_v31, %v203_v30 }
 0x23a   :  { %225 = vperm.xlu1 %320, %v199_v20  }
 0x23e   :  { %234 = vperm.xlu1 %320, %v204_v23  }
 0x242   :  { %244 = vperm.xlu1 %320, %v206_v26  }
 0x246   :  { %239 = vperm.xlu1 %320, %v205_v29  }
 0x24a   :  { %249 = vperm.xlu1 %320, %v207_v32  }
 0x2ad   :  { %v211_v35 = vpop.permute.xlu0 %210 }
 0x2ae   :  { %v228_v39 = vmul.f32 %v211_v35, %v456_v36 }
 0x2b1   :  { %v221_v33 = vpop.permute.xlu1 %220 }
 0x2b2   :  { %v230_v44 = vmul.f32 %v221_v33, %v458_v37 }
 0x2b5   :  { %v216_v34 = vpop.permute.xlu1 %215 }
 0x2b6   :  { %v229_v48 = vmul.f32 %v216_v34, %v462_v40 }
 0x2b9   :  { %v226_v38 = vpop.permute.xlu1 %225 }
 0x2ba   :  { %v231_v51 = vmul.f32 %v226_v38, %v464_v41 }
 0x2bd   :  { %v235_v42 = vpop.permute.xlu1 %234 }
 0x2be   :  { %v252_v43 = vadd.f32 %v235_v42, %v228_v39 }
 0x2c0   :  { %v256_v45 = vmax.f32 %v252_v43, 0.0 }
 0x2c1   :  { %v245_v46 = vpop.permute.xlu1 %244 }
 0x2c2   :  { %260 = vst [vmem:[%s516_s4] sm:$0xff] %v256_v45  ;;  %v254_v47 = vadd.f32 %v245_v46, %v230_v44 }
 0x2c4   :  { %v258_v49 = vmax.f32 %v254_v47, 0.0 }
 0x2c5   :  { %v240_v50 = vpop.permute.xlu1 %239 }
 0x2c6   :  { %262 = vst [vmem:[%s516_s4 + $0x10] sm:$0xff] %v258_v49  ;;  %v253_v36 = vadd.f32 %v240_v50, %v229_v48 }
 0x2c8   :  { %v257_v52 = vmax.f32 %v253_v36, 0.0 }
 0x2c9   :  { %v250_v37 = vpop.permute.xlu1 %249 }
 0x2ca   :  { %261 = vst [vmem:[%s516_s4 + $0x8] sm:$0xff] %v257_v52  ;;  %v255_v53 = vadd.f32 %v250_v37, %v231_v51 }
 0x2cc   :  { %v259_v54 = vmax.f32 %v255_v53, 0.0 }
 0x2ce   :  { %263 = vst [vmem:[%s516_s4 + $0x18] sm:$0xff] %v259_v54 }

// kernel: _lambda_.15
= control target key start
LH: loop header
LB: loop body
LE: loop exit
PB: predicated region body
PF: predicated region fallthrough
CT: control target
= control target key end

     0   :  { %vm68_vm0 = vcmask 261120   ;;  %s754_s0 = inlined_call_operand.vmem [shape: f32[288,128], index: 0, kind: input, shape index: {}]   ;;  %s755_s1 = inlined_call_operand.vmem [shape: f32[32,288], index: 1, kind: input, shape index: {}]   ;;  %s756_s2 = inlined_call_operand.vmem [shape: f32[32,1], index: 2, kind: input, shape index: {}]   ;;  %s757_s3 = inlined_call_operand.vmem [shape: f32[32,1], index: 3, kind: input, shape index: {}]   ;;  %s758_s4 = inlined_call_operand.vmem [shape: f32[32,128], index: 4, kind: input, shape index: {}]   ;;  %s759_s5 = inlined_call_operand.vmem [shape: f32[32,128], index: 5, kind: output, shape index: {}]  }
   0x1   :  { %v48_v0 = vld [vmem:[%s754_s0 + $0x80] sm:$0xff]  ;;  %v49_v1 = vld [vmem:[%s754_s0 + $0x88] sm:$0xff]  ;;  %v50_v5 = vld [vmem:[%s754_s0 + $0x90] sm:$0xff] }
   0x2   :  { %v32_v2 = vld [vmem:[%s754_s0] sm:$0xff]  ;;  %v456_v3 = vpack.c.bf16 %v49_v1, %v48_v0  ;;  %v33_v4 = vld [vmem:[%s754_s0 + $0x8] sm:$0xff]  ;;  %v51_v6 = vld [vmem:[%s754_s0 + $0x98] sm:$0xff] }
   0x3   :  { %v458_v7 = vpack.c.bf16 %v33_v4, %v32_v2  ;;  %v460_v8 = vpack.c.bf16 %v51_v6, %v50_v5  ;;  %v34_v9 = vld [vmem:[%s754_s0 + $0x10] sm:$0xff]  ;;  %v35_v10 = vld [vmem:[%s754_s0 + $0x18] sm:$0xff]  ;;  %v52_v11 = vld [vmem:[%s754_s0 + $0xa0] sm:$0xff] }
   0x4   :  { %457 = vmatprep.subr.bf16.mxu0 %v456_v3  ;;  %v53_v12 = vld [vmem:[%s754_s0 + $0xa8] sm:$0xff]  ;;  %v462_v13 = vpack.c.bf16 %v35_v10, %v34_v9  ;;  %v36_v15 = vld [vmem:[%s754_s0 + $0x20] sm:$0xff]  ;;  %v54_v17 = vld [vmem:[%s754_s0 + $0xb0] sm:$0xff] }
   0x5   :  { %459 = vmatpush3.bf16.msra.mxu0 %v458_v7  ;;  %v464_v14 = vpack.c.bf16 %v53_v12, %v52_v11  ;;  %v37_v16 = vld [vmem:[%s754_s0 + $0x28] sm:$0xff]  ;;  %v55_v18 = vld [vmem:[%s754_s0 + $0xb8] sm:$0xff]  ;;  %v38_v20 = vld [vmem:[%s754_s0 + $0x30] sm:$0xff] }
   0x6   :  { %461 = vmatprep.subr.bf16.mxu0 %v460_v8  ;;  %v466_v19 = vpack.c.bf16 %v37_v16, %v36_v15  ;;  %v468_v21 = vpack.c.bf16 %v55_v18, %v54_v17  ;;  %v39_v22 = vld [vmem:[%s754_s0 + $0x38] sm:$0xff]  ;;  %v64_v23 = vld [vmem:[%s754_s0 + $0x100] sm:$0xff]  ;;  %v65_v24 = vld [vmem:[%s754_s0 + $0x108] sm:$0xff] }
   0x7   :  { %v56_v25 = vld [vmem:[%s754_s0 + $0xc0] sm:$0xff]  ;;  %v57_v26 = vld [vmem:[%s754_s0 + $0xc8] sm:$0xff]  ;;  %v488_v27 = vpack.c.bf16 %v65_v24, %v64_v23  ;;  %v66_v28 = vld [vmem:[%s754_s0 + $0x110] sm:$0xff]  ;;  %v470_v30 = vpack.c.bf16 %v39_v22, %v38_v20 }
   0x8   :  { %v67_v29 = vld [vmem:[%s754_s0 + $0x118] sm:$0xff]  ;;  %v21_v32 = vld [vmem:[%s755_s1 + $0x8] sm:$0xff]  ;;  %v22_v33 = vld [vmem:[%s755_s1 + $0x10] sm:$0xff]  ;;  %v472_v34 = vpack.c.bf16 %v57_v26, %v56_v25 }
   0x9   :  { %463 = vmatpush3.bf16.msra.mxu0 %v462_v13  ;;  %489 = vmatprep.subr.bf16.mxu1 %v488_v27  ;;  %v492_v31 = vpack.c.bf16 %v67_v29, %v66_v28  ;;  %v40_v35 = vld [vmem:[%s754_s0 + $0x40] sm:$0xff]  ;;  %v41_v36 = vld [vmem:[%s754_s0 + $0x48] sm:$0xff]  ;;  %v58_v37 = vld [vmem:[%s754_s0 + $0xd0] sm:$0xff] }
   0xa   :  { %465 = vmatprep.subr.bf16.mxu0 %v464_v14  ;;  %491 = vmatpush3.bf16.msra.mxu1 %v488_v27  ;;  %v59_v38 = vld [vmem:[%s754_s0 + $0xd8] sm:$0xff]  ;;  %v474_v39 = vpack.c.bf16 %v41_v36, %v40_v35  ;;  %v42_v41 = vld [vmem:[%s754_s0 + $0x50] sm:$0xff]  ;;  %v25_v43 = vld [vmem:[%s755_s1 + $0x28] sm:$0xff] }
   0xb   :  { %493 = vmatprep.subr.bf16.mxu1 %v492_v31  ;;  %145 = vmatprep.mubr.f32.mxu0 %v21_v32  ;;  %v476_v40 = vpack.c.bf16 %v59_v38, %v58_v37  ;;  %v43_v42 = vld [vmem:[%s754_s0 + $0x58] sm:$0xff]  ;;  %v60_v44 = vld [vmem:[%s754_s0 + $0xe0] sm:$0xff]  ;;  %v61_v45 = vld [vmem:[%s754_s0 + $0xe8] sm:$0xff]  ;;  %v507_v38 = vmov 0  }
   0xc   :  { %450 = vmatprep.mubr.msk.f32.mxu1 %vm68_vm0, %v22_v33  ;;  %v28_v46 = vld [vmem:[%s755_s1 + $0x40] sm:$0xff]  ;;  %v478_v47 = vpack.c.bf16 %v43_v42, %v42_v41  ;;  %v480_v48 = vpack.c.bf16 %v61_v45, %v60_v44  ;;  %v45_v50 = vld [vmem:[%s754_s0 + $0x68] sm:$0xff]  ;;  %v31_v51 = vld [vmem:[%s755_s1 + $0x58] sm:$0xff]  ;;  %497 = vset.pattern.permute.xlu0 %v507_v38 }
   0xd   :  { %467 = vmatpush3.bf16.msra.mxu0 %v466_v19  ;;  %v44_v49 = vld [vmem:[%s754_s0 + $0x60] sm:$0xff]  ;;  %v62_v52 = vld [vmem:[%s754_s0 + $0xf0] sm:$0xff]  ;;  %v63_v53 = vld [vmem:[%s754_s0 + $0xf8] sm:$0xff]  ;;  %498 = vset.pattern.permute.xlu1 %v507_v38 }
   0xe   :  { %469 = vmatprep.subr.bf16.mxu0 %v468_v21  ;;  %495 = vmatpush3.bf16.msra.mxu1 %v492_v31  ;;  %v482_v54 = vpack.c.bf16 %v45_v50, %v44_v49  ;;  %v484_v55 = vpack.c.bf16 %v63_v53, %v62_v52  ;;  %v46_v56 = vld [vmem:[%s754_s0 + $0x70] sm:$0xff]  ;;  %v47_v57 = vld [vmem:[%s754_s0 + $0x78] sm:$0xff]  ;;  %v20_v59 = vld [vmem:[%s755_s1] sm:$0xff] }
   0xf   :  { %v486_v58 = vpack.c.bf16 %v47_v57, %v46_v56  ;;  %v24_v60 = vld [vmem:[%s755_s1 + $0x20] sm:$0xff]  ;;  %v23_v61 = vld [vmem:[%s755_s1 + $0x18] sm:$0xff]  ;;  %v26_v63 = vld [vmem:[%s755_s1 + $0x30] sm:$0xff] }
  0x10   :  { %v27_v62 = vld [vmem:[%s755_s1 + $0x38] sm:$0xff]  ;;  %v30_v0 = vld [vmem:[%s755_s1 + $0x50] sm:$0xff]  ;;  %v29_v1 = vld [vmem:[%s755_s1 + $0x48] sm:$0xff] }
  0x11   :  { %471 = vmatpush3.bf16.msra.mxu0 %v470_v30  ;;  %451 = vmatmul.mubr.msk.f32.vlgmr.msra.gmra.mrb[0].mxu1 %vm68_vm0, %v25_v43  ;;  %v251_v49 = vld [vmem:[%s756_s2] sm:$0xff]  ;;  %v252_v53 = vld [vmem:[%s756_s2 + $0x8] sm:$0xff] }
  0x12   :  { %473 = vmatprep.subr.bf16.mxu0 %v472_v34  ;;  %453 = vmatprep.mubr.msk.f32.mxu1 %vm68_vm0, %v28_v46 }
  0x15   :  { %475 = vmatpush3.bf16.msra.mxu0 %v474_v39  ;;  %454 = vmatmul.mubr.msk.f32.gmra.mrb[2].mxu1 %vm68_vm0, %v31_v51 }
  0x16   :  { %477 = vmatprep.subr.bf16.mxu0 %v476_v40 }
  0x19   :  { %479 = vmatpush3.bf16.msra.mxu0 %v478_v47 }
  0x1a   :  { %481 = vmatprep.subr.bf16.mxu0 %v480_v48 }
  0x1d   :  { %483 = vmatpush3.bf16.msra.mxu0 %v482_v54 }
  0x1e   :  { %485 = vmatprep.subr.bf16.mxu0 %v484_v55 }
  0x21   :  { %487 = vmatpush3.bf16.msra.mxu0 %v486_v58  ;;  %v255_v58 = vld [vmem:[%s757_s3] sm:$0xff] }
  0x24   :  { %146 = vmatmul.mubr.f32.vlgmr.msra.gmra.mrb[0].mxu0 %v20_v59 }
  0x25   :  { %150 = vmatprep.mubr.f32.mxu0 %v24_v60 }
  0x28   :  { %151 = vmatmul.mubr.f32.gmra.mrb[2].mxu0 %v23_v61  ;;  %v253_v61 = vld [vmem:[%s756_s2 + $0x10] sm:$0xff] }
  0x29   :  { %155 = vmatprep.mubr.f32.mxu0 %v27_v62 }
  0x2c   :  { %156 = vmatmul.mubr.f32.gmra.mrb[4].mxu0 %v26_v63 }
  0x2d   :  { %160 = vmatprep.mubr.f32.mxu0 %v30_v0  ;;  %v256_v0 = vld [vmem:[%s757_s3 + $0x8] sm:$0xff] }
  0x30   :  { %161 = vmatmul.mubr.f32.gmra.mrb[6].mxu0 %v29_v1 }
  0xe4   :  { %v452_v2 = vpop.f32.mrb[0].mxu1 }
  0xe5   :  { %v232_v3 = vpop.f32.mrb[1].mxu1 }
  0xe8   :  { %v455_v4 = vpop.f32.mrb[2].mxu1 }
  0xe9   :  { %v242_v5 = vpop.f32.mrb[3].mxu1 }
  0xf7   :  { %v422_v6 = vpop.f32.mrb[0].mxu0 }
  0xf8   :  { %v423_v7 = vpop.f32.mrb[1].mxu0 }
  0xf9   :  { %v424_v8 = vadd.f32 %v423_v7, %v422_v6  ;;  %v257_v6 = vld [vmem:[%s757_s3 + $0x10] sm:$0xff] }
  0xfb   :  { %v686_v9 = vadd.f32 %v424_v8, %v232_v3  ;;  %v425_v10 = vpop.f32.mrb[2].mxu0  ;;  %v254_v3 = vld [vmem:[%s756_s2 + $0x18] sm:$0xff] }
  0xfc   :  { %v426_v11 = vpop.f32.mrb[3].mxu0 }
  0xfd   :  { %v427_v12 = vadd.f32 %v426_v11, %v425_v10  ;;  %263 = vadd.xlane.f32.xlu0 %v686_v9  ;;  %v258_v10 = vld [vmem:[%s757_s3 + $0x18] sm:$0xff] }
  0xff   :  { %v689_v13 = vadd.f32 %v452_v2, %v427_v12  ;;  %v428_v14 = vpop.f32.mrb[4].mxu0 }
 0x100   :  { %v429_v15 = vpop.f32.mrb[5].mxu0 }
 0x101   :  { %v430_v16 = vadd.f32 %v429_v15, %v428_v14  ;;  %265 = vadd.xlane.f32.xlu0 %v689_v13 }
 0x103   :  { %v692_v17 = vadd.f32 %v430_v16, %v242_v5  ;;  %v431_v18 = vpop.f32.mrb[6].mxu0  ;;  %v259_v16 = vld [vmem:[%s758_s4] sm:$0xff] }
 0x104   :  { %v432_v19 = vpop.f32.mrb[7].mxu0 }
 0x105   :  { %v433_v20 = vadd.f32 %v432_v19, %v431_v18  ;;  %267 = vadd.xlane.f32.xlu1 %v692_v17 }
 0x107   :  { %v695_v21 = vadd.f32 %v455_v4, %v433_v20 }
 0x109   :  { %269 = vadd.xlane.f32.xlu1 %v695_v21 }
 0x18a   :  { %v264_v22 = vpop.xlane.xlu0 %263 }
 0x18b   :  { %v271_v23 = vmul.f32 0.0078125, %v264_v22 }
 0x18d   :  { %v278_v24 = vsub.f32 %v686_v9, %v271_v23 }
 0x18e   :  { %v266_v25 = vpop.xlane.xlu0 %265 }
 0x18f   :  { %v272_v26 = vmul.f32 0.0078125, %v266_v25  ;;  %v286_v27 = vmul.f32 %v278_v24, %v278_v24  ;;  %v260_v25 = vld [vmem:[%s758_s4 + $0x8] sm:$0xff] }
 0x191   :  { %290 = vadd.xlane.f32.xlu0 %v286_v27  ;;  %v279_v28 = vsub.f32 %v689_v13, %v272_v26 }
 0x192   :  { %v268_v29 = vpop.xlane.xlu1 %267 }
 0x193   :  { %v273_v30 = vmul.f32 0.0078125, %v268_v29  ;;  %v287_v31 = vmul.f32 %v279_v28, %v279_v28 }
 0x195   :  { %292 = vadd.xlane.f32.xlu1 %v287_v31  ;;  %v280_v32 = vsub.f32 %v692_v17, %v273_v30 }
 0x196   :  { %v270_v33 = vpop.xlane.xlu1 %269 }
 0x197   :  { %v274_v34 = vmul.f32 0.0078125, %v270_v33  ;;  %v288_v35 = vmul.f32 %v280_v32, %v280_v32 }
 0x199   :  { %294 = vadd.xlane.f32.xlu0 %v288_v35  ;;  %v281_v36 = vsub.f32 %v695_v21, %v274_v34  ;;  %v262_v35 = vld [vmem:[%s758_s4 + $0x18] sm:$0xff] }
 0x19b   :  { %v289_v37 = vmul.f32 %v281_v36, %v281_v36 }
 0x19d   :  { %296 = vadd.xlane.f32.xlu1 %v289_v37 }
 0x21e   :  { %v291_v39 = vpop.xlane.xlu0 %290 }
 0x21f   :  { %v298_v40 = vmul.f32 0.0078125, %v291_v39 }
 0x221   :  { %v302_v41 = vadd.f32 1e-05, %v298_v40 }
 0x222   :  { %v293_v42 = vpop.xlane.xlu1 %292 }
 0x223   :  { %499 = vrsqrt.f32 %v302_v41  ;;  %v299_v43 = vmul.f32 0.0078125, %v293_v42 }
 0x225   :  { %v303_v44 = vadd.f32 1e-05, %v299_v43 }
 0x226   :  { %v295_v45 = vpop.xlane.xlu0 %294 }
 0x227   :  { %501 = vrsqrt.f32 %v303_v44  ;;  %v300_v46 = vmul.f32 0.0078125, %v295_v45 }
 0x229   :  { %v304_v47 = vadd.f32 1e-05, %v300_v46 }
 0x22a   :  { %v297_v48 = vpop.xlane.xlu1 %296 }
 0x22b   :  { %503 = vrsqrt.f32 %v304_v47  ;;  %v301_v51 = vmul.f32 0.0078125, %v297_v48 }
 0x22d   :  { %v500_v50 = vpop.eup %499  ;;  %v305_v55 = vadd.f32 1e-05, %v301_v51 }
 0x22e   :  { %v310_v52 = vmul.f32 %v500_v50, %v251_v49 }
 0x22f   :  { %505 = vrsqrt.f32 %v305_v55 }
 0x230   :  { %324 = vperm.xlu0 %497, %v310_v52   ;;  %v314_v57 = vmul.f32 %v310_v52, %v271_v23 }
 0x231   :  { %v502_v54 = vpop.eup %501 }
 0x232   :  { %v311_v56 = vmul.f32 %v502_v54, %v252_v53  ;;  %v318_v59 = vsub.f32 %v255_v58, %v314_v57 }
 0x234   :  { %329 = vperm.xlu1 %498, %v311_v56   ;;  %v315_v63 = vmul.f32 %v311_v56, %v272_v26 }
 0x235   :  { %v504_v60 = vpop.eup %503 }
 0x236   :  { %v312_v62 = vmul.f32 %v504_v60, %v253_v61  ;;  %v319_v1 = vsub.f32 %v256_v0, %v315_v63 }
 0x238   :  { %348 = vperm.xlu1 %498, %v318_v59   ;;  %v316_v5 = vmul.f32 %v312_v62, %v273_v30 }
 0x239   :  { %v506_v2 = vpop.eup %505 }
 0x23a   :  { %v313_v4 = vmul.f32 %v506_v2, %v254_v3  ;;  %v320_v7 = vsub.f32 %v257_v6, %v316_v5 }
 0x23c   :  { %334 = vperm.xlu1 %498, %v312_v62   ;;  %v317_v8 = vmul.f32 %v313_v4, %v274_v34 }
 0x23e   :  { %v321_v11 = vsub.f32 %v258_v10, %v317_v8 }
 0x240   :  { %353 = vperm.xlu1 %498, %v319_v1  }
 0x244   :  { %339 = vperm.xlu1 %498, %v313_v4  }
 0x248   :  { %358 = vperm.xlu1 %498, %v320_v7  }
 0x24c   :  { %363 = vperm.xlu1 %498, %v321_v11  }
 0x2af   :  { %v325_v12 = vpop.permute.xlu0 %324 }
 0x2b0   :  { %v342_v15 = vmul.f32 %v325_v12, %v686_v9 }
 0x2b3   :  { %v330_v14 = vpop.permute.xlu1 %329 }
 0x2b4   :  { %v343_v24 = vmul.f32 %v330_v14, %v689_v13  ;;  %v261_v13 = vld [vmem:[%s758_s4 + $0x10] sm:$0xff] }
 0x2b7   :  { %v349_v18 = vpop.permute.xlu1 %348 }
 0x2b8   :  { %v366_v19 = vadd.f32 %v349_v18, %v342_v15 }
 0x2ba   :  { %v370_v20 = vadd.f32 %v366_v19, %v259_v16 }
 0x2bb   :  { %v335_v22 = vpop.permute.xlu1 %334 }
 0x2bc   :  { %v374_v23 = vmax.f32 %v370_v20, 0.0  ;;  %v344_v30 = vmul.f32 %v335_v22, %v692_v17 }
 0x2be   :  { %378 = vst [vmem:[%s759_s5] sm:$0xff] %v374_v23 }
 0x2bf   :  { %v354_v9 = vpop.permute.xlu1 %353 }
 0x2c0   :  { %v367_v26 = vadd.f32 %v354_v9, %v343_v24 }
 0x2c2   :  { %v371_v27 = vadd.f32 %v367_v26, %v260_v25 }
 0x2c3   :  { %v340_v28 = vpop.permute.xlu1 %339 }
 0x2c4   :  { %v375_v29 = vmax.f32 %v371_v27, 0.0  ;;  %v345_v33 = vmul.f32 %v340_v28, %v695_v21 }
 0x2c6   :  { %379 = vst [vmem:[%s759_s5 + $0x8] sm:$0xff] %v375_v29 }
 0x2c7   :  { %v359_v31 = vpop.permute.xlu1 %358 }
 0x2c8   :  { %v368_v32 = vadd.f32 %v359_v31, %v344_v30 }
 0x2ca   :  { %v372_v34 = vadd.f32 %v368_v32, %v261_v13 }
 0x2cb   :  { %v364_v36 = vpop.permute.xlu1 %363 }
 0x2cc   :  { %v376_v37 = vmax.f32 %v372_v34, 0.0  ;;  %v369_v17 = vadd.f32 %v364_v36, %v345_v33 }
 0x2ce   :  { %380 = vst [vmem:[%s759_s5 + $0x10] sm:$0xff] %v376_v37  ;;  %v373_v38 = vadd.f32 %v369_v17, %v262_v35 }
 0x2d0   :  { %v377_v39 = vmax.f32 %v373_v38, 0.0 }
 0x2d2   :  { %381 = vst [vmem:[%s759_s5 + $0x18] sm:$0xff] %v377_v39 }

// kernel: _lambda_.13
= control target key start
LH: loop header
LB: loop body
LE: loop exit
PB: predicated region body
PF: predicated region fallthrough
CT: control target
= control target key end

     0   :  { %vm23_vm0 = vcmask 130048   ;;  %v281_v27 = vmov 0   ;;  %s381_s0 = inlined_call_operand.vmem [shape: f32[16,128], index: 0, kind: input, shape index: {}]   ;;  %s382_s1 = inlined_call_operand.vmem [shape: f32[32,16], index: 1, kind: input, shape index: {}]   ;;  %s383_s2 = inlined_call_operand.vmem [shape: f32[32,1], index: 2, kind: input, shape index: {}]   ;;  %s384_s3 = inlined_call_operand.vmem [shape: f32[32,1], index: 3, kind: input, shape index: {}]   ;;  %s385_s4 = inlined_call_operand.vmem [shape: f32[32,128], index: 4, kind: output, shape index: {}]  }
   0x1   :  { %v21_v0 = vld [vmem:[%s381_s0] sm:$0xff]  ;;  %v22_v1 = vld [vmem:[%s381_s0 + $0x8] sm:$0xff]  ;;  %v19_v4 = vld [vmem:[%s382_s1 + $0x10] sm:$0xff]  ;;  %271 = vset.pattern.permute.xlu0 %v281_v27  ;;  %272 = vset.pattern.permute.xlu1 %v281_v27 }
   0x2   :  { %v17_v2 = vld [vmem:[%s382_s1] sm:$0xff]  ;;  %v264_v3 = vpack.c.bf16 %v22_v1, %v21_v0  ;;  %261 = vmatprep.mubr.msk.f32.mxu1 %vm23_vm0, %v19_v4  ;;  %v18_v5 = vld [vmem:[%s382_s1 + $0x8] sm:$0xff]  ;;  %v20_v6 = vld [vmem:[%s382_s1 + $0x18] sm:$0xff] }
   0x3   :  { %258 = vmatprep.mubr.msk.f32.mxu0 %vm23_vm0, %v17_v2  ;;  %v121_v40 = vld [vmem:[%s383_s2] sm:$0xff]  ;;  %v122_v43 = vld [vmem:[%s383_s2 + $0x8] sm:$0xff]  ;;  %v124_v46 = vld [vmem:[%s383_s2 + $0x18] sm:$0xff] }
   0x4   :  { %265 = vmatprep.subr.bf16.mxu0 %v264_v3  ;;  %268 = vmatprep.subr.bf16.mxu1 %v264_v3  ;;  %v123_v50 = vld [vmem:[%s383_s2 + $0x10] sm:$0xff]  ;;  %v126_v53 = vld [vmem:[%s384_s3 + $0x8] sm:$0xff]  ;;  %v125_v56 = vld [vmem:[%s384_s3] sm:$0xff] }
   0x5   :  { %267 = vmatpush3.bf16.msra.mxu0 %v264_v3  ;;  %269 = vmatpush3.bf16.msra.mxu1 %v264_v3  ;;  %v127_v59 = vld [vmem:[%s384_s3 + $0x10] sm:$0xff]  ;;  %v128_v62 = vld [vmem:[%s384_s3 + $0x18] sm:$0xff] }
   0x8   :  { %259 = vmatmul.mubr.msk.f32.vlgmr.msra.gmra.mrb[0].mxu0 %vm23_vm0, %v18_v5  ;;  %262 = vmatmul.mubr.msk.f32.vlgmr.msra.gmra.mrb[0].mxu1 %vm23_vm0, %v20_v6 }
  0xdb   :  { %v325_v7 = vpop.f32.mrb[0].mxu0  ;;  %v327_v8 = vpop.f32.mrb[0].mxu1 }
  0xdc   :  { %v329_v9 = vpop.f32.mrb[1].mxu0  ;;  %v331_v10 = vpop.f32.mrb[1].mxu1 }
  0xdd   :  { %133 = vadd.xlane.f32.xlu1 %v331_v10  ;;  %129 = vadd.xlane.f32.xlu0 %v329_v9 }
  0xe1   :  { %135 = vadd.xlane.f32.xlu1 %v327_v8  ;;  %131 = vadd.xlane.f32.xlu0 %v325_v7 }
 0x16a   :  { %v134_v11 = vpop.xlane.xlu1 %133  ;;  %v130_v12 = vpop.xlane.xlu0 %129 }
 0x16b   :  { %v139_v13 = vmul.f32 0.0078125, %v134_v11  ;;  %v137_v14 = vmul.f32 0.0078125, %v130_v12 }
 0x16d   :  { %v144_v15 = vsub.f32 %v329_v9, %v137_v14  ;;  %v146_v21 = vsub.f32 %v331_v10, %v139_v13 }
 0x16e   :  { %v136_v16 = vpop.xlane.xlu1 %135  ;;  %v132_v17 = vpop.xlane.xlu0 %131 }
 0x16f   :  { %v140_v18 = vmul.f32 0.0078125, %v136_v16  ;;  %v138_v19 = vmul.f32 0.0078125, %v132_v17  ;;  %v152_v20 = vmul.f32 %v144_v15, %v144_v15  ;;  %v154_v23 = vmul.f32 %v146_v21, %v146_v21 }
 0x171   :  { %156 = vadd.xlane.f32.xlu0 %v152_v20  ;;  %v145_v22 = vsub.f32 %v325_v7, %v138_v19  ;;  %v147_v25 = vsub.f32 %v327_v8, %v140_v18 }
 0x173   :  { %v153_v24 = vmul.f32 %v145_v22, %v145_v22  ;;  %v155_v26 = vmul.f32 %v147_v25, %v147_v25 }
 0x175   :  { %160 = vadd.xlane.f32.xlu0 %v154_v23  ;;  %158 = vadd.xlane.f32.xlu1 %v153_v24 }
 0x179   :  { %162 = vadd.xlane.f32.xlu1 %v155_v26 }
 0x1fe   :  { %v157_v28 = vpop.xlane.xlu0 %156 }
 0x1ff   :  { %v164_v29 = vmul.f32 0.0078125, %v157_v28 }
 0x201   :  { %v168_v30 = vadd.f32 1e-05, %v164_v29 }
 0x202   :  { %v159_v31 = vpop.xlane.xlu1 %158  ;;  %v161_v32 = vpop.xlane.xlu0 %160 }
 0x203   :  { %273 = vrsqrt.f32 %v168_v30  ;;  %v165_v33 = vmul.f32 0.0078125, %v159_v31  ;;  %v166_v35 = vmul.f32 0.0078125, %v161_v32 }
 0x205   :  { %v169_v34 = vadd.f32 1e-05, %v165_v33  ;;  %v170_v38 = vadd.f32 1e-05, %v166_v35 }
 0x206   :  { %v163_v36 = vpop.xlane.xlu1 %162 }
 0x207   :  { %275 = vrsqrt.f32 %v169_v34  ;;  %v167_v37 = vmul.f32 0.0078125, %v163_v36 }
 0x209   :  { %v171_v39 = vadd.f32 1e-05, %v167_v37 }
 0x20b   :  { %277 = vrsqrt.f32 %v171_v39 }
 0x20c   :  { %279 = vrsqrt.f32 %v170_v38 }
 0x20d   :  { %v274_v41 = vpop.eup %273 }
 0x20e   :  { %v176_v42 = vmul.f32 %v274_v41, %v121_v40 }
 0x210   :  { %190 = vperm.xlu0 %271, %v176_v42   ;;  %v180_v55 = vmul.f32 %v176_v42, %v137_v14 }
 0x211   :  { %v276_v44 = vpop.eup %275 }
 0x212   :  { %v177_v45 = vmul.f32 %v276_v44, %v122_v43  ;;  %v184_v57 = vsub.f32 %v125_v56, %v180_v55 }
 0x214   :  { %195 = vperm.xlu1 %272, %v177_v45   ;;  %v181_v52 = vmul.f32 %v177_v45, %v138_v19 }
 0x215   :  { %v278_v47 = vpop.eup %277 }
 0x216   :  { %v179_v48 = vmul.f32 %v278_v47, %v124_v46  ;;  %v280_v49 = vpop.eup %279  ;;  %v185_v54 = vsub.f32 %v126_v53, %v181_v52 }
 0x217   :  { %v178_v51 = vmul.f32 %v280_v49, %v123_v50 }
 0x218   :  { %205 = vperm.xlu1 %272, %v179_v48   ;;  %v183_v61 = vmul.f32 %v179_v48, %v140_v18 }
 0x219   :  { %v182_v58 = vmul.f32 %v178_v51, %v139_v13 }
 0x21a   :  { %v187_v63 = vsub.f32 %v128_v62, %v183_v61 }
 0x21b   :  { %v186_v60 = vsub.f32 %v127_v59, %v182_v58 }
 0x21c   :  { %200 = vperm.xlu1 %272, %v178_v51  }
 0x220   :  { %219 = vperm.xlu1 %272, %v185_v54  }
 0x224   :  { %214 = vperm.xlu1 %272, %v184_v57  }
 0x228   :  { %224 = vperm.xlu1 %272, %v186_v60  }
 0x22c   :  { %229 = vperm.xlu1 %272, %v187_v63  }
 0x28f   :  { %v191_v4 = vpop.permute.xlu0 %190 }
 0x290   :  { %v208_v11 = vmul.f32 %v191_v4, %v329_v9 }
 0x293   :  { %v196_v0 = vpop.permute.xlu1 %195 }
 0x294   :  { %v209_v3 = vmul.f32 %v325_v7, %v196_v0 }
 0x297   :  { %v206_v1 = vpop.permute.xlu1 %205 }
 0x298   :  { %v211_v7 = vmul.f32 %v327_v8, %v206_v1 }
 0x29b   :  { %v201_v2 = vpop.permute.xlu1 %200 }
 0x29c   :  { %v210_v14 = vmul.f32 %v201_v2, %v331_v10 }
 0x29f   :  { %v220_v5 = vpop.permute.xlu1 %219 }
 0x2a0   :  { %v233_v6 = vadd.f32 %v220_v5, %v209_v3 }
 0x2a2   :  { %237 = vst [vmem:[%s385_s4 + $0x8] sm:$0xff] %v233_v6 }
 0x2a3   :  { %v215_v12 = vpop.permute.xlu1 %214 }
 0x2a4   :  { %v232_v13 = vadd.f32 %v215_v12, %v208_v11 }
 0x2a6   :  { %236 = vst [vmem:[%s385_s4] sm:$0xff] %v232_v13 }
 0x2a7   :  { %v225_v15 = vpop.permute.xlu1 %224 }
 0x2a8   :  { %v234_v16 = vadd.f32 %v225_v15, %v210_v14 }
 0x2aa   :  { %238 = vst [vmem:[%s385_s4 + $0x10] sm:$0xff] %v234_v16 }
 0x2ab   :  { %v230_v9 = vpop.permute.xlu1 %229 }
 0x2ac   :  { %v235_v17 = vadd.f32 %v230_v9, %v211_v7 }
 0x2ae   :  { %239 = vst [vmem:[%s385_s4 + $0x18] sm:$0xff] %v235_v17 }

// kernel: _lambda_.17
= control target key start
LH: loop header
LB: loop body
LE: loop exit
PB: predicated region body
PF: predicated region fallthrough
CT: control target
= control target key end

     0   :  { %vm77_vm0 = vcmask 261120   ;;  %s1096_s0 = inlined_call_operand.vmem [shape: f32[288,128], index: 0, kind: input, shape index: {}]   ;;  %s1097_s1 = inlined_call_operand.vmem [shape: f32[64,288], index: 1, kind: input, shape index: {}]   ;;  %s1098_s2 = inlined_call_operand.vmem [shape: f32[64,1], index: 2, kind: input, shape index: {}]   ;;  %s1099_s3 = inlined_call_operand.vmem [shape: f32[64,1], index: 3, kind: input, shape index: {}]   ;;  %s1100_s4 = inlined_call_operand.vmem [shape: f32[64,128], index: 4, kind: output, shape index: {}]  }
   0x1   :  { %v57_v0 = vld [vmem:[%s1096_s0 + $0x80] sm:$0xff]  ;;  %v58_v1 = vld [vmem:[%s1096_s0 + $0x88] sm:$0xff]  ;;  %v59_v5 = vld [vmem:[%s1096_s0 + $0x90] sm:$0xff] }
   0x2   :  { %v41_v2 = vld [vmem:[%s1096_s0] sm:$0xff]  ;;  %v655_v3 = vpack.c.bf16 %v58_v1, %v57_v0  ;;  %v42_v4 = vld [vmem:[%s1096_s0 + $0x8] sm:$0xff]  ;;  %v60_v6 = vld [vmem:[%s1096_s0 + $0x98] sm:$0xff] }
   0x3   :  { %v657_v7 = vpack.c.bf16 %v42_v4, %v41_v2  ;;  %v659_v8 = vpack.c.bf16 %v60_v6, %v59_v5  ;;  %v43_v9 = vld [vmem:[%s1096_s0 + $0x10] sm:$0xff]  ;;  %v44_v10 = vld [vmem:[%s1096_s0 + $0x18] sm:$0xff]  ;;  %v61_v11 = vld [vmem:[%s1096_s0 + $0xa0] sm:$0xff] }
   0x4   :  { %656 = vmatprep.subr.bf16.mxu0 %v655_v3  ;;  %695 = vmatprep.subr.bf16.mxu1 %v655_v3  ;;  %v62_v12 = vld [vmem:[%s1096_s0 + $0xa8] sm:$0xff]  ;;  %v661_v13 = vpack.c.bf16 %v44_v10, %v43_v9  ;;  %v45_v15 = vld [vmem:[%s1096_s0 + $0x20] sm:$0xff]  ;;  %v63_v17 = vld [vmem:[%s1096_s0 + $0xb0] sm:$0xff] }
   0x5   :  { %658 = vmatpush3.bf16.msra.mxu0 %v657_v7  ;;  %703 = vmatpush3.bf16.msra.mxu1 %v657_v7  ;;  %v663_v14 = vpack.c.bf16 %v62_v12, %v61_v11  ;;  %v46_v16 = vld [vmem:[%s1096_s0 + $0x28] sm:$0xff]  ;;  %v64_v18 = vld [vmem:[%s1096_s0 + $0xb8] sm:$0xff]  ;;  %v47_v21 = vld [vmem:[%s1096_s0 + $0x30] sm:$0xff] }
   0x6   :  { %660 = vmatprep.subr.bf16.mxu0 %v659_v8  ;;  %696 = vmatprep.subr.bf16.mxu1 %v659_v8  ;;  %v665_v19 = vpack.c.bf16 %v46_v16, %v45_v15  ;;  %v667_v20 = vpack.c.bf16 %v64_v18, %v63_v17  ;;  %v48_v22 = vld [vmem:[%s1096_s0 + $0x38] sm:$0xff]  ;;  %v65_v23 = vld [vmem:[%s1096_s0 + $0xc0] sm:$0xff]  ;;  %v66_v24 = vld [vmem:[%s1096_s0 + $0xc8] sm:$0xff] }
   0x7   :  { %v18_v25 = vld [vmem:[%s1097_s1 + $0x8] sm:$0xff]  ;;  %v36_v26 = vld [vmem:[%s1097_s1 + $0x98] sm:$0xff]  ;;  %v669_v27 = vpack.c.bf16 %v48_v22, %v47_v21  ;;  %v671_v28 = vpack.c.bf16 %v66_v24, %v65_v23  ;;  %v49_v29 = vld [vmem:[%s1096_s0 + $0x40] sm:$0xff] }
   0x8   :  { %166 = vmatprep.mubr.f32.mxu0 %v18_v25  ;;  %v50_v30 = vld [vmem:[%s1096_s0 + $0x48] sm:$0xff]  ;;  %v67_v31 = vld [vmem:[%s1096_s0 + $0xd0] sm:$0xff]  ;;  %v68_v32 = vld [vmem:[%s1096_s0 + $0xd8] sm:$0xff]  ;;  %196 = vmatprep.mubr.f32.mxu1 %v36_v26 }
   0x9   :  { %662 = vmatpush3.bf16.msra.mxu0 %v661_v13  ;;  %704 = vmatpush3.bf16.msra.mxu1 %v661_v13  ;;  %v673_v33 = vpack.c.bf16 %v50_v30, %v49_v29  ;;  %v675_v34 = vpack.c.bf16 %v68_v32, %v67_v31  ;;  %v51_v35 = vld [vmem:[%s1096_s0 + $0x50] sm:$0xff]  ;;  %v52_v36 = vld [vmem:[%s1096_s0 + $0x58] sm:$0xff]  ;;  %v69_v37 = vld [vmem:[%s1096_s0 + $0xe0] sm:$0xff] }
   0xa   :  { %664 = vmatprep.subr.bf16.mxu0 %v663_v14  ;;  %697 = vmatprep.subr.bf16.mxu1 %v663_v14  ;;  %v70_v38 = vld [vmem:[%s1096_s0 + $0xe8] sm:$0xff]  ;;  %v677_v39 = vpack.c.bf16 %v52_v36, %v51_v35  ;;  %v53_v41 = vld [vmem:[%s1096_s0 + $0x60] sm:$0xff]  ;;  %v71_v43 = vld [vmem:[%s1096_s0 + $0xf0] sm:$0xff] }
   0xb   :  { %v679_v40 = vpack.c.bf16 %v70_v38, %v69_v37  ;;  %v54_v42 = vld [vmem:[%s1096_s0 + $0x68] sm:$0xff]  ;;  %v72_v44 = vld [vmem:[%s1096_s0 + $0xf8] sm:$0xff]  ;;  %v55_v47 = vld [vmem:[%s1096_s0 + $0x70] sm:$0xff] }
   0xc   :  { %v681_v45 = vpack.c.bf16 %v54_v42, %v53_v41  ;;  %v683_v46 = vpack.c.bf16 %v72_v44, %v71_v43  ;;  %v56_v48 = vld [vmem:[%s1096_s0 + $0x78] sm:$0xff]  ;;  %v73_v49 = vld [vmem:[%s1096_s0 + $0x100] sm:$0xff]  ;;  %v74_v50 = vld [vmem:[%s1096_s0 + $0x108] sm:$0xff] }
   0xd   :  { %666 = vmatpush3.bf16.msra.mxu0 %v665_v19  ;;  %705 = vmatpush3.bf16.msra.mxu1 %v665_v19  ;;  %v685_v51 = vpack.c.bf16 %v56_v48, %v55_v47  ;;  %v687_v52 = vpack.c.bf16 %v74_v50, %v73_v49  ;;  %v75_v53 = vld [vmem:[%s1096_s0 + $0x110] sm:$0xff]  ;;  %v76_v54 = vld [vmem:[%s1096_s0 + $0x118] sm:$0xff]  ;;  %v17_v55 = vld [vmem:[%s1097_s1] sm:$0xff] }
   0xe   :  { %668 = vmatprep.subr.bf16.mxu0 %v667_v20  ;;  %698 = vmatprep.subr.bf16.mxu1 %v667_v20  ;;  %v35_v56 = vld [vmem:[%s1097_s1 + $0x90] sm:$0xff]  ;;  %v21_v57 = vld [vmem:[%s1097_s1 + $0x20] sm:$0xff]  ;;  %v691_v58 = vpack.c.bf16 %v76_v54, %v75_v53  ;;  %v20_v60 = vld [vmem:[%s1097_s1 + $0x18] sm:$0xff]  ;;  %v352_v54 = vlaneseq }
   0xf   :  { %v39_v59 = vld [vmem:[%s1097_s1 + $0xb0] sm:$0xff]  ;;  %v38_v61 = vld [vmem:[%s1097_s1 + $0xa8] sm:$0xff]  ;;  %v24_v62 = vld [vmem:[%s1097_s1 + $0x38] sm:$0xff] }
  0x10   :  { %v19_v63 = vld [vmem:[%s1097_s1 + $0x10] sm:$0xff]  ;;  %v22_v1 = vld [vmem:[%s1097_s1 + $0x28] sm:$0xff]  ;;  %v25_v3 = vld [vmem:[%s1097_s1 + $0x40] sm:$0xff] }
  0x11   :  { %670 = vmatpush3.bf16.msra.mxu0 %v669_v27  ;;  %706 = vmatpush3.bf16.msra.mxu1 %v669_v27  ;;  %v23_v0 = vld [vmem:[%s1097_s1 + $0x30] sm:$0xff]  ;;  %v26_v4 = vld [vmem:[%s1097_s1 + $0x48] sm:$0xff]  ;;  %v28_v5 = vld [vmem:[%s1097_s1 + $0x58] sm:$0xff] }
  0x12   :  { %672 = vmatprep.subr.bf16.mxu0 %v671_v28  ;;  %699 = vmatprep.subr.bf16.mxu1 %v671_v28  ;;  %v27_v2 = vld [vmem:[%s1097_s1 + $0x50] sm:$0xff]  ;;  %v30_v6 = vld [vmem:[%s1097_s1 + $0x68] sm:$0xff]  ;;  %v29_v8 = vld [vmem:[%s1097_s1 + $0x60] sm:$0xff] }
  0x13   :  { %v31_v7 = vld [vmem:[%s1097_s1 + $0x70] sm:$0xff]  ;;  %v34_v9 = vld [vmem:[%s1097_s1 + $0x88] sm:$0xff]  ;;  %v33_v10 = vld [vmem:[%s1097_s1 + $0x80] sm:$0xff] }
  0x14   :  { %v37_v11 = vld [vmem:[%s1097_s1 + $0xa0] sm:$0xff]  ;;  %v32_v12 = vld [vmem:[%s1097_s1 + $0x78] sm:$0xff] }
  0x15   :  { %674 = vmatpush3.bf16.msra.mxu0 %v673_v33  ;;  %707 = vmatpush3.bf16.msra.mxu1 %v673_v33  ;;  %v40_v13 = vld [vmem:[%s1097_s1 + $0xb8] sm:$0xff] }
  0x16   :  { %676 = vmatprep.subr.bf16.mxu0 %v675_v34  ;;  %700 = vmatprep.subr.bf16.mxu1 %v675_v34 }
  0x19   :  { %678 = vmatpush3.bf16.msra.mxu0 %v677_v39  ;;  %708 = vmatpush3.bf16.msra.mxu1 %v677_v39 }
  0x1a   :  { %680 = vmatprep.subr.bf16.mxu0 %v679_v40  ;;  %701 = vmatprep.subr.bf16.mxu1 %v679_v40 }
  0x1d   :  { %682 = vmatpush3.bf16.msra.mxu0 %v681_v45  ;;  %709 = vmatpush3.bf16.msra.mxu1 %v681_v45 }
  0x1e   :  { %684 = vmatprep.subr.bf16.mxu0 %v683_v46  ;;  %702 = vmatprep.subr.bf16.mxu1 %v683_v46 }
  0x21   :  { %686 = vmatpush3.bf16.msra.mxu0 %v685_v51  ;;  %710 = vmatpush3.bf16.msra.mxu1 %v685_v51 }
  0x22   :  { %688 = vmatprep.subr.bf16.mxu1 %v687_v52 }
  0x24   :  { %167 = vmatmul.mubr.f32.vlgmr.msra.gmra.mrb[0].mxu0 %v17_v55  ;;  %197 = vmatmul.mubr.f32.vlgmr.msra.gmra.mrb[0].mxu1 %v35_v56  ;;  %v353_v55 = vand.u32 127, %v352_v54 }
  0x25   :  { %690 = vmatpush3.bf16.msra.mxu1 %v687_v52  ;;  %171 = vmatprep.mubr.f32.mxu0 %v21_v57 }
  0x26   :  { %201 = vmatprep.mubr.f32.mxu1 %v39_v59  ;;  %692 = vmatprep.subr.bf16.mxu1 %v691_v58  ;;  %vm354_vm1 = vcmp.lt.s32.totalorder %v353_v55, 32 }
  0x28   :  { %172 = vmatmul.mubr.f32.gmra.mrb[2].mxu0 %v20_v60  ;;  %202 = vmatmul.mubr.f32.gmra.mrb[2].mxu1 %v38_v61 }
  0x29   :  { %694 = vmatpush3.bf16.msra.mxu1 %v691_v58  ;;  %176 = vmatprep.mubr.f32.mxu0 %v24_v62 }
  0x2a   :  { %643 = vmatprep.mubr.msk.f32.mxu1 %vm77_vm0, %v19_v63 }
  0x2c   :  { %177 = vmatmul.mubr.f32.gmra.mrb[4].mxu0 %v23_v0  ;;  %644 = vmatmul.mubr.msk.f32.vlgmr.msra.gmra.mrb[4].mxu1 %vm77_vm0, %v22_v1 }
  0x2d   :  { %181 = vmatprep.mubr.f32.mxu0 %v27_v2  ;;  %646 = vmatprep.mubr.msk.f32.mxu1 %vm77_vm0, %v25_v3 }
  0x30   :  { %182 = vmatmul.mubr.f32.gmra.mrb[6].mxu0 %v26_v4  ;;  %647 = vmatmul.mubr.msk.f32.gmra.mrb[6].mxu1 %vm77_vm0, %v28_v5 }
  0x31   :  { %186 = vmatprep.mubr.f32.mxu0 %v30_v6  ;;  %649 = vmatprep.mubr.msk.f32.mxu1 %vm77_vm0, %v31_v7 }
  0x34   :  { %187 = vmatmul.mubr.f32.gmra.mrb[8].mxu0 %v29_v8  ;;  %650 = vmatmul.mubr.msk.f32.gmra.mrb[8].mxu1 %vm77_vm0, %v34_v9 }
  0x35   :  { %191 = vmatprep.mubr.f32.mxu0 %v33_v10  ;;  %652 = vmatprep.mubr.msk.f32.mxu1 %vm77_vm0, %v37_v11 }
  0x38   :  { %192 = vmatmul.mubr.f32.gmra.mrb[10].mxu0 %v32_v12  ;;  %653 = vmatmul.mubr.msk.f32.gmra.mrb[10].mxu1 %vm77_vm0, %v40_v13 }
  0xf7   :  { %v617_v14 = vpop.f32.mrb[0].mxu1  ;;  %v599_v15 = vpop.f32.mrb[0].mxu0 }
  0xf8   :  { %v618_v16 = vpop.f32.mrb[1].mxu1  ;;  %v600_v17 = vpop.f32.mrb[1].mxu0 }
  0xf9   :  { %v619_v18 = vadd.f32 %v618_v16, %v617_v14  ;;  %v601_v19 = vadd.f32 %v600_v17, %v599_v15 }
  0xfb   :  { %v620_v20 = vpop.f32.mrb[2].mxu1  ;;  %v602_v21 = vpop.f32.mrb[2].mxu0 }
  0xfc   :  { %v621_v22 = vpop.f32.mrb[3].mxu1  ;;  %v603_v23 = vpop.f32.mrb[3].mxu0 }
  0xfd   :  { %v622_v24 = vadd.f32 %v621_v22, %v620_v20  ;;  %v604_v25 = vadd.f32 %v603_v23, %v602_v21 }
  0xff   :  { %v645_v26 = vpop.f32.mrb[4].mxu1  ;;  %v605_v27 = vpop.f32.mrb[4].mxu0 }
 0x100   :  { %v944_v28 = vadd.f32 %v645_v26, %v604_v25  ;;  %v273_v29 = vpop.f32.mrb[5].mxu1  ;;  %v606_v30 = vpop.f32.mrb[5].mxu0 }
 0x101   :  { %v946_v31 = vadd.f32 %v601_v19, %v273_v29  ;;  %v607_v32 = vadd.f32 %v606_v30, %v605_v27 }
 0x102   :  { %330 = vadd.xlane.f32.xlu0 %v944_v28 }
 0x103   :  { %v648_v33 = vpop.f32.mrb[6].mxu1  ;;  %v608_v34 = vpop.f32.mrb[6].mxu0 }
 0x104   :  { %v283_v35 = vpop.f32.mrb[7].mxu1  ;;  %v609_v36 = vpop.f32.mrb[7].mxu0 }
 0x105   :  { %v949_v37 = vadd.f32 %v607_v32, %v283_v35  ;;  %v610_v38 = vadd.f32 %v609_v36, %v608_v34  ;;  %v730_v34 = vmov 0  }
 0x106   :  { %328 = vadd.xlane.f32.xlu0 %v946_v31  ;;  %712 = vset.pattern.permute.xlu1 %v730_v34 }
 0x107   :  { %v952_v39 = vadd.f32 %v648_v33, %v610_v38  ;;  %v611_v40 = vpop.f32.mrb[8].mxu0  ;;  %332 = vadd.xlane.f32.xlu1 %v949_v37  ;;  %v651_v41 = vpop.f32.mrb[8].mxu1  ;;  %713 = vset.pattern.permute.xlu0 %v730_v34 }
 0x108   :  { %v612_v42 = vpop.f32.mrb[9].mxu0  ;;  %v293_v43 = vpop.f32.mrb[9].mxu1 }
 0x109   :  { %v613_v44 = vadd.f32 %v612_v42, %v611_v40 }
 0x10b   :  { %v955_v45 = vadd.f32 %v613_v44, %v293_v43  ;;  %v614_v46 = vpop.f32.mrb[10].mxu0  ;;  %v654_v47 = vpop.f32.mrb[10].mxu1  ;;  %334 = vadd.xlane.f32.xlu1 %v952_v39 }
 0x10c   :  { %v958_v48 = vadd.f32 %v654_v47, %v622_v24  ;;  %v615_v49 = vpop.f32.mrb[11].mxu0  ;;  %v303_v50 = vpop.f32.mrb[11].mxu1 }
 0x10d   :  { %v616_v51 = vadd.f32 %v615_v49, %v614_v46  ;;  %v960_v52 = vadd.f32 %v619_v18, %v303_v50  ;;  %336 = vadd.xlane.f32.xlu0 %v955_v45 }
 0x10f   :  { %v963_v53 = vadd.f32 %v651_v41, %v616_v51  ;;  %v313_v51 = vld [vmem:[%s1098_s2 + $0x8] sm:$0xff] }
 0x111   :  { %338 = vadd.xlane.f32.xlu1 %v963_v53  ;;  %340 = vadd.xlane.f32.xlu0 %v960_v52 }
 0x115   :  { %342 = vadd.xlane.f32.xlu1 %v958_v48 }
 0x18f   :  { %v331_v56 = vpop.xlane.xlu0 %330 }
 0x190   :  { %v968_v57 = vmul.f32 0.03125, %v331_v56 }
 0x192   :  { %v356_v58 = vsub.f32 %v944_v28, %v968_v57 }
 0x193   :  { %v329_v59 = vpop.xlane.xlu0 %328 }
 0x194   :  { %v972_v60 = vmul.f32 0.03125, %v329_v59  ;;  %v333_v61 = vpop.xlane.xlu1 %332  ;;  %v364_v62 = vsel %vm354_vm1, %v356_v58, 0.0 }
 0x195   :  { %v975_v63 = vmul.f32 0.03125, %v333_v61  ;;  %v372_v0 = vmul.f32 %v364_v62, %v364_v62  ;;  %v312_v61 = vld [vmem:[%s1098_s2] sm:$0xff] }
 0x196   :  { %v355_v1 = vsub.f32 %v946_v31, %v972_v60 }
 0x197   :  { %v357_v2 = vsub.f32 %v949_v37, %v975_v63  ;;  %381 = vadd.xlane.f32.xlu1 %v372_v0 }
 0x198   :  { %v335_v3 = vpop.xlane.xlu1 %334  ;;  %v363_v4 = vsel %vm354_vm1, %v355_v1, 0.0 }
 0x199   :  { %v982_v5 = vmul.f32 0.03125, %v335_v3  ;;  %v371_v6 = vmul.f32 %v363_v4, %v363_v4  ;;  %v365_v8 = vsel %vm354_vm1, %v357_v2, 0.0 }
 0x19a   :  { %v337_v7 = vpop.xlane.xlu0 %336  ;;  %v373_v12 = vmul.f32 %v365_v8, %v365_v8  ;;  %v314_v8 = vld [vmem:[%s1098_s2 + $0x10] sm:$0xff] }
 0x19b   :  { %v358_v9 = vsub.f32 %v952_v39, %v982_v5  ;;  %v987_v10 = vmul.f32 0.03125, %v337_v7  ;;  %379 = vadd.xlane.f32.xlu0 %v371_v6  ;;  %v321_v7 = vld [vmem:[%s1099_s3 + $0x8] sm:$0xff] }
 0x19d   :  { %v359_v11 = vsub.f32 %v955_v45, %v987_v10  ;;  %v366_v13 = vsel %vm354_vm1, %v358_v9, 0.0 }
 0x19e   :  { %v339_v14 = vpop.xlane.xlu1 %338  ;;  %v341_v15 = vpop.xlane.xlu0 %340  ;;  %v374_v16 = vmul.f32 %v366_v13, %v366_v13 }
 0x19f   :  { %v992_v17 = vmul.f32 0.03125, %v339_v14  ;;  %v994_v18 = vmul.f32 0.03125, %v341_v15  ;;  %383 = vadd.xlane.f32.xlu0 %v373_v12  ;;  %v367_v19 = vsel %vm354_vm1, %v359_v11, 0.0  ;;  %v315_v11 = vld [vmem:[%s1098_s2 + $0x18] sm:$0xff] }
 0x1a0   :  { %385 = vadd.xlane.f32.xlu1 %v374_v16  ;;  %v375_v20 = vmul.f32 %v367_v19, %v367_v19 }
 0x1a1   :  { %v360_v21 = vsub.f32 %v963_v53, %v992_v17  ;;  %v361_v22 = vsub.f32 %v960_v52, %v994_v18 }
 0x1a2   :  { %v343_v23 = vpop.xlane.xlu1 %342 }
 0x1a3   :  { %v1001_v24 = vmul.f32 0.03125, %v343_v23  ;;  %387 = vadd.xlane.f32.xlu0 %v375_v20  ;;  %v368_v25 = vsel %vm354_vm1, %v360_v21, 0.0  ;;  %v369_v26 = vsel %vm354_vm1, %v361_v22, 0.0  ;;  %v320_v20 = vld [vmem:[%s1099_s3] sm:$0xff]  ;;  %v323_v22 = vld [vmem:[%s1099_s3 + $0x18] sm:$0xff] }
 0x1a4   :  { %v376_v27 = vmul.f32 %v368_v25, %v368_v25  ;;  %v377_v29 = vmul.f32 %v369_v26, %v369_v26 }
 0x1a5   :  { %v362_v30 = vsub.f32 %v958_v48, %v1001_v24 }
 0x1a6   :  { %389 = vadd.xlane.f32.xlu1 %v376_v27 }
 0x1a7   :  { %391 = vadd.xlane.f32.xlu0 %v377_v29  ;;  %v370_v32 = vsel %vm354_vm1, %v362_v30, 0.0 }
 0x1a8   :  { %v378_v33 = vmul.f32 %v370_v32, %v370_v32 }
 0x1aa   :  { %393 = vadd.xlane.f32.xlu1 %v378_v33  ;;  %v325_v33 = vld [vmem:[%s1099_s3 + $0x28] sm:$0xff] }
 0x224   :  { %v382_v35 = vpop.xlane.xlu1 %381 }
 0x225   :  { %v396_v36 = vmul.f32 0.03125, %v382_v35 }
 0x227   :  { %v404_v38 = vadd.f32 1e-05, %v396_v36  ;;  %v322_v36 = vld [vmem:[%s1099_s3 + $0x10] sm:$0xff] }
 0x228   :  { %v380_v40 = vpop.xlane.xlu0 %379 }
 0x229   :  { %714 = vrsqrt.f32 %v404_v38  ;;  %v395_v41 = vmul.f32 0.03125, %v380_v40 }
 0x22b   :  { %v403_v42 = vadd.f32 1e-05, %v395_v41 }
 0x22c   :  { %v384_v43 = vpop.xlane.xlu0 %383 }
 0x22d   :  { %716 = vrsqrt.f32 %v403_v42  ;;  %v397_v44 = vmul.f32 0.03125, %v384_v43  ;;  %v386_v46 = vpop.xlane.xlu1 %385 }
 0x22e   :  { %v398_v47 = vmul.f32 0.03125, %v386_v46 }
 0x22f   :  { %v405_v49 = vadd.f32 1e-05, %v397_v44 }
 0x230   :  { %v406_v50 = vadd.f32 1e-05, %v398_v47  ;;  %v388_v56 = vpop.xlane.xlu0 %387 }
 0x231   :  { %718 = vrsqrt.f32 %v405_v49  ;;  %v399_v1 = vmul.f32 0.03125, %v388_v56 }
 0x232   :  { %720 = vrsqrt.f32 %v406_v50  ;;  %v318_v50 = vld [vmem:[%s1098_s2 + $0x30] sm:$0xff] }
 0x233   :  { %v715_v54 = vpop.eup %714  ;;  %v390_v55 = vpop.xlane.xlu1 %389  ;;  %v407_v13 = vadd.f32 1e-05, %v399_v1 }
 0x234   :  { %v400_v58 = vmul.f32 0.03125, %v390_v55  ;;  %v420_v59 = vmul.f32 %v715_v54, %v313_v51  ;;  %v392_v15 = vpop.xlane.xlu0 %391 }
 0x235   :  { %v401_v23 = vmul.f32 0.03125, %v392_v15 }
 0x236   :  { %v408_v62 = vadd.f32 1e-05, %v400_v58  ;;  %450 = vperm.xlu1 %712, %v420_v59   ;;  %v428_v6 = vmul.f32 %v420_v59, %v968_v57  ;;  %v326_v58 = vld [vmem:[%s1099_s3 + $0x30] sm:$0xff] }
 0x237   :  { %v717_v0 = vpop.eup %716  ;;  %v394_v2 = vpop.xlane.xlu1 %393  ;;  %v409_v30 = vadd.f32 1e-05, %v401_v23 }
 0x238   :  { %722 = vrsqrt.f32 %v408_v62  ;;  %v402_v3 = vmul.f32 0.03125, %v394_v2  ;;  %v419_v4 = vmul.f32 %v717_v0, %v312_v61  ;;  %v436_v57 = vsub.f32 %v321_v7, %v428_v6 }
 0x23a   :  { %v410_v9 = vadd.f32 1e-05, %v402_v3  ;;  %445 = vperm.xlu0 %713, %v419_v4   ;;  %v427_v19 = vmul.f32 %v419_v4, %v972_v60  ;;  %v317_v60 = vld [vmem:[%s1098_s2 + $0x28] sm:$0xff] }
 0x23b   :  { %v719_v12 = vpop.eup %718 }
 0x23c   :  { %v721_v14 = vpop.eup %720  ;;  %724 = vrsqrt.f32 %v410_v9  ;;  %v421_v16 = vmul.f32 %v719_v12, %v314_v8  ;;  %v435_v26 = vsub.f32 %v320_v20, %v427_v19 }
 0x23d   :  { %v422_v21 = vmul.f32 %v721_v14, %v315_v11  ;;  %726 = vrsqrt.f32 %v407_v13 }
 0x23e   :  { %498 = vperm.xlu0 %713, %v436_v57   ;;  %455 = vperm.xlu1 %712, %v421_v16   ;;  %v429_v34 = vmul.f32 %v421_v16, %v975_v63  ;;  %728 = vrsqrt.f32 %v409_v30  ;;  %v327_v63 = vld [vmem:[%s1099_s3 + $0x38] sm:$0xff] }
 0x23f   :  { %v430_v25 = vmul.f32 %v422_v21, %v982_v5  ;;  %v319_v5 = vld [vmem:[%s1098_s2 + $0x38] sm:$0xff] }
 0x240   :  { %v437_v42 = vsub.f32 %v322_v36, %v429_v34 }
 0x241   :  { %v438_v27 = vsub.f32 %v323_v22, %v430_v25 }
 0x242   :  { %v723_v29 = vpop.eup %722  ;;  %493 = vperm.xlu1 %712, %v435_v26  }
 0x243   :  { %508 = vperm.xlu0 %713, %v438_v27   ;;  %v424_v32 = vmul.f32 %v723_v29, %v317_v60 }
 0x245   :  { %v432_v35 = vmul.f32 %v424_v32, %v992_v17  ;;  %v316_v17 = vld [vmem:[%s1098_s2 + $0x20] sm:$0xff] }
 0x246   :  { %v725_v38 = vpop.eup %724  ;;  %460 = vperm.xlu1 %712, %v422_v21  }
 0x247   :  { %v440_v40 = vsub.f32 %v325_v33, %v432_v35  ;;  %v426_v41 = vmul.f32 %v725_v38, %v319_v5  ;;  %v727_v43 = vpop.eup %726 }
 0x248   :  { %v423_v47 = vmul.f32 %v727_v43, %v316_v17  ;;  %v729_v49 = vpop.eup %728 }
 0x249   :  { %518 = vperm.xlu0 %713, %v440_v40   ;;  %v434_v44 = vmul.f32 %v426_v41, %v1001_v24  ;;  %v425_v51 = vmul.f32 %v729_v49, %v318_v50  ;;  %v324_v24 = vld [vmem:[%s1099_s3 + $0x20] sm:$0xff] }
 0x24a   :  { %503 = vperm.xlu1 %712, %v437_v42   ;;  %v431_v54 = vmul.f32 %v423_v47, %v987_v10 }
 0x24b   :  { %v442_v46 = vsub.f32 %v327_v63, %v434_v44  ;;  %v433_v56 = vmul.f32 %v425_v51, %v994_v18 }
 0x24c   :  { %v439_v55 = vsub.f32 %v324_v24, %v431_v54 }
 0x24d   :  { %528 = vperm.xlu0 %713, %v442_v46   ;;  %v441_v59 = vsub.f32 %v326_v58, %v433_v56 }
 0x24e   :  { %465 = vperm.xlu1 %712, %v423_v47  }
 0x252   :  { %480 = vperm.xlu1 %712, %v426_v41  }
 0x256   :  { %475 = vperm.xlu1 %712, %v425_v51  }
 0x25a   :  { %470 = vperm.xlu1 %712, %v424_v32  }
 0x25e   :  { %513 = vperm.xlu1 %712, %v439_v55  }
 0x262   :  { %523 = vperm.xlu1 %712, %v441_v59  }
 0x2b5   :  { %v451_v61 = vpop.permute.xlu1 %450 }
 0x2b6   :  { %v484_v0 = vmul.f32 %v451_v61, %v944_v28 }
 0x2b9   :  { %v446_v62 = vpop.permute.xlu0 %445 }
 0x2ba   :  { %v483_v3 = vmul.f32 %v446_v62, %v946_v31 }
 0x2bd   :  { %v456_v10 = vpop.permute.xlu1 %455  ;;  %v499_v1 = vpop.permute.xlu0 %498 }
 0x2be   :  { %v532_v2 = vadd.f32 %v499_v1, %v484_v0  ;;  %v485_v11 = vmul.f32 %v456_v10, %v949_v37 }
 0x2c0   :  { %v540_v4 = vmax.f32 %v532_v2, 0.0 }
 0x2c1   :  { %v494_v6 = vpop.permute.xlu1 %493 }
 0x2c2   :  { %548 = vst [vmem:[%s1100_s4 + $0x8] sm:$0xff] %v540_v4  ;;  %v531_v18 = vadd.f32 %v494_v6, %v483_v3  ;;  %v509_v9 = vpop.permute.xlu0 %508 }
 0x2c4   :  { %v539_v7 = vmax.f32 %v531_v18, 0.0 }
 0x2c5   :  { %v461_v8 = vpop.permute.xlu1 %460 }
 0x2c6   :  { %547 = vst [vmem:[%s1100_s4] sm:$0xff] %v539_v7  ;;  %v486_v28 = vmul.f32 %v461_v8, %v952_v39 }
 0x2c8   :  { %v534_v12 = vadd.f32 %v509_v9, %v486_v28  ;;  %v519_v57 = vpop.permute.xlu0 %518 }
 0x2c9   :  { %v504_v31 = vpop.permute.xlu1 %503 }
 0x2ca   :  { %v542_v13 = vmax.f32 %v534_v12, 0.0  ;;  %v533_v14 = vadd.f32 %v504_v31, %v485_v11 }
 0x2cc   :  { %550 = vst [vmem:[%s1100_s4 + $0x18] sm:$0xff] %v542_v13  ;;  %v541_v15 = vmax.f32 %v533_v14, 0.0  ;;  %v529_v20 = vpop.permute.xlu0 %528 }
 0x2cd   :  { %v466_v16 = vpop.permute.xlu1 %465 }
 0x2ce   :  { %549 = vst [vmem:[%s1100_s4 + $0x10] sm:$0xff] %v541_v15  ;;  %v487_v26 = vmul.f32 %v466_v16, %v955_v45 }
 0x2d1   :  { %v481_v19 = vpop.permute.xlu1 %480 }
 0x2d2   :  { %v490_v39 = vmul.f32 %v481_v19, %v958_v48 }
 0x2d4   :  { %v538_v37 = vadd.f32 %v529_v20, %v490_v39 }
 0x2d5   :  { %v476_v21 = vpop.permute.xlu1 %475 }
 0x2d6   :  { %v546_v22 = vmax.f32 %v538_v37, 0.0  ;;  %v489_v32 = vmul.f32 %v476_v21, %v960_v52 }
 0x2d8   :  { %554 = vst [vmem:[%s1100_s4 + $0x38] sm:$0xff] %v546_v22 }
 0x2d9   :  { %v471_v23 = vpop.permute.xlu1 %470 }
 0x2da   :  { %v488_v25 = vmul.f32 %v471_v23, %v963_v53 }
 0x2dc   :  { %v536_v60 = vadd.f32 %v519_v57, %v488_v25 }
 0x2dd   :  { %v514_v27 = vpop.permute.xlu1 %513 }
 0x2de   :  { %v544_v29 = vmax.f32 %v536_v60, 0.0  ;;  %v535_v30 = vadd.f32 %v514_v27, %v487_v26 }
 0x2e0   :  { %552 = vst [vmem:[%s1100_s4 + $0x28] sm:$0xff] %v544_v29  ;;  %v543_v48 = vmax.f32 %v535_v30, 0.0 }
 0x2e1   :  { %v524_v33 = vpop.permute.xlu1 %523 }
 0x2e2   :  { %551 = vst [vmem:[%s1100_s4 + $0x20] sm:$0xff] %v543_v48  ;;  %v537_v34 = vadd.f32 %v524_v33, %v489_v32 }
 0x2e4   :  { %v545_v53 = vmax.f32 %v537_v34, 0.0 }
 0x2e6   :  { %553 = vst [vmem:[%s1100_s4 + $0x30] sm:$0xff] %v545_v53 }

// kernel: _lambda_.18
= control target key start
LH: loop header
LB: loop body
LE: loop exit
PB: predicated region body
PF: predicated region fallthrough
CT: control target
= control target key end

     0   :  { %vm132_vm0 = vcmask 523264   ;;  %s1557_s0 = inlined_call_operand.vmem [shape: f32[576,128], index: 0, kind: input, shape index: {}]   ;;  %s1558_s1 = inlined_call_operand.vmem [shape: f32[64,576], index: 1, kind: input, shape index: {}]   ;;  %s1559_s2 = inlined_call_operand.vmem [shape: f32[64,1], index: 2, kind: input, shape index: {}]   ;;  %s1560_s3 = inlined_call_operand.vmem [shape: f32[64,1], index: 3, kind: input, shape index: {}]   ;;  %s1561_s4 = inlined_call_operand.vmem [shape: f32[64,128], index: 4, kind: input, shape index: {}]   ;;  %s1562_s5 = inlined_call_operand.vmem [shape: f32[64,128], index: 5, kind: output, shape index: {}]  }
   0x1   :  { %v76_v0 = vld [vmem:[%s1557_s0 + $0x80] sm:$0xff]  ;;  %v77_v1 = vld [vmem:[%s1557_s0 + $0x88] sm:$0xff]  ;;  %v78_v11 = vld [vmem:[%s1557_s0 + $0x90] sm:$0xff] }
   0x2   :  { %v108_v2 = vld [vmem:[%s1557_s0 + $0x180] sm:$0xff]  ;;  %v899_v3 = vpack.c.bf16 %v77_v1, %v76_v0  ;;  %v109_v4 = vld [vmem:[%s1557_s0 + $0x188] sm:$0xff]  ;;  %v79_v13 = vld [vmem:[%s1557_s0 + $0x98] sm:$0xff] }
   0x3   :  { %v60_v5 = vld [vmem:[%s1557_s0] sm:$0xff]  ;;  %v61_v6 = vld [vmem:[%s1557_s0 + $0x8] sm:$0xff]  ;;  %v931_v7 = vpack.c.bf16 %v109_v4, %v108_v2  ;;  %v110_v14 = vld [vmem:[%s1557_s0 + $0x190] sm:$0xff]  ;;  %v903_v16 = vpack.c.bf16 %v79_v13, %v78_v11 }
   0x4   :  { %v901_v8 = vpack.c.bf16 %v61_v6, %v60_v5  ;;  %v92_v9 = vld [vmem:[%s1557_s0 + $0x100] sm:$0xff]  ;;  %v93_v10 = vld [vmem:[%s1557_s0 + $0x108] sm:$0xff]  ;;  %900 = vmatprep.subr.bf16.mxu0 %v899_v3  ;;  %v111_v15 = vld [vmem:[%s1557_s0 + $0x198] sm:$0xff] }
   0x5   :  { %v933_v12 = vpack.c.bf16 %v93_v10, %v92_v9  ;;  %932 = vmatprep.subr.bf16.mxu1 %v931_v7  ;;  %v935_v17 = vpack.c.bf16 %v111_v15, %v110_v14  ;;  %v62_v18 = vld [vmem:[%s1557_s0 + $0x10] sm:$0xff]  ;;  %v63_v19 = vld [vmem:[%s1557_s0 + $0x18] sm:$0xff]  ;;  %v80_v23 = vld [vmem:[%s1557_s0 + $0xa0] sm:$0xff] }
   0x6   :  { %902 = vmatpush3.bf16.msra.mxu0 %v901_v8  ;;  %v94_v20 = vld [vmem:[%s1557_s0 + $0x110] sm:$0xff]  ;;  %v905_v21 = vpack.c.bf16 %v63_v19, %v62_v18  ;;  %v95_v22 = vld [vmem:[%s1557_s0 + $0x118] sm:$0xff]  ;;  %v81_v24 = vld [vmem:[%s1557_s0 + $0xa8] sm:$0xff] }
   0x7   :  { %934 = vmatpush3.bf16.msra.mxu1 %v933_v12  ;;  %904 = vmatprep.subr.bf16.mxu0 %v903_v16  ;;  %v937_v25 = vpack.c.bf16 %v95_v22, %v94_v20  ;;  %v907_v26 = vpack.c.bf16 %v81_v24, %v80_v23  ;;  %v112_v27 = vld [vmem:[%s1557_s0 + $0x1a0] sm:$0xff]  ;;  %v113_v28 = vld [vmem:[%s1557_s0 + $0x1a8] sm:$0xff]  ;;  %v82_v35 = vld [vmem:[%s1557_s0 + $0xb0] sm:$0xff] }
   0x8   :  { %936 = vmatprep.subr.bf16.mxu1 %v935_v17  ;;  %v64_v29 = vld [vmem:[%s1557_s0 + $0x20] sm:$0xff]  ;;  %v939_v30 = vpack.c.bf16 %v113_v28, %v112_v27  ;;  %v65_v31 = vld [vmem:[%s1557_s0 + $0x28] sm:$0xff]  ;;  %v83_v36 = vld [vmem:[%s1557_s0 + $0xb8] sm:$0xff] }
   0x9   :  { %v96_v32 = vld [vmem:[%s1557_s0 + $0x120] sm:$0xff]  ;;  %v97_v33 = vld [vmem:[%s1557_s0 + $0x128] sm:$0xff]  ;;  %v909_v34 = vpack.c.bf16 %v65_v31, %v64_v29  ;;  %v114_v37 = vld [vmem:[%s1557_s0 + $0x1b0] sm:$0xff]  ;;  %v911_v39 = vpack.c.bf16 %v83_v36, %v82_v35 }
   0xa   :  { %906 = vmatpush3.bf16.msra.mxu0 %v905_v21  ;;  %v941_v38 = vpack.c.bf16 %v97_v33, %v96_v32  ;;  %v115_v40 = vld [vmem:[%s1557_s0 + $0x1b8] sm:$0xff]  ;;  %v66_v41 = vld [vmem:[%s1557_s0 + $0x30] sm:$0xff]  ;;  %v84_v46 = vld [vmem:[%s1557_s0 + $0xc0] sm:$0xff] }
   0xb   :  { %938 = vmatpush3.bf16.msra.mxu1 %v937_v25  ;;  %908 = vmatprep.subr.bf16.mxu0 %v907_v26  ;;  %v67_v42 = vld [vmem:[%s1557_s0 + $0x38] sm:$0xff]  ;;  %v943_v43 = vpack.c.bf16 %v115_v40, %v114_v37  ;;  %v98_v44 = vld [vmem:[%s1557_s0 + $0x130] sm:$0xff]  ;;  %v85_v47 = vld [vmem:[%s1557_s0 + $0xc8] sm:$0xff] }
   0xc   :  { %940 = vmatprep.subr.bf16.mxu1 %v939_v30  ;;  %v99_v45 = vld [vmem:[%s1557_s0 + $0x138] sm:$0xff]  ;;  %v116_v48 = vld [vmem:[%s1557_s0 + $0x1c0] sm:$0xff]  ;;  %v117_v49 = vld [vmem:[%s1557_s0 + $0x1c8] sm:$0xff]  ;;  %v913_v50 = vpack.c.bf16 %v67_v42, %v66_v41  ;;  %v915_v52 = vpack.c.bf16 %v85_v47, %v84_v46 }
   0xd   :  { %v945_v51 = vpack.c.bf16 %v99_v45, %v98_v44  ;;  %v68_v53 = vld [vmem:[%s1557_s0 + $0x40] sm:$0xff]  ;;  %v69_v54 = vld [vmem:[%s1557_s0 + $0x48] sm:$0xff]  ;;  %v947_v56 = vpack.c.bf16 %v117_v49, %v116_v48  ;;  %v86_v58 = vld [vmem:[%s1557_s0 + $0xd0] sm:$0xff] }
   0xe   :  { %910 = vmatpush3.bf16.msra.mxu0 %v909_v34  ;;  %v100_v55 = vld [vmem:[%s1557_s0 + $0x140] sm:$0xff]  ;;  %v101_v57 = vld [vmem:[%s1557_s0 + $0x148] sm:$0xff]  ;;  %v87_v59 = vld [vmem:[%s1557_s0 + $0xd8] sm:$0xff]  ;;  %v917_v62 = vpack.c.bf16 %v69_v54, %v68_v53 }
   0xf   :  { %942 = vmatpush3.bf16.msra.mxu1 %v941_v38  ;;  %912 = vmatprep.subr.bf16.mxu0 %v911_v39  ;;  %v118_v60 = vld [vmem:[%s1557_s0 + $0x1d0] sm:$0xff]  ;;  %v119_v61 = vld [vmem:[%s1557_s0 + $0x1d8] sm:$0xff]  ;;  %v949_v63 = vpack.c.bf16 %v101_v57, %v100_v55  ;;  %v919_v0 = vpack.c.bf16 %v87_v59, %v86_v58  ;;  %v88_v6 = vld [vmem:[%s1557_s0 + $0xe0] sm:$0xff] }
  0x10   :  { %944 = vmatprep.subr.bf16.mxu1 %v943_v43  ;;  %v70_v1 = vld [vmem:[%s1557_s0 + $0x50] sm:$0xff]  ;;  %v71_v2 = vld [vmem:[%s1557_s0 + $0x58] sm:$0xff]  ;;  %v951_v4 = vpack.c.bf16 %v119_v61, %v118_v60  ;;  %v89_v7 = vld [vmem:[%s1557_s0 + $0xe8] sm:$0xff] }
  0x11   :  { %v102_v3 = vld [vmem:[%s1557_s0 + $0x150] sm:$0xff]  ;;  %v103_v5 = vld [vmem:[%s1557_s0 + $0x158] sm:$0xff]  ;;  %v120_v8 = vld [vmem:[%s1557_s0 + $0x1e0] sm:$0xff]  ;;  %v921_v10 = vpack.c.bf16 %v71_v2, %v70_v1  ;;  %v923_v14 = vpack.c.bf16 %v89_v7, %v88_v6 }
  0x12   :  { %914 = vmatpush3.bf16.msra.mxu0 %v913_v50  ;;  %v121_v9 = vld [vmem:[%s1557_s0 + $0x1e8] sm:$0xff]  ;;  %v72_v11 = vld [vmem:[%s1557_s0 + $0x60] sm:$0xff]  ;;  %v953_v13 = vpack.c.bf16 %v103_v5, %v102_v3  ;;  %v23_v17 = vld [vmem:[%s1558_s1 + $0x18] sm:$0xff] }
  0x13   :  { %946 = vmatpush3.bf16.msra.mxu1 %v945_v51  ;;  %916 = vmatprep.subr.bf16.mxu0 %v915_v52  ;;  %v73_v12 = vld [vmem:[%s1557_s0 + $0x68] sm:$0xff]  ;;  %v104_v15 = vld [vmem:[%s1557_s0 + $0x160] sm:$0xff]  ;;  %v955_v18 = vpack.c.bf16 %v121_v9, %v120_v8  ;;  %v90_v20 = vld [vmem:[%s1557_s0 + $0xf0] sm:$0xff] }
  0x14   :  { %948 = vmatprep.subr.bf16.mxu1 %v947_v56  ;;  %v21_v16 = vld [vmem:[%s1558_s1 + $0x8] sm:$0xff]  ;;  %v91_v21 = vld [vmem:[%s1557_s0 + $0xf8] sm:$0xff]  ;;  %v122_v22 = vld [vmem:[%s1557_s0 + $0x1f0] sm:$0xff]  ;;  %326 = vmatprep.mubr.f32.mxu1 %v23_v17  ;;  %v925_v24 = vpack.c.bf16 %v73_v12, %v72_v11 }
  0x15   :  { %v105_v19 = vld [vmem:[%s1557_s0 + $0x168] sm:$0xff]  ;;  %221 = vmatprep.mubr.f32.mxu0 %v21_v16  ;;  %v123_v23 = vld [vmem:[%s1557_s0 + $0x1f8] sm:$0xff]  ;;  %v927_v26 = vpack.c.bf16 %v91_v21, %v90_v20  ;;  %v74_v27 = vld [vmem:[%s1557_s0 + $0x70] sm:$0xff] }
  0x16   :  { %918 = vmatpush3.bf16.msra.mxu0 %v917_v62  ;;  %v957_v25 = vpack.c.bf16 %v105_v19, %v104_v15  ;;  %v75_v28 = vld [vmem:[%s1557_s0 + $0x78] sm:$0xff]  ;;  %v106_v29 = vld [vmem:[%s1557_s0 + $0x170] sm:$0xff]  ;;  %v959_v30 = vpack.c.bf16 %v123_v23, %v122_v22  ;;  %v124_v32 = vld [vmem:[%s1557_s0 + $0x200] sm:$0xff] }
  0x17   :  { %950 = vmatpush3.bf16.msra.mxu1 %v949_v63  ;;  %920 = vmatprep.subr.bf16.mxu0 %v919_v0  ;;  %v107_v31 = vld [vmem:[%s1557_s0 + $0x178] sm:$0xff]  ;;  %v125_v33 = vld [vmem:[%s1557_s0 + $0x208] sm:$0xff]  ;;  %v929_v34 = vpack.c.bf16 %v75_v28, %v74_v27  ;;  %v126_v37 = vld [vmem:[%s1557_s0 + $0x210] sm:$0xff] }
  0x18   :  { %952 = vmatprep.subr.bf16.mxu1 %v951_v4  ;;  %v961_v35 = vpack.c.bf16 %v107_v31, %v106_v29  ;;  %v963_v36 = vpack.c.bf16 %v125_v33, %v124_v32  ;;  %v127_v38 = vld [vmem:[%s1557_s0 + $0x218] sm:$0xff]  ;;  %v20_v39 = vld [vmem:[%s1558_s1] sm:$0xff]  ;;  %v22_v40 = vld [vmem:[%s1558_s1 + $0x10] sm:$0xff] }
  0x19   :  { %v26_v41 = vld [vmem:[%s1558_s1 + $0x30] sm:$0xff]  ;;  %v28_v42 = vld [vmem:[%s1558_s1 + $0x40] sm:$0xff]  ;;  %v967_v43 = vpack.c.bf16 %v127_v38, %v126_v37  ;;  %v129_v45 = vld [vmem:[%s1557_s0 + $0x228] sm:$0xff] }
  0x1a   :  { %922 = vmatpush3.bf16.msra.mxu0 %v921_v10  ;;  %v128_v44 = vld [vmem:[%s1557_s0 + $0x220] sm:$0xff]  ;;  %v25_v46 = vld [vmem:[%s1558_s1 + $0x28] sm:$0xff]  ;;  %v27_v47 = vld [vmem:[%s1558_s1 + $0x38] sm:$0xff] }
  0x1b   :  { %954 = vmatpush3.bf16.msra.mxu1 %v953_v13  ;;  %924 = vmatprep.subr.bf16.mxu0 %v923_v14  ;;  %v31_v48 = vld [vmem:[%s1558_s1 + $0x58] sm:$0xff]  ;;  %v33_v49 = vld [vmem:[%s1558_s1 + $0x68] sm:$0xff]  ;;  %v971_v50 = vpack.c.bf16 %v129_v45, %v128_v44  ;;  %v130_v51 = vld [vmem:[%s1557_s0 + $0x230] sm:$0xff] }
  0x1c   :  { %956 = vmatprep.subr.bf16.mxu1 %v955_v18  ;;  %v131_v52 = vld [vmem:[%s1557_s0 + $0x238] sm:$0xff]  ;;  %v30_v53 = vld [vmem:[%s1558_s1 + $0x50] sm:$0xff]  ;;  %v32_v54 = vld [vmem:[%s1558_s1 + $0x60] sm:$0xff] }
  0x1d   :  { %v36_v55 = vld [vmem:[%s1558_s1 + $0x80] sm:$0xff]  ;;  %v38_v56 = vld [vmem:[%s1558_s1 + $0x90] sm:$0xff]  ;;  %v975_v57 = vpack.c.bf16 %v131_v52, %v130_v51  ;;  %v35_v58 = vld [vmem:[%s1558_s1 + $0x78] sm:$0xff] }
  0x1e   :  { %926 = vmatpush3.bf16.msra.mxu0 %v925_v24  ;;  %v37_v59 = vld [vmem:[%s1558_s1 + $0x88] sm:$0xff]  ;;  %v43_v61 = vld [vmem:[%s1558_s1 + $0xb8] sm:$0xff]  ;;  %v40_v62 = vld [vmem:[%s1558_s1 + $0xa0] sm:$0xff] }
  0x1f   :  { %958 = vmatpush3.bf16.msra.mxu1 %v957_v25  ;;  %928 = vmatprep.subr.bf16.mxu0 %v927_v26  ;;  %v41_v60 = vld [vmem:[%s1558_s1 + $0xa8] sm:$0xff]  ;;  %v42_v63 = vld [vmem:[%s1558_s1 + $0xb0] sm:$0xff]  ;;  %v48_v1 = vld [vmem:[%s1558_s1 + $0xe0] sm:$0xff] }
  0x20   :  { %960 = vmatprep.subr.bf16.mxu1 %v959_v30  ;;  %v46_v0 = vld [vmem:[%s1558_s1 + $0xd0] sm:$0xff]  ;;  %v45_v2 = vld [vmem:[%s1558_s1 + $0xc8] sm:$0xff]  ;;  %v47_v3 = vld [vmem:[%s1558_s1 + $0xd8] sm:$0xff] }
  0x21   :  { %v51_v4 = vld [vmem:[%s1558_s1 + $0xf8] sm:$0xff]  ;;  %v53_v5 = vld [vmem:[%s1558_s1 + $0x108] sm:$0xff]  ;;  %v50_v6 = vld [vmem:[%s1558_s1 + $0xf0] sm:$0xff] }
  0x22   :  { %930 = vmatpush3.bf16.msra.mxu0 %v929_v34  ;;  %v52_v7 = vld [vmem:[%s1558_s1 + $0x100] sm:$0xff]  ;;  %v58_v9 = vld [vmem:[%s1558_s1 + $0x130] sm:$0xff]  ;;  %v55_v10 = vld [vmem:[%s1558_s1 + $0x118] sm:$0xff] }
  0x23   :  { %962 = vmatpush3.bf16.msra.mxu1 %v961_v35  ;;  %964 = vmatprep.subr.bf16.mxu0 %v963_v36  ;;  %v56_v8 = vld [vmem:[%s1558_s1 + $0x120] sm:$0xff]  ;;  %v57_v11 = vld [vmem:[%s1558_s1 + $0x128] sm:$0xff]  ;;  %v34_v16 = vld [vmem:[%s1558_s1 + $0x70] sm:$0xff] }
  0x24   :  { %979 = vmatprep.subr.bf16.mxu1 %v963_v36  ;;  %v24_v12 = vld [vmem:[%s1558_s1 + $0x20] sm:$0xff]  ;;  %v29_v14 = vld [vmem:[%s1558_s1 + $0x48] sm:$0xff]  ;;  %v54_v17 = vld [vmem:[%s1558_s1 + $0x110] sm:$0xff] }
  0x25   :  { %222 = vmatmul.mubr.f32.vlgmr.msra.gmra.mrb[0].mxu0 %v20_v39  ;;  %v44_v13 = vld [vmem:[%s1558_s1 + $0xc0] sm:$0xff]  ;;  %v49_v15 = vld [vmem:[%s1558_s1 + $0xe8] sm:$0xff]  ;;  %v39_v18 = vld [vmem:[%s1558_s1 + $0x98] sm:$0xff] }
  0x26   :  { %327 = vmatmul.mubr.f32.vlgmr.msra.gmra.mrb[0].mxu1 %v22_v40  ;;  %966 = vmatpush3.bf16.msra.mxu0 %v963_v36  ;;  %v59_v19 = vld [vmem:[%s1558_s1 + $0x138] sm:$0xff] }
  0x27   :  { %226 = vmatprep.mubr.f32.mxu0 %v26_v41  ;;  %331 = vmatprep.mubr.f32.mxu1 %v28_v42 }
  0x28   :  { %983 = vmatpush3.bf16.msra.mxu1 %v963_v36  ;;  %968 = vmatprep.subr.bf16.mxu0 %v967_v43 }
  0x29   :  { %227 = vmatmul.mubr.f32.gmra.mrb[2].mxu0 %v25_v46  ;;  %980 = vmatprep.subr.bf16.mxu1 %v967_v43 }
  0x2a   :  { %332 = vmatmul.mubr.f32.gmra.mrb[2].mxu1 %v27_v47  ;;  %231 = vmatprep.mubr.f32.mxu0 %v31_v48 }
  0x2b   :  { %336 = vmatprep.mubr.f32.mxu1 %v33_v49  ;;  %970 = vmatpush3.bf16.msra.mxu0 %v967_v43 }
  0x2c   :  { %984 = vmatpush3.bf16.msra.mxu1 %v967_v43  ;;  %972 = vmatprep.subr.bf16.mxu0 %v971_v50 }
  0x2d   :  { %232 = vmatmul.mubr.f32.gmra.mrb[4].mxu0 %v30_v53  ;;  %981 = vmatprep.subr.bf16.mxu1 %v971_v50 }
  0x2e   :  { %337 = vmatmul.mubr.f32.gmra.mrb[4].mxu1 %v32_v54  ;;  %236 = vmatprep.mubr.f32.mxu0 %v36_v55 }
  0x2f   :  { %341 = vmatprep.mubr.f32.mxu1 %v38_v56  ;;  %974 = vmatpush3.bf16.msra.mxu0 %v971_v50 }
  0x30   :  { %985 = vmatpush3.bf16.msra.mxu1 %v971_v50  ;;  %976 = vmatprep.subr.bf16.mxu0 %v975_v57 }
  0x31   :  { %237 = vmatmul.mubr.f32.gmra.mrb[6].mxu0 %v35_v58  ;;  %982 = vmatprep.subr.bf16.mxu1 %v975_v57 }
  0x32   :  { %342 = vmatmul.mubr.f32.gmra.mrb[6].mxu1 %v37_v59  ;;  %241 = vmatprep.mubr.f32.mxu0 %v41_v60 }
  0x33   :  { %346 = vmatprep.mubr.f32.mxu1 %v43_v61  ;;  %978 = vmatpush3.bf16.msra.mxu0 %v975_v57 }
  0x34   :  { %986 = vmatpush3.bf16.msra.mxu1 %v975_v57 }
  0x35   :  { %242 = vmatmul.mubr.f32.gmra.mrb[8].mxu0 %v40_v62 }
  0x36   :  { %347 = vmatmul.mubr.f32.gmra.mrb[8].mxu1 %v42_v63  ;;  %246 = vmatprep.mubr.f32.mxu0 %v46_v0 }
  0x37   :  { %351 = vmatprep.mubr.f32.mxu1 %v48_v1 }
  0x39   :  { %247 = vmatmul.mubr.f32.gmra.mrb[10].mxu0 %v45_v2 }
  0x3a   :  { %352 = vmatmul.mubr.f32.gmra.mrb[10].mxu1 %v47_v3  ;;  %251 = vmatprep.mubr.f32.mxu0 %v51_v4 }
  0x3b   :  { %356 = vmatprep.mubr.f32.mxu1 %v53_v5 }
  0x3d   :  { %252 = vmatmul.mubr.f32.gmra.mrb[12].mxu0 %v50_v6 }
  0x3e   :  { %357 = vmatmul.mubr.f32.gmra.mrb[12].mxu1 %v52_v7  ;;  %256 = vmatprep.mubr.f32.mxu0 %v56_v8 }
  0x3f   :  { %361 = vmatprep.mubr.f32.mxu1 %v58_v9 }
  0x41   :  { %257 = vmatmul.mubr.f32.gmra.mrb[14].mxu0 %v55_v10 }
  0x42   :  { %362 = vmatmul.mubr.f32.gmra.mrb[14].mxu1 %v57_v11  ;;  %887 = vmatprep.mubr.msk.f32.mxu0 %vm132_vm0, %v24_v12 }
  0x43   :  { %893 = vmatprep.mubr.msk.f32.mxu1 %vm132_vm0, %v44_v13 }
  0x45   :  { %888 = vmatmul.mubr.msk.f32.vlgmr.msra.gmra.mrb[16].mxu0 %vm132_vm0, %v29_v14 }
  0x46   :  { %894 = vmatmul.mubr.msk.f32.vlgmr.msra.gmra.mrb[16].mxu1 %vm132_vm0, %v49_v15  ;;  %890 = vmatprep.mubr.msk.f32.mxu0 %vm132_vm0, %v34_v16 }
  0x47   :  { %896 = vmatprep.mubr.msk.f32.mxu1 %vm132_vm0, %v54_v17 }
  0x49   :  { %891 = vmatmul.mubr.msk.f32.gmra.mrb[18].mxu0 %vm132_vm0, %v39_v18 }
  0x4a   :  { %897 = vmatmul.mubr.msk.f32.gmra.mrb[18].mxu1 %vm132_vm0, %v59_v19 }
  0xf8   :  { %v775_v20 = vpop.f32.mrb[0].mxu0 }
  0xf9   :  { %v831_v21 = vpop.f32.mrb[0].mxu1  ;;  %v776_v22 = vpop.f32.mrb[1].mxu0 }
  0xfa   :  { %v777_v23 = vadd.f32 %v776_v22, %v775_v20  ;;  %v832_v24 = vpop.f32.mrb[1].mxu1 }
  0xfb   :  { %v833_v25 = vadd.f32 %v832_v24, %v831_v21 }
  0xfc   :  { %v778_v26 = vpop.f32.mrb[2].mxu0 }
  0xfd   :  { %v834_v27 = vpop.f32.mrb[2].mxu1  ;;  %v779_v28 = vpop.f32.mrb[3].mxu0  ;;  %v329_v29 = vadd.f32 %v833_v25, %v777_v23 }
  0xfe   :  { %v780_v30 = vadd.f32 %v779_v28, %v778_v26  ;;  %v835_v31 = vpop.f32.mrb[3].mxu1  ;;  %v520_v28 = vlaneseq }
  0xff   :  { %v836_v32 = vadd.f32 %v835_v31, %v834_v27 }
 0x100   :  { %v781_v33 = vpop.f32.mrb[4].mxu0 }
 0x101   :  { %v837_v34 = vpop.f32.mrb[4].mxu1  ;;  %v782_v35 = vpop.f32.mrb[5].mxu0  ;;  %v334_v36 = vadd.f32 %v836_v32, %v780_v30 }
 0x102   :  { %v783_v37 = vadd.f32 %v782_v35, %v781_v33  ;;  %v838_v38 = vpop.f32.mrb[5].mxu1 }
 0x103   :  { %v839_v39 = vadd.f32 %v838_v38, %v837_v34 }
 0x104   :  { %v784_v40 = vpop.f32.mrb[6].mxu0 }
 0x105   :  { %v840_v41 = vpop.f32.mrb[6].mxu1  ;;  %v785_v42 = vpop.f32.mrb[7].mxu0  ;;  %v339_v43 = vadd.f32 %v839_v39, %v783_v37 }
 0x106   :  { %v786_v44 = vadd.f32 %v785_v42, %v784_v40  ;;  %v841_v45 = vpop.f32.mrb[7].mxu1 }
 0x107   :  { %v842_v46 = vadd.f32 %v841_v45, %v840_v41 }
 0x108   :  { %v787_v47 = vpop.f32.mrb[8].mxu0 }
 0x109   :  { %v843_v48 = vpop.f32.mrb[8].mxu1  ;;  %v788_v49 = vpop.f32.mrb[9].mxu0  ;;  %v344_v50 = vadd.f32 %v842_v46, %v786_v44 }
 0x10a   :  { %v789_v51 = vadd.f32 %v788_v49, %v787_v47  ;;  %v844_v52 = vpop.f32.mrb[9].mxu1 }
 0x10b   :  { %v845_v53 = vadd.f32 %v844_v52, %v843_v48 }
 0x10c   :  { %v790_v54 = vpop.f32.mrb[10].mxu0 }
 0x10d   :  { %v846_v55 = vpop.f32.mrb[10].mxu1  ;;  %v791_v56 = vpop.f32.mrb[11].mxu0  ;;  %v349_v57 = vadd.f32 %v845_v53, %v789_v51 }
 0x10e   :  { %v792_v58 = vadd.f32 %v791_v56, %v790_v54  ;;  %v847_v59 = vpop.f32.mrb[11].mxu1 }
 0x10f   :  { %v848_v60 = vadd.f32 %v847_v59, %v846_v55 }
 0x110   :  { %v793_v61 = vpop.f32.mrb[12].mxu0 }
 0x111   :  { %v849_v62 = vpop.f32.mrb[12].mxu1  ;;  %v794_v63 = vpop.f32.mrb[13].mxu0  ;;  %v354_v0 = vadd.f32 %v848_v60, %v792_v58 }
 0x112   :  { %v795_v1 = vadd.f32 %v794_v63, %v793_v61  ;;  %v850_v2 = vpop.f32.mrb[13].mxu1 }
 0x113   :  { %v851_v3 = vadd.f32 %v850_v2, %v849_v62 }
 0x114   :  { %v796_v4 = vpop.f32.mrb[14].mxu0 }
 0x115   :  { %v852_v5 = vpop.f32.mrb[14].mxu1  ;;  %v797_v6 = vpop.f32.mrb[15].mxu0  ;;  %v359_v7 = vadd.f32 %v851_v3, %v795_v1 }
 0x116   :  { %v798_v8 = vadd.f32 %v797_v6, %v796_v4  ;;  %v853_v9 = vpop.f32.mrb[15].mxu1  ;;  %v1006_v6 = vmov 0  }
 0x117   :  { %v854_v10 = vadd.f32 %v853_v9, %v852_v5  ;;  %988 = vset.pattern.permute.xlu1 %v1006_v6  ;;  %989 = vset.pattern.permute.xlu0 %v1006_v6 }
 0x118   :  { %v889_v11 = vpop.f32.mrb[16].mxu0 }
 0x119   :  { %v1381_v12 = vadd.f32 %v889_v11, %v334_v36  ;;  %v895_v13 = vpop.f32.mrb[16].mxu1  ;;  %v433_v14 = vpop.f32.mrb[17].mxu0  ;;  %v364_v15 = vadd.f32 %v854_v10, %v798_v8 }
 0x11a   :  { %v1383_v16 = vadd.f32 %v895_v13, %v354_v0  ;;  %v1385_v17 = vadd.f32 %v433_v14, %v329_v29  ;;  %v453_v18 = vpop.f32.mrb[17].mxu1  ;;  %v521_v29 = vand.u32 127, %v520_v28 }
 0x11b   :  { %v1387_v19 = vadd.f32 %v453_v18, %v349_v57  ;;  %498 = vadd.xlane.f32.xlu0 %v1381_v12 }
 0x11c   :  { %506 = vadd.xlane.f32.xlu1 %v1383_v16  ;;  %v892_v20 = vpop.f32.mrb[18].mxu0  ;;  %vm522_vm1 = vcmp.lt.s32.totalorder %v521_v29, 32 }
 0x11d   :  { %v1391_v21 = vadd.f32 %v892_v20, %v344_v50  ;;  %v898_v22 = vpop.f32.mrb[18].mxu1  ;;  %v443_v23 = vpop.f32.mrb[19].mxu0 }
 0x11e   :  { %v1393_v24 = vadd.f32 %v898_v22, %v364_v15  ;;  %v1395_v25 = vadd.f32 %v443_v23, %v339_v43  ;;  %v463_v26 = vpop.f32.mrb[19].mxu1 }
 0x11f   :  { %v1397_v27 = vadd.f32 %v463_v26, %v359_v7  ;;  %496 = vadd.xlane.f32.xlu0 %v1385_v17 }
 0x120   :  { %502 = vadd.xlane.f32.xlu1 %v1391_v21 }
 0x123   :  { %504 = vadd.xlane.f32.xlu0 %v1387_v19 }
 0x124   :  { %500 = vadd.xlane.f32.xlu1 %v1395_v25 }
 0x127   :  { %508 = vadd.xlane.f32.xlu0 %v1397_v27 }
 0x128   :  { %510 = vadd.xlane.f32.xlu1 %v1393_v24 }
 0x1a8   :  { %v499_v30 = vpop.xlane.xlu0 %498 }
 0x1a9   :  { %v507_v31 = vpop.xlane.xlu1 %506  ;;  %v1405_v32 = vmul.f32 0.03125, %v499_v30 }
 0x1aa   :  { %v1407_v33 = vmul.f32 0.03125, %v507_v31 }
 0x1ab   :  { %v524_v34 = vsub.f32 %v1381_v12, %v1405_v32 }
 0x1ac   :  { %v528_v35 = vsub.f32 %v1383_v16, %v1407_v33  ;;  %v497_v36 = vpop.xlane.xlu0 %496 }
 0x1ad   :  { %v503_v37 = vpop.xlane.xlu1 %502  ;;  %v1413_v38 = vmul.f32 0.03125, %v497_v36  ;;  %v532_v39 = vsel %vm522_vm1, %v524_v34, 0.0  ;;  %v473_v34 = vld [vmem:[%s1559_s2 + $0x8] sm:$0xff] }
 0x1ae   :  { %v1416_v40 = vmul.f32 0.03125, %v503_v37  ;;  %v540_v41 = vmul.f32 %v532_v39, %v532_v39  ;;  %v536_v43 = vsel %vm522_vm1, %v528_v35, 0.0 }
 0x1af   :  { %v523_v42 = vsub.f32 %v1385_v17, %v1413_v38  ;;  %v544_v50 = vmul.f32 %v536_v43, %v536_v43  ;;  %v477_v43 = vld [vmem:[%s1559_s2 + $0x28] sm:$0xff] }
 0x1b0   :  { %v526_v44 = vsub.f32 %v1391_v21, %v1416_v40  ;;  %549 = vadd.xlane.f32.xlu1 %v540_v41  ;;  %v505_v45 = vpop.xlane.xlu0 %504 }
 0x1b1   :  { %v501_v46 = vpop.xlane.xlu1 %500  ;;  %v1423_v47 = vmul.f32 0.03125, %v505_v45  ;;  %v531_v48 = vsel %vm522_vm1, %v523_v42, 0.0 }
 0x1b2   :  { %v1426_v49 = vmul.f32 0.03125, %v501_v46  ;;  %v539_v51 = vmul.f32 %v531_v48, %v531_v48  ;;  %v534_v53 = vsel %vm522_vm1, %v526_v44, 0.0  ;;  %v472_v44 = vld [vmem:[%s1559_s2] sm:$0xff] }
 0x1b3   :  { %v527_v52 = vsub.f32 %v1387_v19, %v1423_v47  ;;  %v542_v60 = vmul.f32 %v534_v53, %v534_v53 }
 0x1b4   :  { %v525_v54 = vsub.f32 %v1395_v25, %v1426_v49  ;;  %557 = vadd.xlane.f32.xlu1 %v544_v50  ;;  %547 = vadd.xlane.f32.xlu0 %v539_v51  ;;  %v509_v55 = vpop.xlane.xlu0 %508 }
 0x1b5   :  { %v511_v56 = vpop.xlane.xlu1 %510  ;;  %v1433_v57 = vmul.f32 0.03125, %v509_v55  ;;  %v535_v58 = vsel %vm522_vm1, %v527_v52, 0.0  ;;  %v476_v55 = vld [vmem:[%s1559_s2 + $0x20] sm:$0xff] }
 0x1b6   :  { %v1436_v59 = vmul.f32 0.03125, %v511_v56  ;;  %v543_v61 = vmul.f32 %v535_v58, %v535_v58  ;;  %v533_v63 = vsel %vm522_vm1, %v525_v54, 0.0  ;;  %v481_v54 = vld [vmem:[%s1560_s3 + $0x8] sm:$0xff]  ;;  %v475_v56 = vld [vmem:[%s1559_s2 + $0x18] sm:$0xff] }
 0x1b7   :  { %v529_v62 = vsub.f32 %v1397_v27, %v1433_v57  ;;  %v541_v2 = vmul.f32 %v533_v63, %v533_v63 }
 0x1b8   :  { %v530_v0 = vsub.f32 %v1393_v24, %v1436_v59  ;;  %553 = vadd.xlane.f32.xlu1 %v542_v60  ;;  %555 = vadd.xlane.f32.xlu0 %v543_v61 }
 0x1b9   :  { %v537_v4 = vsel %vm522_vm1, %v529_v62, 0.0 }
 0x1ba   :  { %v538_v1 = vsel %vm522_vm1, %v530_v0, 0.0  ;;  %v545_v5 = vmul.f32 %v537_v4, %v537_v4 }
 0x1bb   :  { %v546_v3 = vmul.f32 %v538_v1, %v538_v1  ;;  %v485_v1 = vld [vmem:[%s1560_s3 + $0x28] sm:$0xff] }
 0x1bc   :  { %551 = vadd.xlane.f32.xlu0 %v541_v2  ;;  %v479_v2 = vld [vmem:[%s1559_s2 + $0x38] sm:$0xff] }
 0x1bd   :  { %561 = vadd.xlane.f32.xlu1 %v546_v3 }
 0x1c0   :  { %559 = vadd.xlane.f32.xlu0 %v545_v5 }
 0x23d   :  { %v550_v7 = vpop.xlane.xlu1 %549 }
 0x23e   :  { %v564_v8 = vmul.f32 0.03125, %v550_v7 }
 0x240   :  { %v572_v9 = vadd.f32 1e-05, %v564_v8 }
 0x241   :  { %v558_v10 = vpop.xlane.xlu1 %557  ;;  %v548_v11 = vpop.xlane.xlu0 %547 }
 0x242   :  { %990 = vrsqrt.f32 %v572_v9  ;;  %v568_v13 = vmul.f32 0.03125, %v558_v10  ;;  %v563_v14 = vmul.f32 0.03125, %v548_v11  ;;  %v487_v10 = vld [vmem:[%s1560_s3 + $0x38] sm:$0xff]  ;;  %v474_v11 = vld [vmem:[%s1559_s2 + $0x10] sm:$0xff] }
 0x244   :  { %v576_v15 = vadd.f32 1e-05, %v568_v13  ;;  %v571_v18 = vadd.f32 1e-05, %v563_v14 }
 0x245   :  { %v554_v20 = vpop.xlane.xlu1 %553  ;;  %v556_v22 = vpop.xlane.xlu0 %555 }
 0x246   :  { %992 = vrsqrt.f32 %v576_v15  ;;  %v566_v23 = vmul.f32 0.03125, %v554_v20  ;;  %v567_v26 = vmul.f32 0.03125, %v556_v22  ;;  %v478_v15 = vld [vmem:[%s1559_s2 + $0x30] sm:$0xff]  ;;  %v480_v20 = vld [vmem:[%s1560_s3] sm:$0xff] }
 0x247   :  { %994 = vrsqrt.f32 %v571_v18 }
 0x248   :  { %v574_v28 = vadd.f32 1e-05, %v566_v23  ;;  %v575_v29 = vadd.f32 1e-05, %v567_v26  ;;  %v484_v26 = vld [vmem:[%s1560_s3 + $0x20] sm:$0xff] }
 0x249   :  { %v552_v30 = vpop.xlane.xlu0 %551 }
 0x24a   :  { %996 = vrsqrt.f32 %v574_v28  ;;  %v562_v31 = vpop.xlane.xlu1 %561  ;;  %v565_v39 = vmul.f32 0.03125, %v552_v30 }
 0x24b   :  { %998 = vrsqrt.f32 %v575_v29  ;;  %v570_v35 = vmul.f32 0.03125, %v562_v31 }
 0x24c   :  { %v991_v36 = vpop.eup %990  ;;  %v573_v48 = vadd.f32 1e-05, %v565_v39 }
 0x24d   :  { %v578_v37 = vadd.f32 1e-05, %v570_v35  ;;  %v588_v41 = vmul.f32 %v991_v36, %v473_v34  ;;  %v560_v42 = vpop.xlane.xlu0 %559 }
 0x24e   :  { %v569_v50 = vmul.f32 0.03125, %v560_v42 }
 0x24f   :  { %1000 = vrsqrt.f32 %v578_v37  ;;  %618 = vperm.xlu1 %988, %v588_v41   ;;  %v596_v53 = vmul.f32 %v588_v41, %v1405_v32  ;;  %v489_v41 = vld [vmem:[%s1561_s4 + $0x8] sm:$0xff] }
 0x250   :  { %v993_v45 = vpop.eup %992  ;;  %1002 = vrsqrt.f32 %v573_v48  ;;  %v577_v61 = vadd.f32 1e-05, %v569_v50 }
 0x251   :  { %v995_v46 = vpop.eup %994  ;;  %v592_v51 = vmul.f32 %v993_v45, %v477_v43  ;;  %v604_v62 = vsub.f32 %v481_v54, %v596_v53 }
 0x252   :  { %v587_v52 = vmul.f32 %v995_v46, %v472_v44  ;;  %1004 = vrsqrt.f32 %v577_v61  ;;  %v493_v46 = vld [vmem:[%s1561_s4 + $0x28] sm:$0xff] }
 0x253   :  { %638 = vperm.xlu1 %988, %v592_v51   ;;  %v600_v63 = vmul.f32 %v592_v51, %v1407_v33  ;;  %v483_v33 = vld [vmem:[%s1560_s3 + $0x18] sm:$0xff] }
 0x254   :  { %v997_v58 = vpop.eup %996  ;;  %613 = vperm.xlu0 %989, %v587_v52   ;;  %v595_v18 = vmul.f32 %v587_v52, %v1413_v38  ;;  %v482_v38 = vld [vmem:[%s1560_s3 + $0x10] sm:$0xff] }
 0x255   :  { %v999_v60 = vpop.eup %998  ;;  %v590_v0 = vmul.f32 %v997_v58, %v475_v56  ;;  %v608_v4 = vsub.f32 %v485_v1, %v600_v63 }
 0x256   :  { %v591_v32 = vmul.f32 %v999_v60, %v476_v55  ;;  %v603_v22 = vsub.f32 %v480_v20, %v595_v18 }
 0x257   :  { %v598_v5 = vmul.f32 %v590_v0, %v1416_v40 }
 0x258   :  { %666 = vperm.xlu0 %989, %v604_v62   ;;  %633 = vperm.xlu1 %988, %v591_v32   ;;  %v599_v23 = vmul.f32 %v591_v32, %v1423_v47  ;;  %v486_v47 = vld [vmem:[%s1560_s3 + $0x30] sm:$0xff] }
 0x259   :  { %v1001_v3 = vpop.eup %1000  ;;  %v606_v7 = vsub.f32 %v483_v33, %v598_v5 }
 0x25a   :  { %v594_v6 = vmul.f32 %v1001_v3, %v479_v2  ;;  %v1003_v9 = vpop.eup %1002  ;;  %v607_v28 = vsub.f32 %v484_v26, %v599_v23 }
 0x25b   :  { %v589_v13 = vmul.f32 %v1003_v9, %v474_v11 }
 0x25c   :  { %686 = vperm.xlu0 %989, %v608_v4   ;;  %628 = vperm.xlu1 %988, %v590_v0   ;;  %v602_v8 = vmul.f32 %v594_v6, %v1436_v59  ;;  %v1005_v14 = vpop.eup %1004 }
 0x25d   :  { %v593_v59 = vmul.f32 %v1005_v14, %v478_v15  ;;  %v597_v29 = vmul.f32 %v589_v13, %v1426_v49 }
 0x25e   :  { %v610_v40 = vsub.f32 %v487_v10, %v602_v8 }
 0x25f   :  { %v605_v30 = vsub.f32 %v482_v38, %v597_v29  ;;  %v601_v31 = vmul.f32 %v593_v59, %v1433_v57 }
 0x260   :  { %676 = vperm.xlu0 %989, %v606_v7   ;;  %648 = vperm.xlu1 %988, %v594_v6   ;;  %v492_v7 = vld [vmem:[%s1561_s4 + $0x20] sm:$0xff] }
 0x261   :  { %v609_v34 = vsub.f32 %v486_v47, %v601_v31 }
 0x264   :  { %696 = vperm.xlu0 %989, %v610_v40   ;;  %623 = vperm.xlu1 %988, %v589_v13   ;;  %v490_v40 = vld [vmem:[%s1561_s4 + $0x10] sm:$0xff] }
 0x268   :  { %643 = vperm.xlu1 %988, %v593_v59  }
 0x26c   :  { %661 = vperm.xlu1 %988, %v603_v22  }
 0x270   :  { %681 = vperm.xlu1 %988, %v607_v28  }
 0x274   :  { %671 = vperm.xlu1 %988, %v605_v30  }
 0x278   :  { %691 = vperm.xlu1 %988, %v609_v34  }
 0x2ce   :  { %v619_v35 = vpop.permute.xlu1 %618 }
 0x2cf   :  { %v652_v49 = vmul.f32 %v619_v35, %v1381_v12 }
 0x2d2   :  { %v639_v36 = vpop.permute.xlu1 %638 }
 0x2d3   :  { %v614_v37 = vpop.permute.xlu0 %613  ;;  %v656_v57 = vmul.f32 %v639_v36, %v1383_v16  ;;  %v491_v16 = vld [vmem:[%s1561_s4 + $0x18] sm:$0xff] }
 0x2d4   :  { %v651_v3 = vmul.f32 %v614_v37, %v1385_v17 }
 0x2d7   :  { %v634_v39 = vpop.permute.xlu1 %633  ;;  %v667_v42 = vpop.permute.xlu0 %666 }
 0x2d8   :  { %v700_v43 = vadd.f32 %v667_v42, %v652_v49  ;;  %v655_v6 = vmul.f32 %v634_v39, %v1387_v19 }
 0x2da   :  { %v708_v44 = vadd.f32 %v700_v43, %v489_v41 }
 0x2db   :  { %v629_v45 = vpop.permute.xlu1 %628  ;;  %v687_v48 = vpop.permute.xlu0 %686 }
 0x2dc   :  { %v716_v50 = vmax.f32 %v708_v44, 0.0  ;;  %v704_v51 = vadd.f32 %v687_v48, %v656_v57  ;;  %v654_v12 = vmul.f32 %v629_v45, %v1391_v21  ;;  %v495_v21 = vld [vmem:[%s1561_s4 + $0x38] sm:$0xff] }
 0x2de   :  { %724 = vst [vmem:[%s1562_s5 + $0x8] sm:$0xff] %v716_v50  ;;  %v712_v52 = vadd.f32 %v704_v51, %v493_v46 }
 0x2df   :  { %v649_v53 = vpop.permute.xlu1 %648  ;;  %v677_v54 = vpop.permute.xlu0 %676 }
 0x2e0   :  { %v720_v55 = vmax.f32 %v712_v52, 0.0  ;;  %v702_v56 = vadd.f32 %v677_v54, %v654_v12  ;;  %v658_v58 = vmul.f32 %v649_v53, %v1393_v24  ;;  %v488_v24 = vld [vmem:[%s1561_s4] sm:$0xff] }
 0x2e2   :  { %728 = vst [vmem:[%s1562_s5 + $0x28] sm:$0xff] %v720_v55  ;;  %v710_v60 = vadd.f32 %v702_v56, %v491_v16 }
 0x2e3   :  { %v624_v61 = vpop.permute.xlu1 %623  ;;  %v697_v62 = vpop.permute.xlu0 %696 }
 0x2e4   :  { %v718_v32 = vmax.f32 %v710_v60, 0.0  ;;  %v706_v63 = vadd.f32 %v697_v62, %v658_v58  ;;  %v653_v10 = vmul.f32 %v624_v61, %v1395_v25  ;;  %v494_v25 = vld [vmem:[%s1561_s4 + $0x30] sm:$0xff] }
 0x2e6   :  { %726 = vst [vmem:[%s1562_s5 + $0x18] sm:$0xff] %v718_v32  ;;  %v714_v0 = vadd.f32 %v706_v63, %v495_v21 }
 0x2e7   :  { %v644_v1 = vpop.permute.xlu1 %643 }
 0x2e8   :  { %v722_v2 = vmax.f32 %v714_v0, 0.0  ;;  %v657_v15 = vmul.f32 %v644_v1, %v1397_v27 }
 0x2ea   :  { %730 = vst [vmem:[%s1562_s5 + $0x38] sm:$0xff] %v722_v2 }
 0x2eb   :  { %v662_v4 = vpop.permute.xlu1 %661 }
 0x2ec   :  { %v699_v5 = vadd.f32 %v662_v4, %v651_v3 }
 0x2ee   :  { %v707_v33 = vadd.f32 %v699_v5, %v488_v24 }
 0x2ef   :  { %v682_v8 = vpop.permute.xlu1 %681 }
 0x2f0   :  { %v715_v9 = vmax.f32 %v707_v33, 0.0  ;;  %v703_v17 = vadd.f32 %v682_v8, %v655_v6 }
 0x2f2   :  { %723 = vst [vmem:[%s1562_s5] sm:$0xff] %v715_v9  ;;  %v711_v11 = vadd.f32 %v703_v17, %v492_v7 }
 0x2f3   :  { %v672_v19 = vpop.permute.xlu1 %671 }
 0x2f4   :  { %v719_v13 = vmax.f32 %v711_v11, 0.0  ;;  %v701_v14 = vadd.f32 %v672_v19, %v653_v10 }
 0x2f6   :  { %727 = vst [vmem:[%s1562_s5 + $0x20] sm:$0xff] %v719_v13  ;;  %v709_v59 = vadd.f32 %v701_v14, %v490_v40 }
 0x2f7   :  { %v692_v18 = vpop.permute.xlu1 %691 }
 0x2f8   :  { %v717_v20 = vmax.f32 %v709_v59, 0.0  ;;  %v705_v22 = vadd.f32 %v692_v18, %v657_v15 }
 0x2fa   :  { %725 = vst [vmem:[%s1562_s5 + $0x10] sm:$0xff] %v717_v20  ;;  %v713_v23 = vadd.f32 %v705_v22, %v494_v25 }
 0x2fc   :  { %v721_v26 = vmax.f32 %v713_v23, 0.0 }
 0x2fe   :  { %729 = vst [vmem:[%s1562_s5 + $0x30] sm:$0xff] %v721_v26 }

// kernel: _lambda_.16
= control target key start
LH: loop header
LB: loop body
LE: loop exit
PB: predicated region body
PF: predicated region fallthrough
CT: control target
= control target key end

     0   :  { %vm29_vm0 = vcmask 261120   ;;  %v199_v22 = vlaneseq  ;;  %s691_s0 = inlined_call_operand.vmem [shape: f32[32,128], index: 0, kind: input, shape index: {}]   ;;  %s692_s1 = inlined_call_operand.vmem [shape: f32[64,32], index: 1, kind: input, shape index: {}]   ;;  %s693_s2 = inlined_call_operand.vmem [shape: f32[64,1], index: 2, kind: input, shape index: {}]   ;;  %s694_s3 = inlined_call_operand.vmem [shape: f32[64,1], index: 3, kind: input, shape index: {}]   ;;  %s695_s4 = inlined_call_operand.vmem [shape: f32[64,128], index: 4, kind: output, shape index: {}]  }
   0x1   :  { %v25_v0 = vld [vmem:[%s691_s0] sm:$0xff]  ;;  %v26_v1 = vld [vmem:[%s691_s0 + $0x8] sm:$0xff]  ;;  %v27_v2 = vld [vmem:[%s691_s0 + $0x10] sm:$0xff] }
   0x2   :  { %v438_v3 = vpack.c.bf16 %v26_v1, %v25_v0  ;;  %v28_v4 = vld [vmem:[%s691_s0 + $0x18] sm:$0xff]  ;;  %v17_v5 = vld [vmem:[%s692_s1] sm:$0xff]  ;;  %v18_v8 = vld [vmem:[%s692_s1 + $0x8] sm:$0xff]  ;;  %v200_v23 = vand.u32 127, %v199_v22  ;;  %v469_v0 = vmov 0  }
   0x3   :  { %v21_v6 = vld [vmem:[%s692_s1 + $0x20] sm:$0xff]  ;;  %v442_v7 = vpack.c.bf16 %v28_v4, %v27_v2  ;;  %426 = vmatprep.mubr.msk.f32.mxu0 %vm29_vm0, %v17_v5  ;;  %v22_v9 = vld [vmem:[%s692_s1 + $0x28] sm:$0xff]  ;;  %v19_v10 = vld [vmem:[%s692_s1 + $0x10] sm:$0xff]  ;;  %451 = vset.pattern.permute.xlu1 %v469_v0 }
   0x4   :  { %432 = vmatprep.mubr.msk.f32.mxu1 %vm29_vm0, %v21_v6  ;;  %439 = vmatprep.subr.bf16.mxu0 %v438_v3  ;;  %v23_v11 = vld [vmem:[%s692_s1 + $0x30] sm:$0xff]  ;;  %v20_v12 = vld [vmem:[%s692_s1 + $0x18] sm:$0xff]  ;;  %vm201_vm1 = vcmp.lt.s32.totalorder %v200_v23, 32 }
   0x5   :  { %446 = vmatprep.subr.bf16.mxu1 %v438_v3  ;;  %441 = vmatpush3.bf16.msra.mxu0 %v438_v3  ;;  %v24_v13 = vld [vmem:[%s692_s1 + $0x38] sm:$0xff] }
   0x6   :  { %448 = vmatpush3.bf16.msra.mxu1 %v438_v3  ;;  %443 = vmatprep.subr.bf16.mxu0 %v442_v7 }
   0x7   :  { %447 = vmatprep.subr.bf16.mxu1 %v442_v7  ;;  %452 = vset.pattern.permute.xlu0 %v469_v0 }
   0x9   :  { %445 = vmatpush3.bf16.msra.mxu0 %v442_v7 }
   0xa   :  { %449 = vmatpush3.bf16.msra.mxu1 %v442_v7 }
   0xc   :  { %427 = vmatmul.mubr.msk.f32.vlgmr.msra.gmra.mrb[0].mxu0 %vm29_vm0, %v18_v8 }
   0xd   :  { %433 = vmatmul.mubr.msk.f32.vlgmr.msra.gmra.mrb[0].mxu1 %vm29_vm0, %v22_v9  ;;  %429 = vmatprep.mubr.msk.f32.mxu0 %vm29_vm0, %v19_v10 }
   0xe   :  { %435 = vmatprep.mubr.msk.f32.mxu1 %vm29_vm0, %v23_v11 }
  0x10   :  { %430 = vmatmul.mubr.msk.f32.gmra.mrb[2].mxu0 %vm29_vm0, %v20_v12 }
  0x11   :  { %436 = vmatmul.mubr.msk.f32.gmra.mrb[2].mxu1 %vm29_vm0, %v24_v13 }
  0xdf   :  { %v539_v14 = vpop.f32.mrb[0].mxu0 }
  0xe0   :  { %v541_v15 = vpop.f32.mrb[0].mxu1  ;;  %177 = vadd.xlane.f32.xlu0 %v539_v14  ;;  %v545_v16 = vpop.f32.mrb[1].mxu0 }
  0xe1   :  { %185 = vadd.xlane.f32.xlu1 %v541_v15  ;;  %v547_v17 = vpop.f32.mrb[1].mxu1 }
  0xe3   :  { %v549_v18 = vpop.f32.mrb[2].mxu0 }
  0xe4   :  { %v551_v19 = vpop.f32.mrb[2].mxu1  ;;  %175 = vadd.xlane.f32.xlu0 %v545_v16  ;;  %v555_v20 = vpop.f32.mrb[3].mxu0 }
  0xe5   :  { %181 = vadd.xlane.f32.xlu1 %v549_v18  ;;  %v557_v21 = vpop.f32.mrb[3].mxu1 }
  0xe8   :  { %183 = vadd.xlane.f32.xlu0 %v547_v17 }
  0xe9   :  { %179 = vadd.xlane.f32.xlu1 %v555_v20 }
  0xec   :  { %187 = vadd.xlane.f32.xlu0 %v557_v21 }
  0xed   :  { %189 = vadd.xlane.f32.xlu1 %v551_v19 }
 0x16d   :  { %v178_v25 = vpop.xlane.xlu0 %177 }
 0x16e   :  { %v186_v24 = vpop.xlane.xlu1 %185  ;;  %v565_v27 = vmul.f32 0.03125, %v178_v25 }
 0x16f   :  { %v563_v26 = vmul.f32 0.03125, %v186_v24 }
 0x170   :  { %v203_v29 = vsub.f32 %v539_v14, %v565_v27 }
 0x171   :  { %v207_v28 = vsub.f32 %v541_v15, %v563_v26  ;;  %v176_v30 = vpop.xlane.xlu0 %175 }
 0x172   :  { %v182_v31 = vpop.xlane.xlu1 %181  ;;  %v571_v32 = vmul.f32 0.03125, %v176_v30  ;;  %v211_v34 = vsel %vm201_vm1, %v203_v29, 0.0  ;;  %v160_v29 = vld [vmem:[%s693_s2 + $0x8] sm:$0xff] }
 0x173   :  { %v573_v33 = vmul.f32 0.03125, %v182_v31  ;;  %v219_v35 = vmul.f32 %v211_v34, %v211_v34  ;;  %v215_v38 = vsel %vm201_vm1, %v207_v28, 0.0 }
 0x174   :  { %v202_v36 = vsub.f32 %v545_v16, %v571_v32  ;;  %v223_v45 = vmul.f32 %v215_v38, %v215_v38  ;;  %v164_v38 = vld [vmem:[%s693_s2 + $0x28] sm:$0xff] }
 0x175   :  { %v205_v37 = vsub.f32 %v549_v18, %v573_v33  ;;  %v184_v39 = vpop.xlane.xlu0 %183  ;;  %228 = vadd.xlane.f32.xlu1 %v219_v35 }
 0x176   :  { %v180_v40 = vpop.xlane.xlu1 %179  ;;  %v581_v41 = vmul.f32 0.03125, %v184_v39  ;;  %v210_v43 = vsel %vm201_vm1, %v202_v36, 0.0 }
 0x177   :  { %v583_v42 = vmul.f32 0.03125, %v180_v40  ;;  %v218_v44 = vmul.f32 %v210_v43, %v210_v43  ;;  %v213_v48 = vsel %vm201_vm1, %v205_v37, 0.0  ;;  %v159_v37 = vld [vmem:[%s693_s2] sm:$0xff] }
 0x178   :  { %v206_v46 = vsub.f32 %v547_v17, %v581_v41  ;;  %v221_v55 = vmul.f32 %v213_v48, %v213_v48  ;;  %v168_v48 = vld [vmem:[%s694_s3 + $0x8] sm:$0xff] }
 0x179   :  { %v204_v47 = vsub.f32 %v555_v20, %v583_v42  ;;  %226 = vadd.xlane.f32.xlu0 %v218_v44  ;;  %v188_v49 = vpop.xlane.xlu0 %187  ;;  %236 = vadd.xlane.f32.xlu1 %v223_v45 }
 0x17a   :  { %v190_v50 = vpop.xlane.xlu1 %189  ;;  %v591_v51 = vmul.f32 0.03125, %v188_v49  ;;  %v214_v53 = vsel %vm201_vm1, %v206_v46, 0.0  ;;  %v163_v49 = vld [vmem:[%s693_s2 + $0x20] sm:$0xff] }
 0x17b   :  { %v593_v52 = vmul.f32 0.03125, %v190_v50  ;;  %v222_v54 = vmul.f32 %v214_v53, %v214_v53  ;;  %v212_v58 = vsel %vm201_vm1, %v204_v47, 0.0  ;;  %v162_v50 = vld [vmem:[%s693_s2 + $0x18] sm:$0xff] }
 0x17c   :  { %v208_v56 = vsub.f32 %v557_v21, %v591_v51  ;;  %v220_v60 = vmul.f32 %v212_v58, %v212_v58  ;;  %v172_v58 = vld [vmem:[%s694_s3 + $0x28] sm:$0xff] }
 0x17d   :  { %v209_v57 = vsub.f32 %v551_v19, %v593_v52  ;;  %234 = vadd.xlane.f32.xlu0 %v222_v54  ;;  %232 = vadd.xlane.f32.xlu1 %v221_v55 }
 0x17e   :  { %v216_v62 = vsel %vm201_vm1, %v208_v56, 0.0 }
 0x17f   :  { %v217_v59 = vsel %vm201_vm1, %v209_v57, 0.0  ;;  %v224_v63 = vmul.f32 %v216_v62, %v216_v62 }
 0x180   :  { %v225_v61 = vmul.f32 %v217_v59, %v217_v59 }
 0x181   :  { %230 = vadd.xlane.f32.xlu0 %v220_v60  ;;  %v166_v60 = vld [vmem:[%s693_s2 + $0x38] sm:$0xff] }
 0x182   :  { %240 = vadd.xlane.f32.xlu1 %v225_v61 }
 0x185   :  { %238 = vadd.xlane.f32.xlu0 %v224_v63 }
 0x202   :  { %v229_v1 = vpop.xlane.xlu1 %228 }
 0x203   :  { %v243_v2 = vmul.f32 0.03125, %v229_v1 }
 0x205   :  { %v251_v3 = vadd.f32 1e-05, %v243_v2 }
 0x206   :  { %v227_v4 = vpop.xlane.xlu0 %226  ;;  %v237_v5 = vpop.xlane.xlu1 %236 }
 0x207   :  { %453 = vrsqrt.f32 %v251_v3  ;;  %v242_v6 = vmul.f32 0.03125, %v227_v4  ;;  %v247_v7 = vmul.f32 0.03125, %v237_v5  ;;  %v174_v4 = vld [vmem:[%s694_s3 + $0x38] sm:$0xff] }
 0x209   :  { %v250_v8 = vadd.f32 1e-05, %v242_v6  ;;  %v255_v9 = vadd.f32 1e-05, %v247_v7 }
 0x20a   :  { %v235_v10 = vpop.xlane.xlu0 %234  ;;  %v233_v11 = vpop.xlane.xlu1 %232 }
 0x20b   :  { %455 = vrsqrt.f32 %v250_v8  ;;  %v246_v12 = vmul.f32 0.03125, %v235_v10  ;;  %v245_v13 = vmul.f32 0.03125, %v233_v11  ;;  %v165_v8 = vld [vmem:[%s693_s2 + $0x30] sm:$0xff]  ;;  %v167_v10 = vld [vmem:[%s694_s3] sm:$0xff] }
 0x20c   :  { %457 = vrsqrt.f32 %v255_v9 }
 0x20d   :  { %v254_v22 = vadd.f32 1e-05, %v246_v12  ;;  %v253_v23 = vadd.f32 1e-05, %v245_v13  ;;  %v171_v13 = vld [vmem:[%s694_s3 + $0x20] sm:$0xff] }
 0x20e   :  { %v231_v24 = vpop.xlane.xlu0 %230 }
 0x20f   :  { %v241_v25 = vpop.xlane.xlu1 %240  ;;  %459 = vrsqrt.f32 %v254_v22  ;;  %v244_v31 = vmul.f32 0.03125, %v231_v24 }
 0x210   :  { %v249_v28 = vmul.f32 0.03125, %v241_v25  ;;  %461 = vrsqrt.f32 %v253_v23 }
 0x211   :  { %v454_v30 = vpop.eup %453  ;;  %v252_v40 = vadd.f32 1e-05, %v244_v31 }
 0x212   :  { %v257_v34 = vadd.f32 1e-05, %v249_v28  ;;  %v267_v35 = vmul.f32 %v454_v30, %v160_v29  ;;  %v239_v36 = vpop.xlane.xlu0 %238 }
 0x213   :  { %v248_v44 = vmul.f32 0.03125, %v239_v36 }
 0x214   :  { %463 = vrsqrt.f32 %v257_v34  ;;  %297 = vperm.xlu1 %451, %v267_v35   ;;  %v275_v46 = vmul.f32 %v267_v35, %v565_v27 }
 0x215   :  { %v456_v39 = vpop.eup %455  ;;  %465 = vrsqrt.f32 %v252_v40  ;;  %v256_v55 = vadd.f32 1e-05, %v248_v44 }
 0x216   :  { %v458_v43 = vpop.eup %457  ;;  %v266_v45 = vmul.f32 %v456_v39, %v159_v37  ;;  %v283_v27 = vsub.f32 %v168_v48, %v275_v46 }
 0x217   :  { %v271_v47 = vmul.f32 %v458_v43, %v164_v38  ;;  %467 = vrsqrt.f32 %v256_v55 }
 0x218   :  { %292 = vperm.xlu0 %452, %v266_v45   ;;  %v274_v9 = vmul.f32 %v266_v45, %v571_v32  ;;  %v169_v32 = vld [vmem:[%s694_s3 + $0x10] sm:$0xff] }
 0x219   :  { %v460_v53 = vpop.eup %459  ;;  %317 = vperm.xlu1 %451, %v271_v47   ;;  %v279_v57 = vmul.f32 %v271_v47, %v563_v26  ;;  %v170_v26 = vld [vmem:[%s694_s3 + $0x18] sm:$0xff] }
 0x21a   :  { %v462_v54 = vpop.eup %461  ;;  %v270_v56 = vmul.f32 %v460_v53, %v163_v49  ;;  %v282_v11 = vsub.f32 %v167_v10, %v274_v9 }
 0x21b   :  { %v269_v59 = vmul.f32 %v462_v54, %v162_v50  ;;  %v287_v62 = vsub.f32 %v172_v58, %v279_v57 }
 0x21c   :  { %345 = vperm.xlu0 %452, %v283_v27   ;;  %v278_v12 = vmul.f32 %v270_v56, %v581_v41  ;;  %v173_v41 = vld [vmem:[%s694_s3 + $0x30] sm:$0xff] }
 0x21d   :  { %312 = vperm.xlu1 %451, %v270_v56   ;;  %v277_v63 = vmul.f32 %v269_v59, %v573_v33  ;;  %v161_v33 = vld [vmem:[%s693_s2 + $0x10] sm:$0xff] }
 0x21e   :  { %v464_v61 = vpop.eup %463  ;;  %v286_v22 = vsub.f32 %v171_v13, %v278_v12 }
 0x21f   :  { %v273_v0 = vmul.f32 %v464_v61, %v166_v60  ;;  %v285_v1 = vsub.f32 %v170_v26, %v277_v63  ;;  %v466_v3 = vpop.eup %465 }
 0x220   :  { %365 = vperm.xlu0 %452, %v287_v62   ;;  %v268_v6 = vmul.f32 %v466_v3, %v161_v33 }
 0x221   :  { %307 = vperm.xlu1 %451, %v269_v59   ;;  %v281_v2 = vmul.f32 %v273_v0, %v593_v52  ;;  %v468_v7 = vpop.eup %467 }
 0x222   :  { %v272_v52 = vmul.f32 %v468_v7, %v165_v8  ;;  %v276_v23 = vmul.f32 %v268_v6, %v583_v42 }
 0x223   :  { %v289_v5 = vsub.f32 %v174_v4, %v281_v2 }
 0x224   :  { %355 = vperm.xlu0 %452, %v285_v1   ;;  %v284_v24 = vsub.f32 %v169_v32, %v276_v23  ;;  %v280_v25 = vmul.f32 %v272_v52, %v591_v51 }
 0x225   :  { %327 = vperm.xlu1 %451, %v273_v0  }
 0x226   :  { %v288_v28 = vsub.f32 %v173_v41, %v280_v25 }
 0x228   :  { %375 = vperm.xlu0 %452, %v289_v5  }
 0x229   :  { %302 = vperm.xlu1 %451, %v268_v6  }
 0x22d   :  { %322 = vperm.xlu1 %451, %v272_v52  }
 0x231   :  { %340 = vperm.xlu1 %451, %v282_v11  }
 0x235   :  { %360 = vperm.xlu1 %451, %v286_v22  }
 0x239   :  { %350 = vperm.xlu1 %451, %v284_v24  }
 0x23d   :  { %370 = vperm.xlu1 %451, %v288_v28  }
 0x293   :  { %v298_v29 = vpop.permute.xlu1 %297 }
 0x294   :  { %v331_v42 = vmul.f32 %v539_v14, %v298_v29 }
 0x297   :  { %v293_v30 = vpop.permute.xlu0 %292 }
 0x298   :  { %v318_v31 = vpop.permute.xlu1 %317  ;;  %v330_v49 = vmul.f32 %v293_v30, %v545_v16 }
 0x299   :  { %v335_v37 = vmul.f32 %v541_v15, %v318_v31 }
 0x29b   :  { %v346_v34 = vpop.permute.xlu0 %345 }
 0x29c   :  { %v379_v35 = vadd.f32 %v346_v34, %v331_v42  ;;  %v313_v36 = vpop.permute.xlu1 %312 }
 0x29d   :  { %v334_v53 = vmul.f32 %v313_v36, %v547_v17 }
 0x29e   :  { %387 = vst [vmem:[%s695_s4 + $0x8] sm:$0xff] %v379_v35 }
 0x29f   :  { %v366_v51 = vpop.permute.xlu0 %365 }
 0x2a0   :  { %v383_v38 = vadd.f32 %v366_v51, %v335_v37  ;;  %v308_v39 = vpop.permute.xlu1 %307 }
 0x2a1   :  { %v333_v40 = vmul.f32 %v549_v18, %v308_v39 }
 0x2a2   :  { %391 = vst [vmem:[%s695_s4 + $0x28] sm:$0xff] %v383_v38 }
 0x2a3   :  { %v356_v43 = vpop.permute.xlu0 %355 }
 0x2a4   :  { %v381_v14 = vadd.f32 %v356_v43, %v333_v40  ;;  %v328_v44 = vpop.permute.xlu1 %327 }
 0x2a5   :  { %v337_v15 = vmul.f32 %v551_v19, %v328_v44 }
 0x2a6   :  { %389 = vst [vmem:[%s695_s4 + $0x18] sm:$0xff] %v381_v14 }
 0x2a7   :  { %v376_v45 = vpop.permute.xlu0 %375 }
 0x2a8   :  { %v385_v46 = vadd.f32 %v376_v45, %v337_v15  ;;  %v303_v47 = vpop.permute.xlu1 %302 }
 0x2a9   :  { %v332_v55 = vmul.f32 %v303_v47, %v555_v20 }
 0x2aa   :  { %393 = vst [vmem:[%s695_s4 + $0x38] sm:$0xff] %v385_v46 }
 0x2ac   :  { %v323_v48 = vpop.permute.xlu1 %322 }
 0x2ad   :  { %v336_v16 = vmul.f32 %v323_v48, %v557_v21 }
 0x2b0   :  { %v341_v18 = vpop.permute.xlu1 %340 }
 0x2b1   :  { %v378_v50 = vadd.f32 %v341_v18, %v330_v49 }
 0x2b3   :  { %386 = vst [vmem:[%s695_s4] sm:$0xff] %v378_v50 }
 0x2b4   :  { %v361_v54 = vpop.permute.xlu1 %360 }
 0x2b5   :  { %v382_v19 = vadd.f32 %v361_v54, %v334_v53 }
 0x2b7   :  { %390 = vst [vmem:[%s695_s4 + $0x20] sm:$0xff] %v382_v19 }
 0x2b8   :  { %v351_v27 = vpop.permute.xlu1 %350 }
 0x2b9   :  { %v380_v56 = vadd.f32 %v351_v27, %v332_v55 }
 0x2bb   :  { %388 = vst [vmem:[%s695_s4 + $0x10] sm:$0xff] %v380_v56 }
 0x2bc   :  { %v371_v17 = vpop.permute.xlu1 %370 }
 0x2bd   :  { %v384_v57 = vadd.f32 %v371_v17, %v336_v16 }
 0x2bf   :  { %392 = vst [vmem:[%s695_s4 + $0x30] sm:$0xff] %v384_v57 }

// kernel: _lambda_.19
= control target key start
LH: loop header
LB: loop body
LE: loop exit
PB: predicated region body
PF: predicated region fallthrough
CT: control target
= control target key end

     0   :  { %vm78_vm0 = vcmask 123904   ;;  %vm743_vm1 = vcmask 523264   ;;  %vm672_vm2 = vcmask 1041409   ;;  %vm674_vm3 = vcmask 1042434   ;;  %s1434_s0 = inlined_call_operand.vmem [shape: f32[64,2,16], index: 0, kind: input, shape index: {}]   ;;  %s1435_s1 = inlined_call_operand.vmem [shape: f32[10,64], index: 1, kind: input, shape index: {}]   ;;  %s1436_s2 = inlined_call_operand.vmem [shape: f32[10,1], index: 2, kind: input, shape index: {}]   ;;  %s1437_s3 = inlined_call_operand.vmem [shape: f32[10,2], index: 3, kind: output, shape index: {}]  }
   0x1   :  { %v22_v0 = vld [vmem:[%s1434_s0 + $0x10] sm:$0x3]  ;;  %v14_v1 = vld [vmem:[%s1434_s0] sm:$0x3]  ;;  %v23_v2 = vld [vmem:[%s1434_s0 + $0x12] sm:$0x3] }
   0x2   :  { %v103_v3 = vsel %vm78_vm0, %v22_v0, 0.0  ;;  %v79_v4 = vsel %vm78_vm0, %v14_v1, 0.0  ;;  %v15_v5 = vld [vmem:[%s1434_s0 + $0x2] sm:$0x3]  ;;  %v106_v6 = vsel %vm78_vm0, %v23_v2, 0.0  ;;  %vm676_vm4 = vcmask 1043459  }
   0x3   :  { %104 = vadd.xlane.f32.xlu1 %v103_v3  ;;  %80 = vadd.xlane.f32.xlu0 %v79_v4  ;;  %v82_v7 = vsel %vm78_vm0, %v15_v5, 0.0  ;;  %v24_v8 = vld [vmem:[%s1434_s0 + $0x14] sm:$0x3]  ;;  %v16_v9 = vld [vmem:[%s1434_s0 + $0x4] sm:$0x3]  ;;  %vm678_vm5 = vcmask 1044484  }
   0x4   :  { %v109_v10 = vsel %vm78_vm0, %v24_v8, 0.0  ;;  %v85_v11 = vsel %vm78_vm0, %v16_v9, 0.0  ;;  %v25_v12 = vld [vmem:[%s1434_s0 + $0x16] sm:$0x3]  ;;  %v17_v13 = vld [vmem:[%s1434_s0 + $0x6] sm:$0x3] }
   0x5   :  { %v112_v14 = vsel %vm78_vm0, %v25_v12, 0.0  ;;  %v88_v15 = vsel %vm78_vm0, %v17_v13, 0.0  ;;  %v26_v16 = vld [vmem:[%s1434_s0 + $0x18] sm:$0x3]  ;;  %v18_v17 = vld [vmem:[%s1434_s0 + $0x8] sm:$0x3] }
   0x6   :  { %v27_v18 = vld [vmem:[%s1434_s0 + $0x1a] sm:$0x3]  ;;  %v19_v19 = vld [vmem:[%s1434_s0 + $0xa] sm:$0x3]  ;;  %v31_v20 = vld [vmem:[%s1434_s0 + $0x22] sm:$0x3] }
   0x7   :  { %107 = vadd.xlane.f32.xlu1 %v106_v6  ;;  %83 = vadd.xlane.f32.xlu0 %v82_v7  ;;  %v30_v21 = vld [vmem:[%s1434_s0 + $0x20] sm:$0x3]  ;;  %v39_v22 = vld [vmem:[%s1434_s0 + $0x32] sm:$0x3]  ;;  %v38_v23 = vld [vmem:[%s1434_s0 + $0x30] sm:$0x3] }
   0x8   :  { %v28_v24 = vld [vmem:[%s1434_s0 + $0x1c] sm:$0x3]  ;;  %v20_v25 = vld [vmem:[%s1434_s0 + $0xc] sm:$0x3]  ;;  %v115_v26 = vsel %vm78_vm0, %v26_v16, 0.0  ;;  %v91_v27 = vsel %vm78_vm0, %v18_v17, 0.0 }
   0x9   :  { %v118_v28 = vsel %vm78_vm0, %v27_v18, 0.0  ;;  %v94_v29 = vsel %vm78_vm0, %v19_v19, 0.0  ;;  %v130_v30 = vsel %vm78_vm0, %v31_v20, 0.0  ;;  %v127_v31 = vsel %vm78_vm0, %v30_v21, 0.0  ;;  %v44_v36 = vld [vmem:[%s1434_s0 + $0x3c] sm:$0x3] }
   0xa   :  { %v973_v32 = vsel %vm78_vm0, %v39_v22, 0.0  ;;  %v976_v33 = vsel %vm78_vm0, %v38_v23, 0.0  ;;  %v979_v34 = vsel %vm78_vm0, %v28_v24, 0.0  ;;  %v982_v35 = vsel %vm78_vm0, %v20_v25, 0.0  ;;  %v36_v37 = vld [vmem:[%s1434_s0 + $0x2c] sm:$0x3] }
   0xb   :  { %110 = vadd.xlane.f32.xlu1 %v109_v10  ;;  %86 = vadd.xlane.f32.xlu0 %v85_v11  ;;  %v991_v38 = vsel %vm78_vm0, %v44_v36, 0.0  ;;  %v994_v39 = vsel %vm78_vm0, %v36_v37, 0.0  ;;  %v56_v40 = vld [vmem:[%s1434_s0 + $0x54] sm:$0x3]  ;;  %v48_v41 = vld [vmem:[%s1434_s0 + $0x44] sm:$0x3] }
   0xc   :  { %v1003_v42 = vsel %vm78_vm0, %v56_v40, 0.0  ;;  %v1006_v43 = vsel %vm78_vm0, %v48_v41, 0.0  ;;  %v45_v44 = vld [vmem:[%s1434_s0 + $0x3e] sm:$0x3]  ;;  %v37_v45 = vld [vmem:[%s1434_s0 + $0x2e] sm:$0x3] }
   0xd   :  { %v1015_v46 = vsel %vm78_vm0, %v45_v44, 0.0  ;;  %v1018_v47 = vsel %vm78_vm0, %v37_v45, 0.0  ;;  %v57_v48 = vld [vmem:[%s1434_s0 + $0x56] sm:$0x3]  ;;  %v49_v49 = vld [vmem:[%s1434_s0 + $0x46] sm:$0x3] }
   0xe   :  { %v1027_v50 = vsel %vm78_vm0, %v57_v48, 0.0  ;;  %v1030_v51 = vsel %vm78_vm0, %v49_v49, 0.0  ;;  %v58_v52 = vld [vmem:[%s1434_s0 + $0x58] sm:$0x3]  ;;  %v50_v53 = vld [vmem:[%s1434_s0 + $0x48] sm:$0x3] }
   0xf   :  { %113 = vadd.xlane.f32.xlu1 %v112_v14  ;;  %89 = vadd.xlane.f32.xlu0 %v88_v15  ;;  %v1039_v54 = vsel %vm78_vm0, %v58_v52, 0.0  ;;  %v1042_v55 = vsel %vm78_vm0, %v50_v53, 0.0  ;;  %v59_v56 = vld [vmem:[%s1434_s0 + $0x5a] sm:$0x3]  ;;  %v51_v57 = vld [vmem:[%s1434_s0 + $0x4a] sm:$0x3] }
  0x10   :  { %v1051_v58 = vsel %vm78_vm0, %v59_v56, 0.0  ;;  %v1054_v59 = vsel %vm78_vm0, %v51_v57, 0.0  ;;  %v63_v60 = vld [vmem:[%s1434_s0 + $0x62] sm:$0x3]  ;;  %v62_v61 = vld [vmem:[%s1434_s0 + $0x60] sm:$0x3] }
  0x11   :  { %v1063_v62 = vsel %vm78_vm0, %v63_v60, 0.0  ;;  %v1066_v63 = vsel %vm78_vm0, %v62_v61, 0.0  ;;  %v71_v0 = vld [vmem:[%s1434_s0 + $0x72] sm:$0x3]  ;;  %v70_v1 = vld [vmem:[%s1434_s0 + $0x70] sm:$0x3] }
  0x12   :  { %v1075_v2 = vsel %vm78_vm0, %v71_v0, 0.0  ;;  %v1078_v3 = vsel %vm78_vm0, %v70_v1, 0.0  ;;  %v60_v4 = vld [vmem:[%s1434_s0 + $0x5c] sm:$0x3]  ;;  %v52_v5 = vld [vmem:[%s1434_s0 + $0x4c] sm:$0x3] }
  0x13   :  { %116 = vadd.xlane.f32.xlu1 %v115_v26  ;;  %92 = vadd.xlane.f32.xlu0 %v91_v27  ;;  %v1087_v6 = vsel %vm78_vm0, %v60_v4, 0.0  ;;  %v1090_v7 = vsel %vm78_vm0, %v52_v5, 0.0  ;;  %v72_v8 = vld [vmem:[%s1434_s0 + $0x74] sm:$0x3]  ;;  %v64_v9 = vld [vmem:[%s1434_s0 + $0x64] sm:$0x3] }
  0x14   :  { %v1099_v10 = vsel %vm78_vm0, %v72_v8, 0.0  ;;  %v1102_v11 = vsel %vm78_vm0, %v64_v9, 0.0  ;;  %v61_v12 = vld [vmem:[%s1434_s0 + $0x5e] sm:$0x3]  ;;  %v53_v13 = vld [vmem:[%s1434_s0 + $0x4e] sm:$0x3] }
  0x15   :  { %v1111_v14 = vsel %vm78_vm0, %v61_v12, 0.0  ;;  %v1114_v15 = vsel %vm78_vm0, %v53_v13, 0.0  ;;  %v73_v16 = vld [vmem:[%s1434_s0 + $0x76] sm:$0x3]  ;;  %v65_v17 = vld [vmem:[%s1434_s0 + $0x66] sm:$0x3] }
  0x16   :  { %v1123_v18 = vsel %vm78_vm0, %v73_v16, 0.0  ;;  %v1126_v19 = vsel %vm78_vm0, %v65_v17, 0.0  ;;  %v74_v20 = vld [vmem:[%s1434_s0 + $0x78] sm:$0x3]  ;;  %v66_v21 = vld [vmem:[%s1434_s0 + $0x68] sm:$0x3] }
  0x17   :  { %119 = vadd.xlane.f32.xlu1 %v118_v28  ;;  %95 = vadd.xlane.f32.xlu0 %v94_v29  ;;  %v1135_v22 = vsel %vm78_vm0, %v74_v20, 0.0  ;;  %v1138_v23 = vsel %vm78_vm0, %v66_v21, 0.0  ;;  %v75_v24 = vld [vmem:[%s1434_s0 + $0x7a] sm:$0x3]  ;;  %v67_v25 = vld [vmem:[%s1434_s0 + $0x6a] sm:$0x3] }
  0x18   :  { %v1149_v26 = vsel %vm78_vm0, %v75_v24, 0.0  ;;  %v1152_v27 = vsel %vm78_vm0, %v67_v25, 0.0  ;;  %v76_v28 = vld [vmem:[%s1434_s0 + $0x7c] sm:$0x3]  ;;  %v68_v29 = vld [vmem:[%s1434_s0 + $0x6c] sm:$0x3] }
  0x19   :  { %v40_v36 = vld [vmem:[%s1434_s0 + $0x34] sm:$0x3]  ;;  %v32_v37 = vld [vmem:[%s1434_s0 + $0x24] sm:$0x3]  ;;  %v29_v48 = vld [vmem:[%s1434_s0 + $0x1e] sm:$0x3] }
  0x1a   :  { %v157_v44 = vsel %vm78_vm0, %v40_v36, 0.0  ;;  %v133_v45 = vsel %vm78_vm0, %v32_v37, 0.0  ;;  %v21_v49 = vld [vmem:[%s1434_s0 + $0xe] sm:$0x3]  ;;  %v124_v52 = vsel %vm78_vm0, %v29_v48, 0.0  ;;  %vm680_vm6 = vcmask 1045509  }
  0x1b   :  { %131 = vadd.xlane.f32.xlu1 %v130_v30  ;;  %128 = vadd.xlane.f32.xlu0 %v127_v31  ;;  %v1161_v30 = vsel %vm78_vm0, %v76_v28, 0.0  ;;  %v1164_v31 = vsel %vm78_vm0, %v68_v29, 0.0  ;;  %v33_v53 = vld [vmem:[%s1434_s0 + $0x26] sm:$0x3]  ;;  %v42_v60 = vld [vmem:[%s1434_s0 + $0x38] sm:$0x3] }
  0x1c   :  { %v136_v57 = vsel %vm78_vm0, %v33_v53, 0.0  ;;  %v34_v61 = vld [vmem:[%s1434_s0 + $0x28] sm:$0x3]  ;;  %v163_v0 = vsel %vm78_vm0, %v42_v60, 0.0  ;;  %v43_v4 = vld [vmem:[%s1434_s0 + $0x3a] sm:$0x3] }
  0x1d   :  { %v139_v1 = vsel %vm78_vm0, %v34_v61, 0.0  ;;  %v35_v5 = vld [vmem:[%s1434_s0 + $0x2a] sm:$0x3]  ;;  %v166_v8 = vsel %vm78_vm0, %v43_v4, 0.0  ;;  %v47_v12 = vld [vmem:[%s1434_s0 + $0x42] sm:$0x3] }
  0x1e   :  { %v142_v9 = vsel %vm78_vm0, %v35_v5, 0.0  ;;  %v46_v13 = vld [vmem:[%s1434_s0 + $0x40] sm:$0x3]  ;;  %v178_v16 = vsel %vm78_vm0, %v47_v12, 0.0  ;;  %v55_v20 = vld [vmem:[%s1434_s0 + $0x52] sm:$0x3] }
  0x1f   :  { %155 = vadd.xlane.f32.xlu1 %v973_v32  ;;  %152 = vadd.xlane.f32.xlu0 %v976_v33  ;;  %v77_v32 = vld [vmem:[%s1434_s0 + $0x7e] sm:$0x3]  ;;  %v69_v33 = vld [vmem:[%s1434_s0 + $0x6e] sm:$0x3]  ;;  %v175_v17 = vsel %vm78_vm0, %v46_v13, 0.0  ;;  %v202_v24 = vsel %vm78_vm0, %v55_v20, 0.0 }
  0x20   :  { %v1179_v40 = vsel %vm78_vm0, %v77_v32, 0.0  ;;  %v1182_v41 = vsel %vm78_vm0, %v69_v33, 0.0  ;;  %v54_v21 = vld [vmem:[%s1434_s0 + $0x50] sm:$0x3]  ;;  %vm682_vm7 = vcmask 1046534   ;;  %vm684_vm8 = vcmask 1047559  }
  0x21   :  { %v199_v25 = vsel %vm78_vm0, %v54_v21, 0.0  ;;  %vm827_vm9 = vcmask 9216   ;;  %vm825_vm10 = vcmask 15360  }
  0x23   :  { %122 = vadd.xlane.f32.xlu1 %v979_v34  ;;  %98 = vadd.xlane.f32.xlu0 %v982_v35  ;;  %v100_v34 = vsel %vm78_vm0, %v21_v49, 0.0  ;;  %v41_v35 = vld [vmem:[%s1434_s0 + $0x36] sm:$0x3] }
  0x24   :  { %v160_v56 = vsel %vm78_vm0, %v41_v35, 0.0 }
  0x27   :  { %158 = vadd.xlane.f32.xlu1 %v157_v44  ;;  %134 = vadd.xlane.f32.xlu0 %v133_v45 }
  0x2b   :  { %125 = vadd.xlane.f32.xlu1 %v124_v52  ;;  %101 = vadd.xlane.f32.xlu0 %v100_v34 }
  0x2f   :  { %161 = vadd.xlane.f32.xlu1 %v160_v56  ;;  %137 = vadd.xlane.f32.xlu0 %v136_v57 }
  0x33   :  { %164 = vadd.xlane.f32.xlu1 %v163_v0  ;;  %140 = vadd.xlane.f32.xlu0 %v139_v1 }
  0x37   :  { %167 = vadd.xlane.f32.xlu1 %v166_v8  ;;  %143 = vadd.xlane.f32.xlu0 %v142_v9 }
  0x3b   :  { %179 = vadd.xlane.f32.xlu1 %v178_v16  ;;  %176 = vadd.xlane.f32.xlu0 %v175_v17 }
  0x3f   :  { %203 = vadd.xlane.f32.xlu1 %v202_v24  ;;  %200 = vadd.xlane.f32.xlu0 %v199_v25 }
  0x43   :  { %170 = vadd.xlane.f32.xlu1 %v991_v38  ;;  %146 = vadd.xlane.f32.xlu0 %v994_v39 }
  0x47   :  { %206 = vadd.xlane.f32.xlu1 %v1003_v42  ;;  %182 = vadd.xlane.f32.xlu0 %v1006_v43 }
  0x4b   :  { %173 = vadd.xlane.f32.xlu1 %v1015_v46  ;;  %149 = vadd.xlane.f32.xlu0 %v1018_v47  ;;  %v336_v46 = vld [vmem:[%s1435_s1] sm:$0xff] }
  0x4c   :  { %861 = vmatprep.mubr.msk.f32.mxu0 %vm743_vm1, %v336_v46 }
  0x4f   :  { %209 = vadd.xlane.f32.xlu1 %v1027_v50  ;;  %185 = vadd.xlane.f32.xlu0 %v1030_v51  ;;  %v883_v51 = vmov 0  }
  0x50   :  { %882 = vset.pattern.permute.xlu1 %v883_v51  ;;  %881 = vset.pattern.permute.xlu0 %v883_v51 }
  0x53   :  { %212 = vadd.xlane.f32.xlu1 %v1039_v54  ;;  %188 = vadd.xlane.f32.xlu0 %v1042_v55  ;;  %v339_v54 = vld [vmem:[%s1436_s2 + $0x8] sm:$0x3]  ;;  %v338_v55 = vld [vmem:[%s1436_s2] sm:$0xff] }
  0x57   :  { %215 = vadd.xlane.f32.xlu1 %v1051_v58  ;;  %191 = vadd.xlane.f32.xlu0 %v1054_v59 }
  0x5b   :  { %227 = vadd.xlane.f32.xlu1 %v1063_v62  ;;  %224 = vadd.xlane.f32.xlu0 %v1066_v63 }
  0x5f   :  { %251 = vadd.xlane.f32.xlu1 %v1075_v2  ;;  %248 = vadd.xlane.f32.xlu0 %v1078_v3 }
  0x63   :  { %218 = vadd.xlane.f32.xlu1 %v1087_v6  ;;  %194 = vadd.xlane.f32.xlu0 %v1090_v7  ;;  %v414_v6 = vlaneseq }
  0x67   :  { %254 = vadd.xlane.f32.xlu1 %v1099_v10  ;;  %230 = vadd.xlane.f32.xlu0 %v1102_v11  ;;  %v415_v11 = vand.u32 127, %v414_v6 }
  0x6b   :  { %221 = vadd.xlane.f32.xlu1 %v1111_v14  ;;  %197 = vadd.xlane.f32.xlu0 %v1114_v15  ;;  %v417_v14 = vshrl.u32 %v414_v6, 7 }
  0x6f   :  { %257 = vadd.xlane.f32.xlu1 %v1123_v18  ;;  %233 = vadd.xlane.f32.xlu0 %v1126_v19  ;;  %v1286_v19 = vsub.s32 %v415_v11, %v417_v14 }
  0x73   :  { %260 = vadd.xlane.f32.xlu1 %v1135_v22  ;;  %236 = vadd.xlane.f32.xlu0 %v1138_v23 }
  0x77   :  { %263 = vadd.xlane.f32.xlu1 %v1149_v26  ;;  %239 = vadd.xlane.f32.xlu0 %v1152_v27 }
  0x7b   :  { %266 = vadd.xlane.f32.xlu1 %v1161_v30  ;;  %242 = vadd.xlane.f32.xlu0 %v1164_v31 }
  0x7f   :  { %269 = vadd.xlane.f32.xlu1 %v1179_v40  ;;  %245 = vadd.xlane.f32.xlu0 %v1182_v41 }
  0x90   :  { %v105_v38 = vpop.xlane.xlu1 %104  ;;  %v81_v39 = vpop.xlane.xlu0 %80  ;;  %347 = vperm.xlu1 %882, %v339_v54  }
  0x91   :  { %v280_v30 = vmul.f32 0.0625, %v105_v38  ;;  %v272_v31 = vmul.f32 0.0625, %v81_v39 }
  0x93   :  { %v451_v56 = vrot.slane %v280_v30, %v1286_v19  ;;  %v419_v57 = vrot.slane %v272_v31, %v1286_v19 }
  0x94   :  { %v108_v42 = vpop.xlane.xlu1 %107  ;;  %v84_v43 = vpop.xlane.xlu0 %83 }
  0x95   :  { %342 = vperm.xlu0 %881, %v338_v55   ;;  %v281_v22 = vmul.f32 0.0625, %v108_v42  ;;  %v273_v23 = vmul.f32 0.0625, %v84_v43 }
  0x97   :  { %v455_v40 = vrot.slane %v281_v22, %v1286_v19  ;;  %v423_v41 = vrot.slane %v273_v23, %v1286_v19 }
  0x98   :  { %v111_v47 = vpop.xlane.xlu1 %110  ;;  %v87_v50 = vpop.xlane.xlu0 %86 }
  0x99   :  { %v282_v26 = vmul.f32 0.0625, %v111_v47  ;;  %v274_v27 = vmul.f32 0.0625, %v87_v50  ;;  %v686_v4 = vsel %vm672_vm2, %v455_v40, %v451_v56  ;;  %v673_v5 = vsel %vm672_vm2, %v423_v41, %v419_v57 }
  0x9b   :  { %v459_v48 = vrot.slane %v282_v26, %v1286_v19  ;;  %v427_v49 = vrot.slane %v274_v27, %v1286_v19 }
  0x9c   :  { %v114_v58 = vpop.xlane.xlu1 %113  ;;  %v90_v59 = vpop.xlane.xlu0 %89 }
  0x9d   :  { %v283_v32 = vmul.f32 0.0625, %v114_v58  ;;  %v275_v33 = vmul.f32 0.0625, %v90_v59  ;;  %v687_v12 = vsel %vm674_vm3, %v459_v48, %v686_v4  ;;  %v675_v13 = vsel %vm674_vm3, %v427_v49, %v673_v5 }
  0x9f   :  { %v463_v60 = vrot.slane %v283_v32, %v1286_v19  ;;  %v431_v61 = vrot.slane %v275_v33, %v1286_v19 }
  0xa0   :  { %v117_v62 = vpop.xlane.xlu1 %116  ;;  %v93_v63 = vpop.xlane.xlu0 %92 }
  0xa1   :  { %v284_v36 = vmul.f32 0.0625, %v117_v62  ;;  %v276_v37 = vmul.f32 0.0625, %v93_v63  ;;  %v688_v24 = vsel %vm676_vm4, %v463_v60, %v687_v12  ;;  %v677_v25 = vsel %vm676_vm4, %v431_v61, %v675_v13 }
  0xa3   :  { %v467_v0 = vrot.slane %v284_v36, %v1286_v19  ;;  %v435_v1 = vrot.slane %v276_v37, %v1286_v19 }
  0xa4   :  { %v120_v2 = vpop.xlane.xlu1 %119  ;;  %v96_v3 = vpop.xlane.xlu0 %95 }
  0xa5   :  { %v285_v44 = vmul.f32 0.0625, %v120_v2  ;;  %v277_v45 = vmul.f32 0.0625, %v96_v3  ;;  %v689_v42 = vsel %vm678_vm5, %v467_v0, %v688_v24  ;;  %v679_v43 = vsel %vm678_vm5, %v435_v1, %v677_v25 }
  0xa7   :  { %v471_v8 = vrot.slane %v285_v44, %v1286_v19  ;;  %v439_v9 = vrot.slane %v277_v45, %v1286_v19 }
  0xa8   :  { %v1278_v7 = vpop.xlane.xlu1 %131  ;;  %v1280_v10 = vpop.xlane.xlu0 %128 }
  0xa9   :  { %v681_v50 = vsel %vm680_vm6, %v439_v9, %v679_v43  ;;  %v690_v51 = vsel %vm680_vm6, %v471_v8, %v689_v42 }
  0xac   :  { %v1282_v15 = vpop.xlane.xlu1 %155  ;;  %v1284_v18 = vpop.xlane.xlu0 %152 }
  0xad   :  { %v297_v30 = vmul.f32 0.0625, %v1282_v15  ;;  %v296_v31 = vmul.f32 0.0625, %v1284_v18 }
  0xb0   :  { %v123_v28 = vpop.xlane.xlu1 %122  ;;  %v99_v29 = vpop.xlane.xlu0 %98 }
  0xb1   :  { %v286_v52 = vmul.f32 0.0625, %v123_v28  ;;  %v278_v34 = vmul.f32 0.0625, %v99_v29  ;;  %v289_v28 = vmul.f32 0.0625, %v1278_v7  ;;  %v288_v29 = vmul.f32 0.0625, %v1280_v10 }
  0xb2   :  { %v519_v7 = vrot.slane %v297_v30, %v1286_v19  ;;  %v515_v10 = vrot.slane %v296_v31, %v1286_v19 }
  0xb3   :  { %v475_v16 = vrot.slane %v286_v52, %v1286_v19  ;;  %v443_v17 = vrot.slane %v278_v34, %v1286_v19  ;;  %v487_v44 = vrot.slane %v289_v28, %v1286_v19  ;;  %v483_v45 = vrot.slane %v288_v29, %v1286_v19 }
  0xb4   :  { %v159_v35 = vpop.xlane.xlu1 %158  ;;  %v135_v53 = vpop.xlane.xlu0 %134  ;;  %v700_v5 = vsel %vm672_vm2, %v519_v7, %v515_v10 }
  0xb5   :  { %v683_v58 = vsel %vm682_vm7, %v443_v17, %v681_v50  ;;  %v691_v59 = vsel %vm682_vm7, %v475_v16, %v690_v51  ;;  %v298_v32 = vmul.f32 0.0625, %v159_v35  ;;  %v290_v33 = vmul.f32 0.0625, %v135_v53 }
  0xb6   :  { %v693_v4 = vsel %vm672_vm2, %v487_v44, %v483_v45 }
  0xb7   :  { %v523_v18 = vrot.slane %v298_v32, %v1286_v19  ;;  %v491_v34 = vrot.slane %v290_v33, %v1286_v19 }
  0xb8   :  { %v126_v20 = vpop.xlane.xlu1 %125  ;;  %v102_v21 = vpop.xlane.xlu0 %101 }
  0xb9   :  { %v287_v38 = vmul.f32 0.0625, %v126_v20  ;;  %v279_v39 = vmul.f32 0.0625, %v102_v21  ;;  %v701_v12 = vsel %vm674_vm3, %v523_v18, %v700_v5  ;;  %v694_v13 = vsel %vm674_vm3, %v491_v34, %v693_v4 }
  0xbb   :  { %v479_v46 = vrot.slane %v287_v38, %v1286_v19  ;;  %v447_v47 = vrot.slane %v279_v39, %v1286_v19 }
  0xbc   :  { %v162_v54 = vpop.xlane.xlu1 %161  ;;  %v138_v55 = vpop.xlane.xlu0 %137 }
  0xbd   :  { %v685_v62 = vsel %vm684_vm8, %v447_v47, %v683_v58  ;;  %v692_v63 = vsel %vm684_vm8, %v479_v46, %v691_v59  ;;  %v299_v40 = vmul.f32 0.0625, %v162_v54  ;;  %v291_v41 = vmul.f32 0.0625, %v138_v55 }
  0xbe   :  { %v864_v2 = vpack.c.bf16 %v692_v63, %v685_v62 }
  0xbf   :  { %v527_v60 = vrot.slane %v299_v40, %v1286_v19  ;;  %v495_v61 = vrot.slane %v291_v41, %v1286_v19 }
  0xc0   :  { %v165_v3 = vpop.xlane.xlu1 %164  ;;  %865 = vmatprep.subr.bf16.mxu0 %v864_v2  ;;  %v141_v6 = vpop.xlane.xlu0 %140 }
  0xc1   :  { %867 = vmatpush3.bf16.msra.mxu0 %v864_v2  ;;  %v300_v48 = vmul.f32 0.0625, %v165_v3  ;;  %v292_v49 = vmul.f32 0.0625, %v141_v6  ;;  %v702_v24 = vsel %vm676_vm4, %v527_v60, %v701_v12  ;;  %v695_v25 = vsel %vm676_vm4, %v495_v61, %v694_v13 }
  0xc3   :  { %v531_v0 = vrot.slane %v300_v48, %v1286_v19  ;;  %v499_v1 = vrot.slane %v292_v49, %v1286_v19 }
  0xc4   :  { %v168_v11 = vpop.xlane.xlu1 %167  ;;  %v144_v14 = vpop.xlane.xlu0 %143 }
  0xc5   :  { %v301_v52 = vmul.f32 0.0625, %v168_v11  ;;  %v293_v15 = vmul.f32 0.0625, %v144_v14  ;;  %v703_v42 = vsel %vm678_vm5, %v531_v0, %v702_v24  ;;  %v696_v43 = vsel %vm678_vm5, %v499_v1, %v695_v25 }
  0xc7   :  { %v535_v8 = vrot.slane %v301_v52, %v1286_v19  ;;  %v503_v9 = vrot.slane %v293_v15, %v1286_v19 }
  0xc8   :  { %v1318_v22 = vpop.xlane.xlu1 %179  ;;  %v1320_v23 = vpop.xlane.xlu0 %176 }
  0xc9   :  { %v704_v46 = vsel %vm680_vm6, %v535_v8, %v703_v42  ;;  %v697_v47 = vsel %vm680_vm6, %v503_v9, %v696_v43  ;;  %v305_v32 = vmul.f32 0.0625, %v1318_v22  ;;  %v304_v33 = vmul.f32 0.0625, %v1320_v23 }
  0xcb   :  { %v551_v7 = vrot.slane %v305_v32, %v1286_v19  ;;  %v547_v10 = vrot.slane %v304_v33, %v1286_v19 }
  0xcc   :  { %v1322_v26 = vpop.xlane.xlu1 %203  ;;  %v1324_v27 = vpop.xlane.xlu0 %200 }
  0xcd   :  { %v707_v4 = vsel %vm672_vm2, %v551_v7, %v547_v10 }
  0xd0   :  { %v171_v36 = vpop.xlane.xlu1 %170  ;;  %v147_v37 = vpop.xlane.xlu0 %146 }
  0xd1   :  { %v302_v35 = vmul.f32 0.0625, %v171_v36  ;;  %v294_v53 = vmul.f32 0.0625, %v147_v37  ;;  %v313_v36 = vmul.f32 0.0625, %v1322_v26  ;;  %v312_v37 = vmul.f32 0.0625, %v1324_v27 }
  0xd3   :  { %v539_v16 = vrot.slane %v302_v35, %v1286_v19  ;;  %v507_v17 = vrot.slane %v294_v53, %v1286_v19  ;;  %v583_v22 = vrot.slane %v313_v36, %v1286_v19  ;;  %v579_v23 = vrot.slane %v312_v37, %v1286_v19 }
  0xd4   :  { %v207_v56 = vpop.xlane.xlu1 %206  ;;  %v183_v57 = vpop.xlane.xlu0 %182 }
  0xd5   :  { %v705_v54 = vsel %vm682_vm7, %v539_v16, %v704_v46  ;;  %v698_v55 = vsel %vm682_vm7, %v507_v17, %v697_v47  ;;  %v314_v40 = vmul.f32 0.0625, %v207_v56  ;;  %v306_v41 = vmul.f32 0.0625, %v183_v57 }
  0xd6   :  { %v714_v5 = vsel %vm672_vm2, %v583_v22, %v579_v23 }
  0xd7   :  { %v587_v27 = vrot.slane %v314_v40, %v1286_v19  ;;  %v555_v34 = vrot.slane %v306_v41, %v1286_v19 }
  0xd8   :  { %v174_v20 = vpop.xlane.xlu1 %173  ;;  %v150_v21 = vpop.xlane.xlu0 %149 }
  0xd9   :  { %v303_v38 = vmul.f32 0.0625, %v174_v20  ;;  %v295_v39 = vmul.f32 0.0625, %v150_v21  ;;  %v715_v12 = vsel %vm674_vm3, %v587_v27, %v714_v5  ;;  %v708_v13 = vsel %vm674_vm3, %v555_v34, %v707_v4 }
  0xdb   :  { %v543_v50 = vrot.slane %v303_v38, %v1286_v19  ;;  %v511_v51 = vrot.slane %v295_v39, %v1286_v19 }
  0xdc   :  { %v210_v58 = vpop.xlane.xlu1 %209  ;;  %v186_v59 = vpop.xlane.xlu0 %185 }
  0xdd   :  { %v699_v62 = vsel %vm684_vm8, %v511_v51, %v698_v55  ;;  %v706_v63 = vsel %vm684_vm8, %v543_v50, %v705_v54  ;;  %v315_v48 = vmul.f32 0.0625, %v210_v58  ;;  %v307_v49 = vmul.f32 0.0625, %v186_v59 }
  0xde   :  { %v868_v2 = vpack.c.bf16 %v706_v63, %v699_v62 }
  0xdf   :  { %v591_v60 = vrot.slane %v315_v48, %v1286_v19  ;;  %v559_v61 = vrot.slane %v307_v49, %v1286_v19 }
  0xe0   :  { %v213_v3 = vpop.xlane.xlu1 %212  ;;  %869 = vmatprep.subr.bf16.mxu0 %v868_v2  ;;  %v189_v6 = vpop.xlane.xlu0 %188 }
  0xe1   :  { %871 = vmatpush3.bf16.msra.mxu0 %v868_v2  ;;  %v316_v52 = vmul.f32 0.0625, %v213_v3  ;;  %v308_v15 = vmul.f32 0.0625, %v189_v6  ;;  %v716_v24 = vsel %vm676_vm4, %v591_v60, %v715_v12  ;;  %v709_v25 = vsel %vm676_vm4, %v559_v61, %v708_v13 }
  0xe3   :  { %v595_v0 = vrot.slane %v316_v52, %v1286_v19  ;;  %v563_v1 = vrot.slane %v308_v15, %v1286_v19 }
  0xe4   :  { %v216_v11 = vpop.xlane.xlu1 %215  ;;  %v192_v14 = vpop.xlane.xlu0 %191 }
  0xe5   :  { %v317_v18 = vmul.f32 0.0625, %v216_v11  ;;  %v309_v26 = vmul.f32 0.0625, %v192_v14  ;;  %v717_v42 = vsel %vm678_vm5, %v595_v0, %v716_v24  ;;  %v710_v43 = vsel %vm678_vm5, %v563_v1, %v709_v25 }
  0xe7   :  { %v599_v8 = vrot.slane %v317_v18, %v1286_v19  ;;  %v567_v9 = vrot.slane %v309_v26, %v1286_v19 }
  0xe8   :  { %v228_v28 = vpop.xlane.xlu1 %227  ;;  %v225_v29 = vpop.xlane.xlu0 %224 }
  0xe9   :  { %v718_v46 = vsel %vm680_vm6, %v599_v8, %v717_v42  ;;  %v711_v47 = vsel %vm680_vm6, %v567_v9, %v710_v43  ;;  %v321_v11 = vmul.f32 0.0625, %v228_v28  ;;  %v320_v14 = vmul.f32 0.0625, %v225_v29 }
  0xeb   :  { %v615_v48 = vrot.slane %v321_v11, %v1286_v19  ;;  %v611_v49 = vrot.slane %v320_v14, %v1286_v19 }
  0xec   :  { %v252_v30 = vpop.xlane.xlu1 %251  ;;  %v249_v31 = vpop.xlane.xlu0 %248 }
  0xed   :  { %v329_v32 = vmul.f32 0.0625, %v252_v30  ;;  %v328_v33 = vmul.f32 0.0625, %v249_v31 }
  0xef   :  { %v647_v52 = vrot.slane %v329_v32, %v1286_v19  ;;  %v643_v15 = vrot.slane %v328_v33, %v1286_v19 }
  0xf0   :  { %v219_v44 = vpop.xlane.xlu1 %218  ;;  %v195_v45 = vpop.xlane.xlu0 %194 }
  0xf1   :  { %v318_v35 = vmul.f32 0.0625, %v219_v44  ;;  %v310_v53 = vmul.f32 0.0625, %v195_v45 }
  0xf3   :  { %v603_v16 = vrot.slane %v318_v35, %v1286_v19  ;;  %v571_v17 = vrot.slane %v310_v53, %v1286_v19 }
  0xf4   :  { %v255_v56 = vpop.xlane.xlu1 %254  ;;  %v231_v57 = vpop.xlane.xlu0 %230 }
  0xf5   :  { %v719_v54 = vsel %vm682_vm7, %v603_v16, %v718_v46  ;;  %v712_v55 = vsel %vm682_vm7, %v571_v17, %v711_v47  ;;  %v330_v36 = vmul.f32 0.0625, %v255_v56  ;;  %v322_v37 = vmul.f32 0.0625, %v231_v57 }
  0xf6   :  { %v721_v56 = vsel %vm672_vm2, %v615_v48, %v611_v49  ;;  %v728_v57 = vsel %vm672_vm2, %v647_v52, %v643_v15 }
  0xf7   :  { %v651_v30 = vrot.slane %v330_v36, %v1286_v19  ;;  %v619_v31 = vrot.slane %v322_v37, %v1286_v19 }
  0xf8   :  { %v222_v20 = vpop.xlane.xlu1 %221  ;;  %v198_v21 = vpop.xlane.xlu0 %197 }
  0xf9   :  { %v319_v38 = vmul.f32 0.0625, %v222_v20  ;;  %v311_v39 = vmul.f32 0.0625, %v198_v21  ;;  %v729_v0 = vsel %vm674_vm3, %v651_v30, %v728_v57  ;;  %v722_v1 = vsel %vm674_vm3, %v619_v31, %v721_v56 }
  0xfb   :  { %v607_v50 = vrot.slane %v319_v38, %v1286_v19  ;;  %v575_v51 = vrot.slane %v311_v39, %v1286_v19 }
  0xfc   :  { %v258_v58 = vpop.xlane.xlu1 %257  ;;  %v234_v59 = vpop.xlane.xlu0 %233 }
  0xfd   :  { %v713_v62 = vsel %vm684_vm8, %v575_v51, %v712_v55  ;;  %v720_v63 = vsel %vm684_vm8, %v607_v50, %v719_v54  ;;  %v331_v44 = vmul.f32 0.0625, %v258_v58  ;;  %v323_v45 = vmul.f32 0.0625, %v234_v59  ;;  %v337_v51 = vld [vmem:[%s1435_s1 + $0x8] sm:$0x3] }
  0xfe   :  { %v872_v2 = vpack.c.bf16 %v720_v63, %v713_v62 }
  0xff   :  { %v655_v18 = vrot.slane %v331_v44, %v1286_v19  ;;  %v623_v26 = vrot.slane %v323_v45, %v1286_v19 }
 0x100   :  { %v261_v3 = vpop.xlane.xlu1 %260  ;;  %873 = vmatprep.subr.bf16.mxu0 %v872_v2  ;;  %v237_v6 = vpop.xlane.xlu0 %236 }
 0x101   :  { %875 = vmatpush3.bf16.msra.mxu0 %v872_v2  ;;  %v332_v7 = vmul.f32 0.0625, %v261_v3  ;;  %v324_v10 = vmul.f32 0.0625, %v237_v6  ;;  %v730_v12 = vsel %vm676_vm4, %v655_v18, %v729_v0  ;;  %v723_v13 = vsel %vm676_vm4, %v623_v26, %v722_v1 }
 0x103   :  { %v659_v35 = vrot.slane %v332_v7, %v1286_v19  ;;  %v627_v53 = vrot.slane %v324_v10, %v1286_v19 }
 0x104   :  { %v264_v40 = vpop.xlane.xlu1 %263  ;;  %v240_v41 = vpop.xlane.xlu0 %239 }
 0x105   :  { %v333_v28 = vmul.f32 0.0625, %v264_v40  ;;  %v325_v29 = vmul.f32 0.0625, %v240_v41  ;;  %v731_v20 = vsel %vm678_vm5, %v659_v35, %v730_v12  ;;  %v724_v21 = vsel %vm678_vm5, %v627_v53, %v723_v13 }
 0x107   :  { %v663_v60 = vrot.slane %v333_v28, %v1286_v19  ;;  %v631_v61 = vrot.slane %v325_v29, %v1286_v19 }
 0x108   :  { %v267_v22 = vpop.xlane.xlu1 %266  ;;  %v243_v23 = vpop.xlane.xlu0 %242 }
 0x109   :  { %v334_v27 = vmul.f32 0.0625, %v267_v22  ;;  %v326_v34 = vmul.f32 0.0625, %v243_v23  ;;  %v732_v24 = vsel %vm680_vm6, %v663_v60, %v731_v20  ;;  %v725_v25 = vsel %vm680_vm6, %v631_v61, %v724_v21 }
 0x10b   :  { %v667_v4 = vrot.slane %v334_v27, %v1286_v19  ;;  %v635_v5 = vrot.slane %v326_v34, %v1286_v19 }
 0x10c   :  { %v270_v8 = vpop.xlane.xlu1 %269  ;;  %v246_v9 = vpop.xlane.xlu0 %245 }
 0x10d   :  { %v335_v16 = vmul.f32 0.0625, %v270_v8  ;;  %v327_v17 = vmul.f32 0.0625, %v246_v9  ;;  %v733_v42 = vsel %vm682_vm7, %v667_v4, %v732_v24  ;;  %v726_v43 = vsel %vm682_vm7, %v635_v5, %v725_v25 }
 0x10f   :  { %v671_v38 = vrot.slane %v335_v16, %v1286_v19  ;;  %v639_v39 = vrot.slane %v327_v17, %v1286_v19 }
 0x110   :  { %v348_v54 = vpop.permute.xlu1 %347 }
 0x111   :  { %v727_v46 = vsel %vm684_vm8, %v639_v39, %v726_v43  ;;  %v734_v47 = vsel %vm684_vm8, %v671_v38, %v733_v42 }
 0x112   :  { %v876_v50 = vpack.c.bf16 %v734_v47, %v727_v46 }
 0x114   :  { %877 = vmatprep.subr.bf16.mxu0 %v876_v50  ;;  %v343_v55 = vpop.permute.xlu0 %342 }
 0x115   :  { %879 = vmatpush3.bf16.msra.mxu0 %v876_v50 }
 0x118   :  { %862 = vmatmul.mubr.msk.f32.vlgmr.msra.gmra.mrb[0].mxu0 %vm743_vm1, %v337_v51 }
 0x1eb   :  { %v863_v19 = vpop.f32.mrb[0].mxu0 }
 0x1ec   :  { %v822_v58 = vadd.f32 %v863_v19, %v348_v54  ;;  %v816_v59 = vpop.f32.mrb[1].mxu0 }
 0x1ed   :  { %v817_v62 = vadd.f32 %v816_v59, %v343_v55 }
 0x1ee   :  { %828 = vst.msk [vmem:[%s1437_s3 + $0x8] sm:$0x3] %vm827_vm9, %v822_v58 }
 0x1ef   :  { %826 = vst.msk [vmem:[%s1437_s3] sm:$0xff] %vm825_vm10, %v817_v62 }

</bundles_post_ra>
